<compile_context>
chip_gen: v6e
topology: v6e:2x2x1
jax: 0.10.0
libtpu: 0.0.40
codegen_flags: <defaults>
</compile_context>

<pallas_src>
import functools
import numpy as np
import jax
import jax.numpy as jnp
from jax.experimental import pallas as pl
from jax.experimental.pallas import tpu as pltpu


# ----------------------------- math helpers ---------------------------------

def _layer_norm(v, w, b, eps=1e-5):
    # PyTorch nn.LayerNorm: biased variance, eps inside sqrt.
    mu = jnp.mean(v, axis=-1, keepdims=True)
    var = jnp.mean((v - mu) ** 2, axis=-1, keepdims=True)
    return (v - mu) * jax.lax.rsqrt(var + eps) * w + b


def _gelu_tanh(v):
    # tanh-form GELU: one EUP transcendental + a few VPU FMAs.
    # |error| vs exact erf-GELU < ~1e-3, well inside the test tolerance.
    return 0.5 * v * (1.0 + jnp.tanh(0.7978845608028654 * (v + 0.044715 * v * v * v)))


def _gelu_exact_host(v):
    # Reference uses the exact erf GELU (PyTorch nn.GELU() default).
    return 0.5 * v * (1.0 + jax.scipy.special.erf(v * (1.0 / np.sqrt(2.0))))


# ------------------------------- kernel --------------------------------------

def _block_kernel(num_heads,
                  x_ref, bias_ref, colmask_ref,
                  ln1_w_ref, ln1_b_ref,
                  q_w_ref, q_b_ref, k_w_ref, k_b_ref, v_w_ref, v_b_ref,
                  out_w_ref, out_b_ref,
                  ln2_w_ref, ln2_b_ref,
                  fc1_w_ref, fc1_b_ref,
                  fc2_w_ref, fc2_b_ref,
                  o_ref):
    B, S, E = x_ref.shape
    H = num_heads
    N = B * S

    # Hoist all loads once (JAX does not CSE broadcasts/loads).
    x = x_ref[...].reshape(N, E)                 # merge (B,S) -> N rows (layout-preserving)
    bias = bias_ref[...]                         # [N, N] additive; encodes causal mask AND
                                                 # the batch block-diagonal (-1e30 elsewhere)
    colmask = colmask_ref[...]                   # [H, E]: 1.0 where column e belongs to head h
    ln1_w, ln1_b = ln1_w_ref[...], ln1_b_ref[...]
    ln2_w, ln2_b = ln2_w_ref[...], ln2_b_ref[...]
    q_w, q_b = q_w_ref[...], q_b_ref[...]
    k_w, k_b = k_w_ref[...], k_b_ref[...]
    v_w, v_b = v_w_ref[...], v_b_ref[...]
    out_w, out_b = out_w_ref[...], out_b_ref[...]
    fc1_w, fc1_b = fc1_w_ref[...], fc1_b_ref[...]
    fc2_w, fc2_b = fc2_w_ref[...], fc2_b_ref[...]

    # ---- LayerNorm 1 (the original Block replaces x with ln1(x)) ----
    h1 = _layer_norm(x, ln1_w, ln1_b)                                   # [N, E]

    # ---- separate Q/K/V projections (1/sqrt(hd) pre-folded into q_w/q_b) ----
    q = jnp.dot(h1, q_w, preferred_element_type=jnp.float32) + q_b      # [N, E]
    k = jnp.dot(h1, k_w, preferred_element_type=jnp.float32) + k_b      # [N, E]
    v = jnp.dot(h1, v_w, preferred_element_type=jnp.float32) + v_b      # [N, E]

    # ---- head-block-diagonal Q: row block h keeps only its hd feature columns ----
    q_blk = (q[None, :, :] * colmask[:, None, :]).reshape(H * N, E)     # [H*N, E]

    # ---- scores: one trans-B matmul (K transposed once, not per head) ----
    s = jax.lax.dot_general(q_blk, k, (((1,), (1,)), ((), ())),
                            preferred_element_type=jnp.float32)         # [H*N, N]
    s = s.reshape(H, N, N) + bias[None, :, :]                           # leading split: free

    # ---- softmax along full 128-lane rows ----
    s = s - jnp.max(s, axis=-1, keepdims=True)
    p = jnp.exp(s)
    p = p * pl.reciprocal(jnp.sum(p, axis=-1, keepdims=True), approx=True)

    # ---- context: one matmul with contraction depth N, then masked head merge ----
    ctx_all = jnp.dot(p.reshape(H * N, N), v,
                      preferred_element_type=jnp.float32)               # [H*N, E]
    ctx = jnp.sum(ctx_all.reshape(H, N, E) * colmask[:, None, :], axis=0)  # [N, E]

    # ---- output projection + residual with ln1(x) ----
    attn = jnp.dot(ctx, out_w, preferred_element_type=jnp.float32) + out_b
    x1 = h1 + attn

    # ---- MLP branch (Linear -> GELU -> Linear; Dropout is identity in eval) ----
    h2 = _layer_norm(x1, ln2_w, ln2_b)
    hid = _gelu_tanh(jnp.dot(h2, fc1_w, preferred_element_type=jnp.float32) + fc1_b)
    m = jnp.dot(hid, fc2_w, preferred_element_type=jnp.float32) + fc2_b

    o_ref[...] = (x1 + m).reshape(B, S, E)


# ------------------------------ wrapper ---------------------------------------

def _full_spec(a):
    nd = a.ndim
    return pl.BlockSpec(tuple(a.shape), lambda i, _n=nd: (0,) * _n)


def transformer_block(x, attn_mask, params, num_heads):
    """x: [B, S, E] f32; attn_mask: [S, S] f32 (1.0 => masked). Returns [B, S, E]."""
    B, S, E = x.shape
    H = num_heads
    assert E % H == 0
    hd = E // H
    N = B * S

    # ---- host-side folds ----
    # q-scale folded into the query projection weights/bias.
    qscale = jnp.float32(1.0 / np.sqrt(hd))
    q_w = params['in_w'][:, :E] * qscale
    q_b = params['in_b'][:, :E] * qscale
    k_w = params['in_w'][:, E:2 * E]
    k_b = params['in_b'][:, E:2 * E]
    v_w = params['in_w'][:, 2 * E:]
    v_b = params['in_b'][:, 2 * E:]

    # Bool mask -> finite additive bias; also encode the batch block-diagonal so the
    # kernel runs one softmax pass over both batch elements (cross-batch = -1e30).
    mask_bias = jnp.where(attn_mask > 0.5, -1e30, 0.0).astype(jnp.float32)   # [S, S]
    eye_b = jnp.eye(B, dtype=jnp.float32)
    bias_bb = jnp.where(eye_b[:, None, :, None] > 0.5,
                        mask_bias[None, :, None, :],
                        jnp.float32(-1e30)).reshape(N, N).astype(jnp.float32)

    # Head selector mask: colmask[h, e] = 1.0 iff feature column e belongs to head h.
    colmask = (np.arange(E)[None, :] // hd == np.arange(H)[:, None]).astype(np.float32)
    colmask = jnp.asarray(colmask)

    param_list = [bias_bb, colmask,
                  params['ln1_w'], params['ln1_b'],
                  q_w, q_b, k_w, k_b, v_w, v_b,
                  params['out_w'], params['out_b'],
                  params['ln2_w'], params['ln2_b'],
                  params['fc1_w'], params['fc1_b'],
                  params['fc2_w'], params['fc2_b']]

    in_specs = [_full_spec(x)] + [_full_spec(p) for p in param_list]

    kernel = functools.partial(_block_kernel, H)

    # Advisory cost hint for the XLA scheduler.
    flops = (3 * 2 * N * E * E            # q/k/v projections
             + 2 * (H * N) * E * N        # scores (incl. masked cross-batch work)
             + 2 * (H * N) * N * E        # context
             + 2 * N * E * E              # out projection
             + 2 * 2 * N * E * 4 * E)     # mlp
    transcendentals = H * N * N + N * 4 * E + H * N + 4 * N
    bytes_accessed = 4 * (2 * N * E + N * N + H * E
                          + 4 * E * E + 2 * E * 4 * E + 16 * E)

    # Footprint is < 2 MiB, well inside the default scoped VMEM on v5e/v6e/v7x;
    # if S/E scale up, add vmem_limit_bytes headroom (v7x has only 64 MiB physical).
    return pl.pallas_call(
        kernel,
        out_shape=jax.ShapeDtypeStruct((B, S, E), jnp.float32),
        grid_spec=pltpu.PrefetchScalarGridSpec(
            num_scalar_prefetch=0,
            grid=(1,),                                   # latency-bound: one step, all chips
            in_specs=in_specs,
            out_specs=pl.BlockSpec((B, S, E), lambda i: (0, 0, 0)),
        ),
        compiler_params=pltpu.CompilerParams(dimension_semantics=("arbitrary",)),
        cost_estimate=pl.CostEstimate(flops=flops,
                                      transcendentals=transcendentals,
                                      bytes_accessed=bytes_accessed),
    )(x, *param_list)


# --------------------------- pure-JAX reference --------------------------------

def block_reference(x, attn_mask, p, num_heads):
    B, S, E = x.shape
    hd = E // num_heads
    h = _layer_norm(x, p['ln1_w'], p['ln1_b'])
    qkv = h @ p['in_w'] + p['in_b']
    q, k, v = qkv[..., :E], qkv[..., E:2 * E], qkv[..., 2 * E:]
    q = q * (1.0 / np.sqrt(hd))
    qh = q.reshape(B, S, num_heads, hd)
    kh = k.reshape(B, S, num_heads, hd)
    vh = v.reshape(B, S, num_heads, hd)
    s = jnp.einsum('bqhd,bkhd->bhqk', qh, kh)
    s = s + jnp.where(attn_mask > 0.5, -jnp.inf, 0.0)
    pa = jax.nn.softmax(s, axis=-1)
    ctx = jnp.einsum('bhqk,bkhd->bqhd', pa, vh).reshape(B, S, E)
    attn = ctx @ p['out_w'] + p['out_b']
    x1 = h + attn
    h2 = _layer_norm(x1, p['ln2_w'], p['ln2_b'])
    m = _gelu_exact_host(h2 @ p['fc1_w'] + p['fc1_b']) @ p['fc2_w'] + p['fc2_b']
    return x1 + m


# --------------------------------- main ----------------------------------------

if __name__ == "__main__":
    B, S, E, H = 2, 64, 32, 4          # batch, seq (gpt_block_size), num_embed, num_heads
    key = jax.random.PRNGKey(0)
    keys = jax.random.split(key, 16)

    def w(k, shape, scale=0.02):
        return (scale * jax.random.normal(k, shape)).astype(jnp.float32)

    params = {
        'ln1_w': (1.0 + w(keys[0], (1, E), 0.05)).astype(jnp.float32),
        'ln1_b': w(keys[1], (1, E), 0.05),
        'in_w': w(keys[2], (E, 3 * E)),      # MHA in_proj_weight^T
        'in_b': w(keys[3], (1, 3 * E)),
        'out_w': w(keys[4], (E, E)),         # MHA out_proj.weight^T
        'out_b': w(keys[5], (1, E)),
        'ln2_w': (1.0 + w(keys[6], (1, E), 0.05)).astype(jnp.float32),
        'ln2_b': w(keys[7], (1, E), 0.05),
        'fc1_w': w(keys[8], (E, 4 * E)),
        'fc1_b': w(keys[9], (1, 4 * E)),
        'fc2_w': w(keys[10], (4 * E, E)),
        'fc2_b': w(keys[11], (1, E)),
    }

    x = jax.random.normal(keys[12], (B, S, E), dtype=jnp.float32)
    # Same mask for every head/batch (as in the original module); 1.0 => masked.
    attn_mask = jnp.triu(jnp.ones((S, S), jnp.float32), k=1)
    camera_bias = None  # unused by the 'pytorch' backend; Block just passes it through
    # TODO(synk): deepspeed block-sparse SparseSelfAttention backend (attn_mask_mode='mul',
    # camera_bias add_mask) is not reimplemented; the dense 'pytorch' backend path is.

    out = transformer_block(x, attn_mask, params, H)
    out = jax.block_until_ready(out)

    ref = block_reference(x, attn_mask, params, H)
    np.testing.assert_allclose(np.asarray(out), np.asarray(ref), rtol=1e-2, atol=1e-2)

    result = (out, camera_bias)   # Block.forward returns (x, camera_bias)
    print("KERNEL_OK")
</pallas_src>

<mosaic_0001>
module attributes {stable_mosaic.version = 11 : i64} {
  func.func @_block_kernel(%arg0: i32, %arg1: memref<2x64x32xf32, #tpu.memory_space<vmem>>, %arg2: memref<128x128xf32, #tpu.memory_space<vmem>>, %arg3: memref<4x32xf32, #tpu.memory_space<vmem>>, %arg4: memref<1x32xf32, #tpu.memory_space<vmem>>, %arg5: memref<1x32xf32, #tpu.memory_space<vmem>>, %arg6: memref<32x32xf32, #tpu.memory_space<vmem>>, %arg7: memref<1x32xf32, #tpu.memory_space<vmem>>, %arg8: memref<32x32xf32, #tpu.memory_space<vmem>>, %arg9: memref<1x32xf32, #tpu.memory_space<vmem>>, %arg10: memref<32x32xf32, #tpu.memory_space<vmem>>, %arg11: memref<1x32xf32, #tpu.memory_space<vmem>>, %arg12: memref<32x32xf32, #tpu.memory_space<vmem>>, %arg13: memref<1x32xf32, #tpu.memory_space<vmem>>, %arg14: memref<1x32xf32, #tpu.memory_space<vmem>>, %arg15: memref<1x32xf32, #tpu.memory_space<vmem>>, %arg16: memref<32x128xf32, #tpu.memory_space<vmem>>, %arg17: memref<1x128xf32, #tpu.memory_space<vmem>>, %arg18: memref<128x32xf32, #tpu.memory_space<vmem>>, %arg19: memref<1x32xf32, #tpu.memory_space<vmem>>, %arg20: memref<2x64x32xf32, #tpu.memory_space<vmem>>) attributes {dimension_semantics = [#tpu.dimension_semantics<arbitrary>], iteration_bounds = array<i64: 1>, scalar_prefetch = 0 : i64, scratch_operands = 0 : i64, tpu.core_type = #tpu.core_type<tc>, window_params = [{pipeline_mode = #tpu.pipeline_mode<synchronous>, transform_indices = @transform_0, window_bounds = array<i64: 2, 64, 32>}, {pipeline_mode = #tpu.pipeline_mode<synchronous>, transform_indices = @transform_1, window_bounds = array<i64: 128, 128>}, {pipeline_mode = #tpu.pipeline_mode<synchronous>, transform_indices = @transform_2, window_bounds = array<i64: 4, 32>}, {pipeline_mode = #tpu.pipeline_mode<synchronous>, transform_indices = @transform_3, window_bounds = array<i64: 1, 32>}, {pipeline_mode = #tpu.pipeline_mode<synchronous>, transform_indices = @transform_4, window_bounds = array<i64: 1, 32>}, {pipeline_mode = #tpu.pipeline_mode<synchronous>, transform_indices = @transform_5, window_bounds = array<i64: 32, 32>}, {pipeline_mode = #tpu.pipeline_mode<synchronous>, transform_indices = @transform_6, window_bounds = array<i64: 1, 32>}, {pipeline_mode = #tpu.pipeline_mode<synchronous>, transform_indices = @transform_7, window_bounds = array<i64: 32, 32>}, {pipeline_mode = #tpu.pipeline_mode<synchronous>, transform_indices = @transform_8, window_bounds = array<i64: 1, 32>}, {pipeline_mode = #tpu.pipeline_mode<synchronous>, transform_indices = @transform_9, window_bounds = array<i64: 32, 32>}, {pipeline_mode = #tpu.pipeline_mode<synchronous>, transform_indices = @transform_10, window_bounds = array<i64: 1, 32>}, {pipeline_mode = #tpu.pipeline_mode<synchronous>, transform_indices = @transform_11, window_bounds = array<i64: 32, 32>}, {pipeline_mode = #tpu.pipeline_mode<synchronous>, transform_indices = @transform_12, window_bounds = array<i64: 1, 32>}, {pipeline_mode = #tpu.pipeline_mode<synchronous>, transform_indices = @transform_13, window_bounds = array<i64: 1, 32>}, {pipeline_mode = #tpu.pipeline_mode<synchronous>, transform_indices = @transform_14, window_bounds = array<i64: 1, 32>}, {pipeline_mode = #tpu.pipeline_mode<synchronous>, transform_indices = @transform_15, window_bounds = array<i64: 32, 128>}, {pipeline_mode = #tpu.pipeline_mode<synchronous>, transform_indices = @transform_16, window_bounds = array<i64: 1, 128>}, {pipeline_mode = #tpu.pipeline_mode<synchronous>, transform_indices = @transform_17, window_bounds = array<i64: 128, 32>}, {pipeline_mode = #tpu.pipeline_mode<synchronous>, transform_indices = @transform_18, window_bounds = array<i64: 1, 32>}, {pipeline_mode = #tpu.pipeline_mode<synchronous>, transform_indices = @transform_19, window_bounds = array<i64: 2, 64, 32>}]} {
    %c0 = arith.constant 0 : index
    %c0_0 = arith.constant 0 : index
    %c0_1 = arith.constant 0 : index
    %0 = vector.load %arg1[%c0, %c0_0, %c0_1] : memref<2x64x32xf32, #tpu.memory_space<vmem>>, vector<2x64x32xf32>
    %1 = vector.shape_cast %0 : vector<2x64x32xf32> to vector<128x32xf32>
    %c0_2 = arith.constant 0 : index
    %c0_3 = arith.constant 0 : index
    %2 = vector.load %arg2[%c0_2, %c0_3] : memref<128x128xf32, #tpu.memory_space<vmem>>, vector<128x128xf32>
    %c0_4 = arith.constant 0 : index
    %c0_5 = arith.constant 0 : index
    %3 = vector.load %arg3[%c0_4, %c0_5] : memref<4x32xf32, #tpu.memory_space<vmem>>, vector<4x32xf32>
    %c0_6 = arith.constant 0 : index
    %c0_7 = arith.constant 0 : index
    %4 = vector.load %arg4[%c0_6, %c0_7] : memref<1x32xf32, #tpu.memory_space<vmem>>, vector<1x32xf32>
    %c0_8 = arith.constant 0 : index
    %c0_9 = arith.constant 0 : index
    %5 = vector.load %arg5[%c0_8, %c0_9] : memref<1x32xf32, #tpu.memory_space<vmem>>, vector<1x32xf32>
    %c0_10 = arith.constant 0 : index
    %c0_11 = arith.constant 0 : index
    %6 = vector.load %arg14[%c0_10, %c0_11] : memref<1x32xf32, #tpu.memory_space<vmem>>, vector<1x32xf32>
    %c0_12 = arith.constant 0 : index
    %c0_13 = arith.constant 0 : index
    %7 = vector.load %arg15[%c0_12, %c0_13] : memref<1x32xf32, #tpu.memory_space<vmem>>, vector<1x32xf32>
    %c0_14 = arith.constant 0 : index
    %c0_15 = arith.constant 0 : index
    %8 = vector.load %arg6[%c0_14, %c0_15] : memref<32x32xf32, #tpu.memory_space<vmem>>, vector<32x32xf32>
    %c0_16 = arith.constant 0 : index
    %c0_17 = arith.constant 0 : index
    %9 = vector.load %arg7[%c0_16, %c0_17] : memref<1x32xf32, #tpu.memory_space<vmem>>, vector<1x32xf32>
    %c0_18 = arith.constant 0 : index
    %c0_19 = arith.constant 0 : index
    %10 = vector.load %arg8[%c0_18, %c0_19] : memref<32x32xf32, #tpu.memory_space<vmem>>, vector<32x32xf32>
    %c0_20 = arith.constant 0 : index
    %c0_21 = arith.constant 0 : index
    %11 = vector.load %arg9[%c0_20, %c0_21] : memref<1x32xf32, #tpu.memory_space<vmem>>, vector<1x32xf32>
    %c0_22 = arith.constant 0 : index
    %c0_23 = arith.constant 0 : index
    %12 = vector.load %arg10[%c0_22, %c0_23] : memref<32x32xf32, #tpu.memory_space<vmem>>, vector<32x32xf32>
    %c0_24 = arith.constant 0 : index
    %c0_25 = arith.constant 0 : index
    %13 = vector.load %arg11[%c0_24, %c0_25] : memref<1x32xf32, #tpu.memory_space<vmem>>, vector<1x32xf32>
    %c0_26 = arith.constant 0 : index
    %c0_27 = arith.constant 0 : index
    %14 = vector.load %arg12[%c0_26, %c0_27] : memref<32x32xf32, #tpu.memory_space<vmem>>, vector<32x32xf32>
    %c0_28 = arith.constant 0 : index
    %c0_29 = arith.constant 0 : index
    %15 = vector.load %arg13[%c0_28, %c0_29] : memref<1x32xf32, #tpu.memory_space<vmem>>, vector<1x32xf32>
    %c0_30 = arith.constant 0 : index
    %c0_31 = arith.constant 0 : index
    %16 = vector.load %arg16[%c0_30, %c0_31] : memref<32x128xf32, #tpu.memory_space<vmem>>, vector<32x128xf32>
    %c0_32 = arith.constant 0 : index
    %c0_33 = arith.constant 0 : index
    %17 = vector.load %arg17[%c0_32, %c0_33] : memref<1x128xf32, #tpu.memory_space<vmem>>, vector<1x128xf32>
    %c0_34 = arith.constant 0 : index
    %c0_35 = arith.constant 0 : index
    %18 = vector.load %arg18[%c0_34, %c0_35] : memref<128x32xf32, #tpu.memory_space<vmem>>, vector<128x32xf32>
    %c0_36 = arith.constant 0 : index
    %c0_37 = arith.constant 0 : index
    %19 = vector.load %arg19[%c0_36, %c0_37] : memref<1x32xf32, #tpu.memory_space<vmem>>, vector<1x32xf32>
    %cst = arith.constant dense<0.000000e+00> : vector<128xf32>
    %20 = vector.multi_reduction <add>, %1, %cst [1] : vector<128x32xf32> to vector<128xf32>
    %21 = vector.shape_cast %20 : vector<128xf32> to vector<128x1xf32>
    %cst_38 = arith.constant 3.200000e+01 : f32
    %22 = vector.broadcast %cst_38 : f32 to vector<128x1xf32>
    %23 = arith.divf %21, %22 : vector<128x1xf32>
    %24 = vector.broadcast %23 : vector<128x1xf32> to vector<128x32xf32>
    %25 = arith.subf %1, %24 : vector<128x32xf32>
    %26 = arith.mulf %25, %25 : vector<128x32xf32>
    %cst_39 = arith.constant dense<0.000000e+00> : vector<128xf32>
    %27 = vector.multi_reduction <add>, %26, %cst_39 [1] : vector<128x32xf32> to vector<128xf32>
    %28 = vector.shape_cast %27 : vector<128xf32> to vector<128x1xf32>
    %cst_40 = arith.constant 3.200000e+01 : f32
    %29 = vector.broadcast %cst_40 : f32 to vector<128x1xf32>
    %30 = arith.divf %28, %29 : vector<128x1xf32>
    %31 = vector.broadcast %23 : vector<128x1xf32> to vector<128x32xf32>
    %32 = arith.subf %1, %31 : vector<128x32xf32>
    %cst_41 = arith.constant 9.99999974E-6 : f32
    %33 = vector.broadcast %cst_41 : f32 to vector<128x1xf32>
    %34 = arith.addf %30, %33 : vector<128x1xf32>
    %35 = math.rsqrt %34 : vector<128x1xf32>
    %36 = vector.broadcast %35 : vector<128x1xf32> to vector<128x32xf32>
    %37 = arith.mulf %32, %36 : vector<128x32xf32>
    %38 = vector.broadcast %4 : vector<1x32xf32> to vector<128x32xf32>
    %39 = arith.mulf %37, %38 : vector<128x32xf32>
    %40 = vector.broadcast %5 : vector<1x32xf32> to vector<128x32xf32>
    %41 = arith.addf %39, %40 : vector<128x32xf32>
    %cst_42 = arith.constant dense<0.000000e+00> : vector<128x32xf32>
    %42 = tpu.matmul %41, %8, %cst_42 {dimension_numbers = #tpu.dot_dimension_numbers<[1], [0], [0], [1], [0, 0, 1, 1], [], []>} : vector<128x32xf32>, vector<32x32xf32>, vector<128x32xf32> -> vector<128x32xf32>
    %43 = vector.broadcast %9 : vector<1x32xf32> to vector<128x32xf32>
    %44 = arith.addf %42, %43 : vector<128x32xf32>
    %cst_43 = arith.constant dense<0.000000e+00> : vector<128x32xf32>
    %45 = tpu.matmul %41, %10, %cst_43 {dimension_numbers = #tpu.dot_dimension_numbers<[1], [0], [0], [1], [0, 0, 1, 1], [], []>} : vector<128x32xf32>, vector<32x32xf32>, vector<128x32xf32> -> vector<128x32xf32>
    %46 = vector.broadcast %11 : vector<1x32xf32> to vector<128x32xf32>
    %47 = arith.addf %45, %46 : vector<128x32xf32>
    %cst_44 = arith.constant dense<0.000000e+00> : vector<128x32xf32>
    %48 = tpu.matmul %41, %12, %cst_44 {dimension_numbers = #tpu.dot_dimension_numbers<[1], [0], [0], [1], [0, 0, 1, 1], [], []>} : vector<128x32xf32>, vector<32x32xf32>, vector<128x32xf32> -> vector<128x32xf32>
    %49 = vector.broadcast %13 : vector<1x32xf32> to vector<128x32xf32>
    %50 = arith.addf %48, %49 : vector<128x32xf32>
    %51 = vector.shape_cast %44 : vector<128x32xf32> to vector<1x128x32xf32>
    %52 = vector.shape_cast %3 : vector<4x32xf32> to vector<4x1x32xf32>
    %53 = vector.broadcast %51 : vector<1x128x32xf32> to vector<4x128x32xf32>
    %54 = vector.broadcast %52 : vector<4x1x32xf32> to vector<4x128x32xf32>
    %55 = arith.mulf %53, %54 : vector<4x128x32xf32>
    %56 = vector.shape_cast %55 : vector<4x128x32xf32> to vector<512x32xf32>
    %cst_45 = arith.constant dense<0.000000e+00> : vector<512x128xf32>
    %57 = tpu.matmul %56, %47, %cst_45 {dimension_numbers = #tpu.dot_dimension_numbers<[1], [1], [0], [0], [0, 0, 1, 0], [], []>} : vector<512x32xf32>, vector<128x32xf32>, vector<512x128xf32> -> vector<512x128xf32>
    %58 = vector.shape_cast %57 : vector<512x128xf32> to vector<4x128x128xf32>
    %59 = vector.shape_cast %2 : vector<128x128xf32> to vector<1x128x128xf32>
    %60 = vector.broadcast %59 : vector<1x128x128xf32> to vector<4x128x128xf32>
    %61 = arith.addf %58, %60 : vector<4x128x128xf32>
    %cst_46 = arith.constant dense<0xFF800000> : vector<4x128xf32>
    %62 = vector.multi_reduction <maximumf>, %61, %cst_46 [2] : vector<4x128x128xf32> to vector<4x128xf32>
    %63 = vector.shape_cast %62 : vector<4x128xf32> to vector<4x128x1xf32>
    %64 = vector.broadcast %63 : vector<4x128x1xf32> to vector<4x128x128xf32>
    %65 = arith.subf %61, %64 : vector<4x128x128xf32>
    %66 = math.exp %65 : vector<4x128x128xf32>
    %cst_47 = arith.constant dense<0.000000e+00> : vector<4x128xf32>
    %67 = vector.multi_reduction <add>, %66, %cst_47 [2] : vector<4x128x128xf32> to vector<4x128xf32>
    %68 = vector.shape_cast %67 : vector<4x128xf32> to vector<4x128x1xf32>
    %69 = tpu.reciprocal %68 {approx = true} : vector<4x128x1xf32> -> vector<4x128x1xf32>
    %70 = vector.broadcast %69 : vector<4x128x1xf32> to vector<4x128x128xf32>
    %71 = arith.mulf %66, %70 : vector<4x128x128xf32>
    %72 = vector.shape_cast %71 : vector<4x128x128xf32> to vector<512x128xf32>
    %cst_48 = arith.constant dense<0.000000e+00> : vector<512x32xf32>
    %73 = tpu.matmul %72, %50, %cst_48 {dimension_numbers = #tpu.dot_dimension_numbers<[1], [0], [0], [1], [0, 0, 1, 1], [], []>} : vector<512x128xf32>, vector<128x32xf32>, vector<512x32xf32> -> vector<512x32xf32>
    %74 = vector.shape_cast %73 : vector<512x32xf32> to vector<4x128x32xf32>
    %75 = vector.shape_cast %3 : vector<4x32xf32> to vector<4x1x32xf32>
    %76 = vector.broadcast %75 : vector<4x1x32xf32> to vector<4x128x32xf32>
    %77 = arith.mulf %74, %76 : vector<4x128x32xf32>
    %cst_49 = arith.constant dense<0.000000e+00> : vector<128x32xf32>
    %78 = vector.multi_reduction <add>, %77, %cst_49 [0] : vector<4x128x32xf32> to vector<128x32xf32>
    %cst_50 = arith.constant dense<0.000000e+00> : vector<128x32xf32>
    %79 = tpu.matmul %78, %14, %cst_50 {dimension_numbers = #tpu.dot_dimension_numbers<[1], [0], [0], [1], [0, 0, 1, 1], [], []>} : vector<128x32xf32>, vector<32x32xf32>, vector<128x32xf32> -> vector<128x32xf32>
    %80 = vector.broadcast %15 : vector<1x32xf32> to vector<128x32xf32>
    %81 = arith.addf %79, %80 : vector<128x32xf32>
    %82 = arith.addf %41, %81 : vector<128x32xf32>
    %cst_51 = arith.constant dense<0.000000e+00> : vector<128xf32>
    %83 = vector.multi_reduction <add>, %82, %cst_51 [1] : vector<128x32xf32> to vector<128xf32>
    %84 = vector.shape_cast %83 : vector<128xf32> to vector<128x1xf32>
    %cst_52 = arith.constant 3.200000e+01 : f32
    %85 = vector.broadcast %cst_52 : f32 to vector<128x1xf32>
    %86 = arith.divf %84, %85 : vector<128x1xf32>
    %87 = vector.broadcast %86 : vector<128x1xf32> to vector<128x32xf32>
    %88 = arith.subf %82, %87 : vector<128x32xf32>
    %89 = arith.mulf %88, %88 : vector<128x32xf32>
    %cst_53 = arith.constant dense<0.000000e+00> : vector<128xf32>
    %90 = vector.multi_reduction <add>, %89, %cst_53 [1] : vector<128x32xf32> to vector<128xf32>
    %91 = vector.shape_cast %90 : vector<128xf32> to vector<128x1xf32>
    %cst_54 = arith.constant 3.200000e+01 : f32
    %92 = vector.broadcast %cst_54 : f32 to vector<128x1xf32>
    %93 = arith.divf %91, %92 : vector<128x1xf32>
    %94 = vector.broadcast %86 : vector<128x1xf32> to vector<128x32xf32>
    %95 = arith.subf %82, %94 : vector<128x32xf32>
    %cst_55 = arith.constant 9.99999974E-6 : f32
    %96 = vector.broadcast %cst_55 : f32 to vector<128x1xf32>
    %97 = arith.addf %93, %96 : vector<128x1xf32>
    %98 = math.rsqrt %97 : vector<128x1xf32>
    %99 = vector.broadcast %98 : vector<128x1xf32> to vector<128x32xf32>
    %100 = arith.mulf %95, %99 : vector<128x32xf32>
    %101 = vector.broadcast %6 : vector<1x32xf32> to vector<128x32xf32>
    %102 = arith.mulf %100, %101 : vector<128x32xf32>
    %103 = vector.broadcast %7 : vector<1x32xf32> to vector<128x32xf32>
    %104 = arith.addf %102, %103 : vector<128x32xf32>
    %cst_56 = arith.constant dense<0.000000e+00> : vector<128x128xf32>
    %105 = tpu.matmul %104, %16, %cst_56 {dimension_numbers = #tpu.dot_dimension_numbers<[1], [0], [0], [1], [0, 0, 1, 1], [], []>} : vector<128x32xf32>, vector<32x128xf32>, vector<128x128xf32> -> vector<128x128xf32>
    %106 = vector.broadcast %17 : vector<1x128xf32> to vector<128x128xf32>
    %107 = arith.addf %105, %106 : vector<128x128xf32>
    %cst_57 = arith.constant 5.000000e-01 : f32
    %108 = vector.broadcast %cst_57 : f32 to vector<128x128xf32>
    %109 = arith.mulf %108, %107 : vector<128x128xf32>
    %cst_58 = arith.constant 4.471500e-02 : f32
    %110 = vector.broadcast %cst_58 : f32 to vector<128x128xf32>
    %111 = arith.mulf %110, %107 : vector<128x128xf32>
    %112 = arith.mulf %111, %107 : vector<128x128xf32>
    %113 = arith.mulf %112, %107 : vector<128x128xf32>
    %114 = arith.addf %107, %113 : vector<128x128xf32>
    %cst_59 = arith.constant 0.797884583 : f32
    %115 = vector.broadcast %cst_59 : f32 to vector<128x128xf32>
    %116 = arith.mulf %115, %114 : vector<128x128xf32>
    %117 = math.tanh %116 : vector<128x128xf32>
    %cst_60 = arith.constant 1.000000e+00 : f32
    %118 = vector.broadcast %cst_60 : f32 to vector<128x128xf32>
    %119 = arith.addf %118, %117 : vector<128x128xf32>
    %120 = arith.mulf %109, %119 : vector<128x128xf32>
    %cst_61 = arith.constant dense<0.000000e+00> : vector<128x32xf32>
    %121 = tpu.matmul %120, %18, %cst_61 {dimension_numbers = #tpu.dot_dimension_numbers<[1], [0], [0], [1], [0, 0, 1, 1], [], []>} : vector<128x128xf32>, vector<128x32xf32>, vector<128x32xf32> -> vector<128x32xf32>
    %122 = vector.broadcast %19 : vector<1x32xf32> to vector<128x32xf32>
    %123 = arith.addf %121, %122 : vector<128x32xf32>
    %124 = arith.addf %82, %123 : vector<128x32xf32>
    %125 = vector.shape_cast %124 : vector<128x32xf32> to vector<2x64x32xf32>
    %c0_62 = arith.constant 0 : index
    %c0_63 = arith.constant 0 : index
    %c0_64 = arith.constant 0 : index
    %126 = vector.load %arg20[%c0_62, %c0_63, %c0_64] : memref<2x64x32xf32, #tpu.memory_space<vmem>>, vector<2x64x32xf32>
    tpu.vector_store %arg20[%c0_62, %c0_63, %c0_64], %125 {strides = array<i32>} : memref<2x64x32xf32, #tpu.memory_space<vmem>>, vector<2x64x32xf32>,
    return
  }
  func.func @transform_0(%arg0: i32) -> (i32, i32, i32) {
    %c0_i32 = arith.constant 0 : i32
    %c0_i32_0 = arith.constant 0 : i32
    %c0_i32_1 = arith.constant 0 : i32
    %c0_i32_2 = arith.constant 0 : i32
    return %c0_i32, %c0_i32_0, %c0_i32_1 : i32, i32, i32
  }
  func.func @transform_1(%arg0: i32) -> (i32, i32) {
    %c0_i32 = arith.constant 0 : i32
    %c0_i32_0 = arith.constant 0 : i32
    %c0_i32_1 = arith.constant 0 : i32
    return %c0_i32, %c0_i32_0 : i32, i32
  }
  func.func @transform_2(%arg0: i32) -> (i32, i32) {
    %c0_i32 = arith.constant 0 : i32
    %c0_i32_0 = arith.constant 0 : i32
    %c0_i32_1 = arith.constant 0 : i32
    return %c0_i32, %c0_i32_0 : i32, i32
  }
  func.func @transform_3(%arg0: i32) -> (i32, i32) {
    %c0_i32 = arith.constant 0 : i32
    %c0_i32_0 = arith.constant 0 : i32
    %c0_i32_1 = arith.constant 0 : i32
    return %c0_i32, %c0_i32_0 : i32, i32
  }
  func.func @transform_4(%arg0: i32) -> (i32, i32) {
    %c0_i32 = arith.constant 0 : i32
    %c0_i32_0 = arith.constant 0 : i32
    %c0_i32_1 = arith.constant 0 : i32
    return %c0_i32, %c0_i32_0 : i32, i32
  }
  func.func @transform_5(%arg0: i32) -> (i32, i32) {
    %c0_i32 = arith.constant 0 : i32
    %c0_i32_0 = arith.constant 0 : i32
    %c0_i32_1 = arith.constant 0 : i32
    return %c0_i32, %c0_i32_0 : i32, i32
  }
  func.func @transform_6(%arg0: i32) -> (i32, i32) {
    %c0_i32 = arith.constant 0 : i32
    %c0_i32_0 = arith.constant 0 : i32
    %c0_i32_1 = arith.constant 0 : i32
    return %c0_i32, %c0_i32_0 : i32, i32
  }
  func.func @transform_7(%arg0: i32) -> (i32, i32) {
    %c0_i32 = arith.constant 0 : i32
    %c0_i32_0 = arith.constant 0 : i32
    %c0_i32_1 = arith.constant 0 : i32
    return %c0_i32, %c0_i32_0 : i32, i32
  }
  func.func @transform_8(%arg0: i32) -> (i32, i32) {
    %c0_i32 = arith.constant 0 : i32
    %c0_i32_0 = arith.constant 0 : i32
    %c0_i32_1 = arith.constant 0 : i32
    return %c0_i32, %c0_i32_0 : i32, i32
  }
  func.func @transform_9(%arg0: i32) -> (i32, i32) {
    %c0_i32 = arith.constant 0 : i32
    %c0_i32_0 = arith.constant 0 : i32
    %c0_i32_1 = arith.constant 0 : i32
    return %c0_i32, %c0_i32_0 : i32, i32
  }
  func.func @transform_10(%arg0: i32) -> (i32, i32) {
    %c0_i32 = arith.constant 0 : i32
    %c0_i32_0 = arith.constant 0 : i32
    %c0_i32_1 = arith.constant 0 : i32
    return %c0_i32, %c0_i32_0 : i32, i32
  }
  func.func @transform_11(%arg0: i32) -> (i32, i32) {
    %c0_i32 = arith.constant 0 : i32
    %c0_i32_0 = arith.constant 0 : i32
    %c0_i32_1 = arith.constant 0 : i32
    return %c0_i32, %c0_i32_0 : i32, i32
  }
  func.func @transform_12(%arg0: i32) -> (i32, i32) {
    %c0_i32 = arith.constant 0 : i32
    %c0_i32_0 = arith.constant 0 : i32
    %c0_i32_1 = arith.constant 0 : i32
    return %c0_i32, %c0_i32_0 : i32, i32
  }
  func.func @transform_13(%arg0: i32) -> (i32, i32) {
    %c0_i32 = arith.constant 0 : i32
    %c0_i32_0 = arith.constant 0 : i32
    %c0_i32_1 = arith.constant 0 : i32
    return %c0_i32, %c0_i32_0 : i32, i32
  }
  func.func @transform_14(%arg0: i32) -> (i32, i32) {
    %c0_i32 = arith.constant 0 : i32
    %c0_i32_0 = arith.constant 0 : i32
    %c0_i32_1 = arith.constant 0 : i32
    return %c0_i32, %c0_i32_0 : i32, i32
  }
  func.func @transform_15(%arg0: i32) -> (i32, i32) {
    %c0_i32 = arith.constant 0 : i32
    %c0_i32_0 = arith.constant 0 : i32
    %c0_i32_1 = arith.constant 0 : i32
    return %c0_i32, %c0_i32_0 : i32, i32
  }
  func.func @transform_16(%arg0: i32) -> (i32, i32) {
    %c0_i32 = arith.constant 0 : i32
    %c0_i32_0 = arith.constant 0 : i32
    %c0_i32_1 = arith.constant 0 : i32
    return %c0_i32, %c0_i32_0 : i32, i32
  }
  func.func @transform_17(%arg0: i32) -> (i32, i32) {
    %c0_i32 = arith.constant 0 : i32
    %c0_i32_0 = arith.constant 0 : i32
    %c0_i32_1 = arith.constant 0 : i32
    return %c0_i32, %c0_i32_0 : i32, i32
  }
  func.func @transform_18(%arg0: i32) -> (i32, i32) {
    %c0_i32 = arith.constant 0 : i32
    %c0_i32_0 = arith.constant 0 : i32
    %c0_i32_1 = arith.constant 0 : i32
    return %c0_i32, %c0_i32_0 : i32, i32
  }
  func.func @transform_19(%arg0: i32) -> (i32, i32, i32) {
    %c0_i32 = arith.constant 0 : i32
    %c0_i32_0 = arith.constant 0 : i32
    %c0_i32_1 = arith.constant 0 : i32
    %c0_i32_2 = arith.constant 0 : i32
    return %c0_i32, %c0_i32_0, %c0_i32_1 : i32, i32, i32
  }
}

</mosaic_0001>

<bundles_post_ra>
// kernel: tpu_custom_call.1
= control target key start
LH: loop header
LB: loop body
LE: loop exit
PB: predicated region body
PF: predicated region fallthrough
CT: control target
= control target key end

     0   :  { %vm141_vm0 = vcmask 261120   ;;  %s7514_s0 = inlined_call_operand.vmem [shape: f32[2,64,32], index: 0, kind: input, shape index: {}]   ;;  %s7515_s5 = inlined_call_operand.vmem [shape: f32[32,32], index: 5, kind: input, shape index: {}]   ;;  %s7516_s7 = inlined_call_operand.vmem [shape: f32[32,32], index: 7, kind: input, shape index: {}]   ;;  %s7517_s9 = inlined_call_operand.vmem [shape: f32[32,32], index: 9, kind: input, shape index: {}]   ;;  %s7518_s3 = inlined_call_operand.vmem [shape: f32[1,32], index: 3, kind: input, shape index: {}]   ;;  %s7519_s4 = inlined_call_operand.vmem [shape: f32[1,32], index: 4, kind: input, shape index: {}]   ;;  %s7520_s2 = inlined_call_operand.vmem [shape: f32[4,32], index: 2, kind: input, shape index: {}]   ;;  %s7521_s6 = inlined_call_operand.vmem [shape: f32[1,32], index: 6, kind: input, shape index: {}]   ;;  %s7522_s8 = inlined_call_operand.vmem [shape: f32[1,32], index: 8, kind: input, shape index: {}]   ;;  %s7523_s10 = inlined_call_operand.vmem [shape: f32[1,32], index: 10, kind: input, shape index: {}]   ;;  %s7524_s1 = inlined_call_operand.vmem [shape: f32[128,128], index: 1, kind: input, shape index: {}]   ;;  %s7525_s11 = inlined_call_operand.vmem [shape: f32[32,32], index: 11, kind: input, shape index: {}]   ;;  %s7526_s12 = inlined_call_operand.vmem [shape: f32[1,32], index: 12, kind: input, shape index: {}]   ;;  %s7527_s15 = inlined_call_operand.vmem [shape: f32[32,128], index: 15, kind: input, shape index: {}]   ;;  %s7528_s13 = inlined_call_operand.vmem [shape: f32[1,32], index: 13, kind: input, shape index: {}]   ;;  %s7529_s14 = inlined_call_operand.vmem [shape: f32[1,32], index: 14, kind: input, shape index: {}]   ;;  %s7530_s17 = inlined_call_operand.vmem [shape: f32[128,32], index: 17, kind: input, shape index: {}]   ;;  %s7531_s16 = inlined_call_operand.vmem [shape: f32[1,128], index: 16, kind: input, shape index: {}]   ;;  %s7532_s18 = inlined_call_operand.vmem [shape: f32[1,32], index: 18, kind: input, shape index: {}]   ;;  %s7533_s19 = inlined_call_operand.vmem [shape: f32[2,64,32], index: 19, kind: output, shape index: {}]  }
   0x1   :  { %7586 = sst [smem:[#allocation37_spill]] %s7514_s0 }
   0x2   :  { %7587 = sst [smem:[#allocation38_spill]] %s7515_s5 }
   0x3   :  { %7588 = sst [smem:[#allocation39_spill]] %s7516_s7 }
   0x4   :  { %7589 = sst [smem:[#allocation40_spill]] %s7517_s9 }
   0x5   :  { %s7590_s20 = sld [smem:[#allocation37_spill]] }
   0x6   :  { %s7591_s7 = sld [smem:[#allocation38_spill]] }
   0x7   :  { %s7592_s0 = sld [smem:[#allocation39_spill]] }
   0x8   :  { %s7593_s5 = sld [smem:[#allocation40_spill]] }
   0xb   :  { %v70_v0 = vld [vmem:[%s7590_s20 + $0x40] sm:$0xff]  ;;  %v72_v1 = vld [vmem:[%s7590_s20 + $0x50] sm:$0xff]  ;;  %v71_v2 = vld [vmem:[%s7590_s20 + $0x48] sm:$0xff] }
   0xc   :  { %v166_v3 = vsel %vm141_vm0, %v70_v0, 0.0  ;;  %v172_v4 = vsel %vm141_vm0, %v72_v1, 0.0  ;;  %v73_v5 = vld [vmem:[%s7590_s20 + $0x58] sm:$0xff]  ;;  %v169_v6 = vsel %vm141_vm0, %v71_v2, 0.0  ;;  %v74_v8 = vld [vmem:[%s7590_s20 + $0x60] sm:$0xff]  ;;  %v75_v9 = vld [vmem:[%s7590_s20 + $0x68] sm:$0xff] }
   0xd   :  { %167 = vadd.xlane.f32.xlu0 %v166_v3  ;;  %173 = vadd.xlane.f32.xlu1 %v172_v4  ;;  %v175_v7 = vsel %vm141_vm0, %v73_v5, 0.0  ;;  %v178_v10 = vsel %vm141_vm0, %v74_v8, 0.0  ;;  %v181_v11 = vsel %vm141_vm0, %v75_v9, 0.0  ;;  %v5252_v12 = vld [vmem:[%s7590_s20 + $0x70] sm:$0xff]  ;;  %v5257_v13 = vld [vmem:[%s7590_s20 + $0x78] sm:$0xff]  ;;  %v5266_v16 = vld [vmem:[%s7590_s20] sm:$0xff] }
   0xe   :  { %v184_v14 = vsel %vm141_vm0, %v5252_v12, 0.0  ;;  %v187_v15 = vsel %vm141_vm0, %v5257_v13, 0.0  ;;  %v5271_v17 = vld [vmem:[%s7590_s20 + $0x8] sm:$0xff]  ;;  %v142_v18 = vsel %vm141_vm0, %v5266_v16, 0.0  ;;  %v5280_v20 = vld [vmem:[%s7590_s20 + $0x10] sm:$0xff]  ;;  %v5285_v21 = vld [vmem:[%s7590_s20 + $0x18] sm:$0xff] }
   0xf   :  { %v145_v19 = vsel %vm141_vm0, %v5271_v17, 0.0  ;;  %v148_v22 = vsel %vm141_vm0, %v5280_v20, 0.0  ;;  %v151_v23 = vsel %vm141_vm0, %v5285_v21, 0.0  ;;  %v5294_v24 = vld [vmem:[%s7590_s20 + $0x20] sm:$0xff]  ;;  %v5299_v25 = vld [vmem:[%s7590_s20 + $0x28] sm:$0xff]  ;;  %v5308_v28 = vld [vmem:[%s7590_s20 + $0x30] sm:$0xff] }
  0x10   :  { %v154_v26 = vsel %vm141_vm0, %v5294_v24, 0.0  ;;  %v157_v27 = vsel %vm141_vm0, %v5299_v25, 0.0  ;;  %v5313_v29 = vld [vmem:[%s7590_s20 + $0x38] sm:$0xff]  ;;  %v160_v30 = vsel %vm141_vm0, %v5308_v28, 0.0 }
  0x11   :  { %170 = vadd.xlane.f32.xlu0 %v169_v6  ;;  %176 = vadd.xlane.f32.xlu1 %v175_v7  ;;  %v163_v31 = vsel %vm141_vm0, %v5313_v29, 0.0 }
  0x15   :  { %179 = vadd.xlane.f32.xlu0 %v178_v10  ;;  %182 = vadd.xlane.f32.xlu1 %v181_v11 }
  0x19   :  { %185 = vadd.xlane.f32.xlu0 %v184_v14  ;;  %188 = vadd.xlane.f32.xlu1 %v187_v15 }
  0x1d   :  { %143 = vadd.xlane.f32.xlu0 %v142_v18  ;;  %146 = vadd.xlane.f32.xlu1 %v145_v19 }
  0x21   :  { %149 = vadd.xlane.f32.xlu0 %v148_v22  ;;  %152 = vadd.xlane.f32.xlu1 %v151_v23 }
  0x25   :  { %155 = vadd.xlane.f32.xlu0 %v154_v26  ;;  %158 = vadd.xlane.f32.xlu1 %v157_v27 }
  0x29   :  { %161 = vadd.xlane.f32.xlu0 %v160_v30  ;;  %164 = vadd.xlane.f32.xlu1 %v163_v31 }
  0x96   :  { %v168_v32 = vpop.xlane.xlu0 %167  ;;  %v174_v33 = vpop.xlane.xlu1 %173 }
  0x97   :  { %v199_v34 = vmul.f32 0.03125, %v168_v32  ;;  %v201_v35 = vmul.f32 0.03125, %v174_v33 }
  0x99   :  { %v5319_v36 = vsub.f32 %v70_v0, %v199_v34  ;;  %v5321_v37 = vsub.f32 %v72_v1, %v201_v35 }
  0x9a   :  { %v171_v38 = vpop.xlane.xlu0 %170  ;;  %v177_v39 = vpop.xlane.xlu1 %176 }
  0x9b   :  { %v200_v40 = vmul.f32 0.03125, %v171_v38  ;;  %v202_v41 = vmul.f32 0.03125, %v177_v39  ;;  %v231_v42 = vmul.f32 %v5319_v36, %v5319_v36  ;;  %v233_v43 = vmul.f32 %v5321_v37, %v5321_v37 }
  0x9d   :  { %v5327_v44 = vsub.f32 %v71_v2, %v200_v40  ;;  %v5329_v45 = vsub.f32 %v73_v5, %v202_v41  ;;  %v263_v46 = vsel %vm141_vm0, %v231_v42, 0.0  ;;  %v269_v49 = vsel %vm141_vm0, %v233_v43, 0.0 }
  0x9e   :  { %v180_v47 = vpop.xlane.xlu0 %179  ;;  %264 = vadd.xlane.f32.xlu0 %v263_v46  ;;  %v183_v48 = vpop.xlane.xlu1 %182 }
  0x9f   :  { %v203_v50 = vmul.f32 0.03125, %v180_v47  ;;  %v204_v51 = vmul.f32 0.03125, %v183_v48  ;;  %v232_v52 = vmul.f32 %v5327_v44, %v5327_v44  ;;  %v234_v53 = vmul.f32 %v5329_v45, %v5329_v45 }
  0xa1   :  { %v5337_v54 = vsub.f32 %v74_v8, %v203_v50  ;;  %v5339_v55 = vsub.f32 %v75_v9, %v204_v51  ;;  %v266_v56 = vsel %vm141_vm0, %v232_v52, 0.0  ;;  %v272_v59 = vsel %vm141_vm0, %v234_v53, 0.0  ;;  %v101_v53 = vld [vmem:[%s7591_s7 + $0x10] sm:$0xff] }
  0xa2   :  { %v186_v57 = vpop.xlane.xlu0 %185  ;;  %267 = vadd.xlane.f32.xlu1 %v266_v56  ;;  %270 = vadd.xlane.f32.xlu0 %v269_v49  ;;  %v189_v58 = vpop.xlane.xlu1 %188  ;;  %v100_v56 = vld [vmem:[%s7591_s7 + $0x8] sm:$0xff] }
  0xa3   :  { %v205_v60 = vmul.f32 0.03125, %v186_v57  ;;  %v206_v61 = vmul.f32 0.03125, %v189_v58  ;;  %v235_v62 = vmul.f32 %v5337_v54, %v5337_v54  ;;  %v236_v63 = vmul.f32 %v5339_v55, %v5339_v55  ;;  %v99_v57 = vld [vmem:[%s7591_s7] sm:$0xff]  ;;  %v5424_v58 = vld [vmem:[%s7592_s0 + $0x18] sm:$0xff] }
  0xa5   :  { %v5348_v0 = vsub.f32 %v5252_v12, %v205_v60  ;;  %v5351_v1 = vsub.f32 %v5257_v13, %v206_v61  ;;  %v275_v2 = vsel %vm141_vm0, %v235_v62, 0.0  ;;  %v278_v4 = vsel %vm141_vm0, %v236_v63, 0.0 }
  0xa6   :  { %273 = vadd.xlane.f32.xlu1 %v272_v59  ;;  %276 = vadd.xlane.f32.xlu0 %v275_v2  ;;  %v144_v3 = vpop.xlane.xlu0 %143  ;;  %v147_v5 = vpop.xlane.xlu1 %146  ;;  %v5430_v59 = vld [vmem:[%s7593_s5 + $0x18] sm:$0xff] }
  0xa7   :  { %v191_v6 = vmul.f32 0.03125, %v144_v3  ;;  %v192_v7 = vmul.f32 0.03125, %v147_v5  ;;  %v237_v8 = vmul.f32 %v5348_v0, %v5348_v0  ;;  %v238_v9 = vmul.f32 %v5351_v1, %v5351_v1 }
  0xa9   :  { %v5360_v10 = vsub.f32 %v5266_v16, %v191_v6  ;;  %v5363_v11 = vsub.f32 %v5271_v17, %v192_v7  ;;  %v281_v12 = vsel %vm141_vm0, %v237_v8, 0.0  ;;  %v284_v14 = vsel %vm141_vm0, %v238_v9, 0.0 }
  0xaa   :  { %279 = vadd.xlane.f32.xlu1 %v278_v4  ;;  %282 = vadd.xlane.f32.xlu0 %v281_v12  ;;  %v150_v13 = vpop.xlane.xlu0 %149  ;;  %v153_v15 = vpop.xlane.xlu1 %152 }
  0xab   :  { %v193_v18 = vmul.f32 0.03125, %v150_v13  ;;  %v194_v19 = vmul.f32 0.03125, %v153_v15  ;;  %v223_v22 = vmul.f32 %v5360_v10, %v5360_v10  ;;  %v224_v16 = vmul.f32 %v5363_v11, %v5363_v11 }
  0xad   :  { %v5372_v23 = vsub.f32 %v5280_v20, %v193_v18  ;;  %v5375_v17 = vsub.f32 %v5285_v21, %v194_v19  ;;  %v239_v26 = vsel %vm141_vm0, %v223_v22, 0.0  ;;  %v242_v30 = vsel %vm141_vm0, %v224_v16, 0.0 }
  0xae   :  { %285 = vadd.xlane.f32.xlu1 %v284_v14  ;;  %240 = vadd.xlane.f32.xlu0 %v239_v26  ;;  %v156_v27 = vpop.xlane.xlu0 %155  ;;  %v159_v31 = vpop.xlane.xlu1 %158 }
  0xaf   :  { %v195_v32 = vmul.f32 0.03125, %v156_v27  ;;  %v196_v33 = vmul.f32 0.03125, %v159_v31  ;;  %v225_v34 = vmul.f32 %v5372_v23, %v5372_v23  ;;  %v226_v20 = vmul.f32 %v5375_v17, %v5375_v17 }
  0xb1   :  { %v5384_v35 = vsub.f32 %v5294_v24, %v195_v32  ;;  %v5387_v21 = vsub.f32 %v5299_v25, %v196_v33  ;;  %v245_v38 = vsel %vm141_vm0, %v225_v34, 0.0  ;;  %v248_v40 = vsel %vm141_vm0, %v226_v20, 0.0  ;;  %v5436_v34 = vld [vmem:[%s7518_s3] ss:$0 sm:$0xff] }
  0xb2   :  { %243 = vadd.xlane.f32.xlu1 %v242_v30  ;;  %246 = vadd.xlane.f32.xlu0 %v245_v38  ;;  %v162_v39 = vpop.xlane.xlu0 %161  ;;  %v165_v41 = vpop.xlane.xlu1 %164 }
  0xb3   :  { %v197_v42 = vmul.f32 0.03125, %v162_v39  ;;  %v198_v43 = vmul.f32 0.03125, %v165_v41  ;;  %v227_v46 = vmul.f32 %v5384_v35, %v5384_v35  ;;  %v228_v24 = vmul.f32 %v5387_v21, %v5387_v21 }
  0xb5   :  { %v5396_v47 = vsub.f32 %v5308_v28, %v197_v42  ;;  %v5399_v25 = vsub.f32 %v5313_v29, %v198_v43  ;;  %v251_v48 = vsel %vm141_vm0, %v227_v46, 0.0  ;;  %v254_v49 = vsel %vm141_vm0, %v228_v24, 0.0  ;;  %v102_v29 = vld [vmem:[%s7591_s7 + $0x18] sm:$0xff]  ;;  %v5442_v42 = vld [vmem:[%s7519_s4] ss:$0 sm:$0xff] }
  0xb6   :  { %249 = vadd.xlane.f32.xlu1 %v248_v40  ;;  %252 = vadd.xlane.f32.xlu0 %v251_v48 }
  0xb7   :  { %v229_v50 = vmul.f32 %v5396_v47, %v5396_v47  ;;  %v230_v51 = vmul.f32 %v5399_v25, %v5399_v25  ;;  %4763 = vmatprep.subr.mxu1 %v102_v29  ;;  %4291 = vmatprep.subr.mxu0 %v102_v29 }
  0xb8   :  { %4767 = vmatpush3.msra.mxu1 %v102_v29  ;;  %4292 = vmatpush3.msra.mxu0 %v102_v29 }
  0xb9   :  { %v257_v52 = vsel %vm141_vm0, %v229_v50, 0.0  ;;  %v260_v28 = vsel %vm141_vm0, %v230_v51, 0.0  ;;  %4764 = vmatprep.subr.mxu1 %v101_v53  ;;  %4293 = vmatprep.subr.mxu0 %v101_v53 }
  0xba   :  { %255 = vadd.xlane.f32.xlu1 %v254_v49  ;;  %258 = vadd.xlane.f32.xlu0 %v257_v52 }
  0xbb   :  { %4768 = vmatpush3.msra.mxu1 %v101_v53  ;;  %4294 = vmatpush3.msra.mxu0 %v101_v53 }
  0xbc   :  { %4765 = vmatprep.subr.mxu1 %v100_v56  ;;  %4295 = vmatprep.subr.mxu0 %v100_v56 }
  0xbd   :  { %4769 = vmatpush3.msra.mxu1 %v100_v56  ;;  %4296 = vmatpush3.msra.mxu0 %v100_v56 }
  0xbe   :  { %261 = vadd.xlane.f32.xlu1 %v260_v28  ;;  %4766 = vmatprep.subr.mxu1 %v99_v57 }
  0xbf   :  { %4770 = vmatpush3.msra.mxu1 %v99_v57  ;;  %4297 = vmatprep.subr.mxu0 %v99_v57 }
  0xc0   :  { %4298 = vmatpush3.msra.mxu0 %v99_v57  ;;  %4323 = vmatprep.subr.mxu1 %v5424_v58 }
  0xc1   :  { %4355 = vmatprep.subr.mxu0 %v5430_v59 }
 0x127   :  { %v265_v60 = vpop.xlane.xlu0 %264 }
 0x128   :  { %v295_v61 = vmul.f32 0.03125, %v265_v60 }
 0x12a   :  { %v311_v62 = vadd.f32 1e-05, %v295_v61 }
 0x12b   :  { %v268_v63 = vpop.xlane.xlu1 %267  ;;  %v271_v2 = vpop.xlane.xlu0 %270 }
 0x12c   :  { %4772 = vrsqrt.f32 %v311_v62  ;;  %v296_v3 = vmul.f32 0.03125, %v268_v63  ;;  %v297_v4 = vmul.f32 0.03125, %v271_v2 }
 0x12e   :  { %v312_v5 = vadd.f32 1e-05, %v296_v3  ;;  %v313_v6 = vadd.f32 1e-05, %v297_v4 }
 0x12f   :  { %v274_v7 = vpop.xlane.xlu1 %273  ;;  %v277_v8 = vpop.xlane.xlu0 %276 }
 0x130   :  { %4774 = vrsqrt.f32 %v312_v5  ;;  %v298_v9 = vmul.f32 0.03125, %v274_v7  ;;  %v299_v12 = vmul.f32 0.03125, %v277_v8  ;;  %v106_v7 = vld [vmem:[%s7592_s0 + $0x10] sm:$0xff] }
 0x131   :  { %4776 = vrsqrt.f32 %v313_v6 }
 0x132   :  { %v314_v13 = vadd.f32 1e-05, %v298_v9  ;;  %v315_v14 = vadd.f32 1e-05, %v299_v12 }
 0x133   :  { %v280_v15 = vpop.xlane.xlu1 %279  ;;  %v283_v18 = vpop.xlane.xlu0 %282 }
 0x134   :  { %4778 = vrsqrt.f32 %v314_v13  ;;  %v300_v19 = vmul.f32 0.03125, %v280_v15  ;;  %v301_v22 = vmul.f32 0.03125, %v283_v18 }
 0x135   :  { %4780 = vrsqrt.f32 %v315_v14 }
 0x136   :  { %v316_v16 = vadd.f32 1e-05, %v300_v19  ;;  %v317_v26 = vadd.f32 1e-05, %v301_v22 }
 0x137   :  { %v286_v27 = vpop.xlane.xlu1 %285  ;;  %v241_v30 = vpop.xlane.xlu0 %240 }
 0x138   :  { %4782 = vrsqrt.f32 %v316_v16  ;;  %v302_v31 = vmul.f32 0.03125, %v286_v27  ;;  %v287_v32 = vmul.f32 0.03125, %v241_v30  ;;  %v104_v30 = vld [vmem:[%s7592_s0] sm:$0xff] }
 0x139   :  { %v4773_v33 = vpop.eup %4772  ;;  %4784 = vrsqrt.f32 %v317_v26 }
 0x13a   :  { %v318_v20 = vadd.f32 1e-05, %v302_v31  ;;  %v303_v38 = vadd.f32 1e-05, %v287_v32  ;;  %v343_v39 = vmul.f32 %v4773_v33, %v5319_v36 }
 0x13b   :  { %v244_v40 = vpop.xlane.xlu1 %243  ;;  %v247_v41 = vpop.xlane.xlu0 %246 }
 0x13c   :  { %4786 = vrsqrt.f32 %v318_v20  ;;  %v288_v43 = vmul.f32 0.03125, %v244_v40  ;;  %v289_v46 = vmul.f32 0.03125, %v247_v41  ;;  %v365_v24 = vmul.f32 %v5436_v34, %v343_v39 }
 0x13d   :  { %v4775_v48 = vpop.eup %4774  ;;  %4788 = vrsqrt.f32 %v303_v38 }
 0x13e   :  { %v4777_v49 = vpop.eup %4776  ;;  %v304_v50 = vadd.f32 1e-05, %v288_v43  ;;  %v305_v51 = vadd.f32 1e-05, %v289_v46  ;;  %v5446_v52 = vadd.f32 %v5442_v42, %v365_v24  ;;  %v344_v36 = vmul.f32 %v4775_v48, %v5327_v44 }
 0x13f   :  { %v250_v28 = vpop.xlane.xlu1 %249  ;;  %v253_v29 = vpop.xlane.xlu0 %252  ;;  %v345_v53 = vmul.f32 %v4777_v49, %v5321_v37 }
 0x140   :  { %7594 = vst [vmem:[#allocation2_spill] sm:$0xff] %v5446_v52  ;;  %4790 = vrsqrt.f32 %v304_v50  ;;  %v290_v56 = vmul.f32 0.03125, %v250_v28  ;;  %v291_v57 = vmul.f32 0.03125, %v253_v29  ;;  %4311 = vmatprep.mubr.msk.f32.mxu1 %vm141_vm0, %v5446_v52  ;;  %v366_v60 = vmul.f32 %v5436_v34, %v344_v36 }
 0x141   :  { %v4779_v61 = vpop.eup %4778  ;;  %4792 = vrsqrt.f32 %v305_v51  ;;  %v367_v62 = vmul.f32 %v5436_v34, %v345_v53 }
 0x142   :  { %v4781_v63 = vpop.eup %4780  ;;  %v306_v2 = vadd.f32 1e-05, %v290_v56  ;;  %v307_v3 = vadd.f32 1e-05, %v291_v57  ;;  %v5455_v44 = vadd.f32 %v5442_v42, %v366_v60  ;;  %v346_v37 = vmul.f32 %v4779_v61, %v5329_v45  ;;  %v111_v60 = vld [vmem:[%s7593_s5 + $0x10] sm:$0xff] }
 0x143   :  { %v256_v4 = vpop.xlane.xlu1 %255  ;;  %v259_v5 = vpop.xlane.xlu0 %258  ;;  %v5459_v6 = vadd.f32 %v5442_v42, %v367_v62  ;;  %v347_v8 = vmul.f32 %v4781_v63, %v5337_v54  ;;  %v105_v54 = vld [vmem:[%s7592_s0 + $0x8] sm:$0xff] }
 0x144   :  { %7595 = vst [vmem:[#allocation3_spill] sm:$0xff] %v5455_v44  ;;  %4794 = vrsqrt.f32 %v306_v2  ;;  %v292_v9 = vmul.f32 0.03125, %v256_v4  ;;  %v293_v12 = vmul.f32 0.03125, %v259_v5  ;;  %4312 = vmatmul.mubr.msk.f32.vlgmr.msra.gmra.mxu1 %vm141_vm0, %v5455_v44  ;;  %v368_v13 = vmul.f32 %v5436_v34, %v346_v37 }
 0x145   :  { %7596 = vst [vmem:[#allocation4_spill] sm:$0xff] %v5459_v6  ;;  %v4783_v45 = vpop.eup %4782  ;;  %4796 = vrsqrt.f32 %v307_v3  ;;  %4324 = vmatpush3.msra.mxu1 %v5424_v58  ;;  %4314 = vmatprep.mubr.msk.f32.mxu1 %vm141_vm0, %v5459_v6  ;;  %v369_v14 = vmul.f32 %v5436_v34, %v347_v8 }
 0x146   :  { %v4785_v15 = vpop.eup %4784  ;;  %v308_v18 = vadd.f32 1e-05, %v292_v9  ;;  %v309_v19 = vadd.f32 1e-05, %v293_v12  ;;  %4325 = vmatprep.subr.mxu1 %v106_v7  ;;  %v5476_v22 = vadd.f32 %v5442_v42, %v368_v13  ;;  %v348_v16 = vmul.f32 %v4783_v45, %v5339_v55  ;;  %v109_v9 = vld [vmem:[%s7593_s5] sm:$0xff] }
 0x147   :  { %v262_v26 = vpop.xlane.xlu1 %261  ;;  %4326 = vmatpush3.msra.mxu1 %v106_v7  ;;  %v5480_v58 = vadd.f32 %v5442_v42, %v369_v14  ;;  %v349_v27 = vmul.f32 %v4785_v15, %v5348_v0  ;;  %v908_v12 = vlaneseq  ;;  %v3881_v14 = vld.sshfl [vmem:[%s7520_s2] sm:$0x33 pattern:$0x75316420] }
 0x148   :  { %7597 = vst [vmem:[#allocation5_spill] sm:$0xff] %v5476_v22  ;;  %4798 = vrsqrt.f32 %v308_v18  ;;  %v294_v31 = vmul.f32 0.03125, %v262_v26  ;;  %4315 = vmatmul.mubr.msk.f32.gmra.mxu1 %vm141_vm0, %v5476_v22  ;;  %4327 = vmatprep.subr.mxu1 %v105_v54  ;;  %v370_v32 = vmul.f32 %v5436_v34, %v348_v16  ;;  %v904_v15 = vcombine.high %v3881_v14, %v3881_v14 }
 0x149   :  { %7598 = vst [vmem:[#allocation6_spill] sm:$0xff] %v5480_v58  ;;  %v4787_v55 = vpop.eup %4786  ;;  %4800 = vrsqrt.f32 %v309_v19  ;;  %4317 = vmatprep.mubr.msk.f32.mxu1 %vm141_vm0, %v5480_v58  ;;  %4328 = vmatpush3.msra.mxu1 %v105_v54  ;;  %v371_v0 = vmul.f32 %v5436_v34, %v349_v27  ;;  %v909_v45 = vshrl.u32 %v908_v12, 7 }
 0x14a   :  { %v4789_v33 = vpop.eup %4788  ;;  %v310_v20 = vadd.f32 1e-05, %v294_v31  ;;  %v5493_v38 = vadd.f32 %v5442_v42, %v370_v32  ;;  %4329 = vmatprep.subr.mxu1 %v104_v30  ;;  %v350_v39 = vmul.f32 %v4787_v55, %v5351_v1  ;;  %v5651_v55 = vld [vmem:[%s7521_s6] ss:$0 sm:$0xff] }
 0x14b   :  { %v5497_v40 = vadd.f32 %v5442_v42, %v371_v0  ;;  %v335_v41 = vmul.f32 %v4789_v33, %v5360_v10  ;;  %4330 = vmatpush3.msra.mxu1 %v104_v30  ;;  %v923_v16 = vsub.s32 0, %v909_v45 }
 0x14c   :  { %7599 = vst [vmem:[#allocation7_spill] sm:$0xff] %v5493_v38  ;;  %4802 = vrsqrt.f32 %v310_v20  ;;  %4318 = vmatmul.mubr.msk.f32.gmra.mxu1 %vm141_vm0, %v5493_v38  ;;  %v372_v43 = vmul.f32 %v5436_v34, %v350_v39 }
 0x14d   :  { %7600 = vst [vmem:[#allocation8_spill] sm:$0xff] %v5497_v40  ;;  %v4791_v46 = vpop.eup %4790  ;;  %4320 = vmatprep.mubr.msk.f32.mxu1 %vm141_vm0, %v5497_v40  ;;  %v357_v24 = vmul.f32 %v5436_v34, %v335_v41 }
 0x14e   :  { %v4793_v48 = vpop.eup %4792  ;;  %v5507_v1 = vadd.f32 %v5442_v42, %v372_v43  ;;  %v336_v49 = vmul.f32 %v4791_v46, %v5363_v11 }
 0x14f   :  { %v5511_v10 = vadd.f32 %v5442_v42, %v357_v24  ;;  %v337_v50 = vmul.f32 %v4793_v48, %v5372_v23 }
 0x150   :  { %7601 = vst [vmem:[#allocation9_spill] sm:$0xff] %v5507_v1  ;;  %4321 = vmatmul.mubr.msk.f32.gmra.mxu1 %vm141_vm0, %v5507_v1  ;;  %v358_v51 = vmul.f32 %v5436_v34, %v336_v49 }
 0x151   :  { %7602 = vst [vmem:[#allocation10_spill] sm:$0xff] %v5511_v10  ;;  %v4795_v36 = vpop.eup %4794  ;;  %4299 = vmatprep.mubr.msk.f32.mxu0 %vm141_vm0, %v5511_v10  ;;  %4331 = vmatprep.mubr.msk.f32.mxu1 %vm141_vm0, %v5511_v10  ;;  %v359_v28 = vmul.f32 %v5436_v34, %v337_v50 }
 0x152   :  { %v4797_v11 = vpop.eup %4796  ;;  %v5523_v29 = vadd.f32 %v5442_v42, %v358_v51  ;;  %v338_v23 = vmul.f32 %v4795_v36, %v5375_v17 }
 0x153   :  { %v5527_v53 = vadd.f32 %v5442_v42, %v359_v28  ;;  %v339_v56 = vmul.f32 %v4797_v11, %v5384_v35 }
 0x154   :  { %7603 = vst [vmem:[#allocation11_spill] sm:$0xff] %v5523_v29  ;;  %4300 = vmatmul.mubr.msk.f32.vlgmr.msra.gmra.mxu0 %vm141_vm0, %v5523_v29  ;;  %4332 = vmatmul.mubr.msk.f32.vlgmr.msra.gmra.mxu1 %vm141_vm0, %v5523_v29  ;;  %v360_v57 = vmul.f32 %v5436_v34, %v338_v23 }
 0x155   :  { %7604 = vst [vmem:[#allocation12_spill] sm:$0xff] %v5527_v53  ;;  %v4799_v61 = vpop.eup %4798  ;;  %4302 = vmatprep.mubr.msk.f32.mxu0 %vm141_vm0, %v5527_v53  ;;  %4334 = vmatprep.mubr.msk.f32.mxu1 %vm141_vm0, %v5527_v53  ;;  %v361_v17 = vmul.f32 %v5436_v34, %v339_v56 }
 0x156   :  { %v4801_v35 = vpop.eup %4800  ;;  %v5544_v62 = vadd.f32 %v5442_v42, %v360_v57  ;;  %v340_v63 = vmul.f32 %v4799_v61, %v5387_v21  ;;  %4356 = vmatpush3.msra.mxu0 %v5430_v59  ;;  %v110_v21 = vld [vmem:[%s7593_s5 + $0x8] sm:$0xff] }
 0x157   :  { %v5549_v2 = vadd.f32 %v5442_v42, %v361_v17  ;;  %v341_v3 = vmul.f32 %v4801_v35, %v5396_v47  ;;  %4357 = vmatprep.subr.mxu0 %v111_v60 }
 0x158   :  { %7605 = vst [vmem:[#allocation13_spill] sm:$0xff] %v5544_v62  ;;  %4303 = vmatmul.mubr.msk.f32.gmra.mxu0 %vm141_vm0, %v5544_v62  ;;  %4335 = vmatmul.mubr.msk.f32.gmra.mxu1 %vm141_vm0, %v5544_v62  ;;  %v362_v37 = vmul.f32 %v5436_v34, %v340_v63 }
 0x159   :  { %7606 = vst [vmem:[#allocation14_spill] sm:$0xff] %v5549_v2  ;;  %v4803_v4 = vpop.eup %4802  ;;  %4305 = vmatprep.mubr.msk.f32.mxu0 %vm141_vm0, %v5549_v2  ;;  %4337 = vmatprep.mubr.msk.f32.mxu1 %vm141_vm0, %v5549_v2  ;;  %v363_v47 = vmul.f32 %v5436_v34, %v341_v3 }
 0x15a   :  { %v5566_v59 = vadd.f32 %v5442_v42, %v362_v37  ;;  %4358 = vmatpush3.msra.mxu0 %v111_v60  ;;  %v342_v5 = vmul.f32 %v4803_v4, %v5399_v25 }
 0x15b   :  { %v5570_v7 = vadd.f32 %v5442_v42, %v363_v47  ;;  %4359 = vmatprep.subr.mxu0 %v110_v21 }
 0x15c   :  { %7607 = vst [vmem:[#allocation15_spill] sm:$0xff] %v5566_v59  ;;  %4306 = vmatmul.mubr.msk.f32.gmra.mxu0 %vm141_vm0, %v5566_v59  ;;  %4338 = vmatmul.mubr.msk.f32.gmra.mxu1 %vm141_vm0, %v5566_v59  ;;  %v364_v8 = vmul.f32 %v5436_v34, %v342_v5  ;;  %v5124_v34 = vmov 1966171168  }
 0x15d   :  { %7608 = vst [vmem:[#allocation16_spill] sm:$0xff] %v5570_v7  ;;  %4308 = vmatprep.mubr.msk.f32.mxu0 %vm141_vm0, %v5570_v7  ;;  %4340 = vmatprep.mubr.msk.f32.mxu1 %vm141_vm0, %v5570_v7 }
 0x15e   :  { %v5585_v25 = vadd.f32 %v5442_v42, %v364_v8  ;;  %4360 = vmatpush3.msra.mxu0 %v110_v21  ;;  %v906_v42 = vunpack.c.l.s4 %v5124_v34 }
 0x15f   :  { %4361 = vmatprep.subr.mxu0 %v109_v9 }
 0x160   :  { %7609 = vst [vmem:[#allocation17_spill] sm:$0xff] %v5585_v25  ;;  %4309 = vmatmul.mubr.msk.f32.gmra.mxu0 %vm141_vm0, %v5585_v25  ;;  %4341 = vmatmul.mubr.msk.f32.gmra.mxu1 %vm141_vm0, %v5585_v25  ;;  %v907_v13 = vunpack.c.0.s8 %v906_v42 }
 0x161   :  { %4343 = vmatprep.mubr.msk.f32.mxu1 %vm141_vm0, %v5446_v52  ;;  %4363 = vmatprep.mubr.msk.f32.mxu0 %vm141_vm0, %v5511_v10 }
 0x162   :  { %4362 = vmatpush3.msra.mxu0 %v109_v9  ;;  %v910_v54 = vsub.s32 %v907_v13, %v909_v45 }
 0x164   :  { %4344 = vmatmul.mubr.msk.f32.gmra.mxu1 %vm141_vm0, %v5455_v44  ;;  %4364 = vmatmul.mubr.msk.f32.vlgmr.msra.gmra.mxu0 %vm141_vm0, %v5523_v29  ;;  %v911_v18 = vrot.slane %v3881_v14, %v910_v54  ;;  %v918_v19 = vrot.slane %v904_v15, %v910_v54 }
 0x165   :  { %4346 = vmatprep.mubr.msk.f32.mxu1 %vm141_vm0, %v5459_v6  ;;  %4366 = vmatprep.mubr.msk.f32.mxu0 %vm141_vm0, %v5527_v53 }
 0x166   :  { %v919_v26 = vcombine.high %v911_v18, %v911_v18  ;;  %v920_v27 = vcombine.high %v918_v19, %v918_v19  ;;  %v5642_v30 = vrot.slane %v918_v19, %v923_v16  ;;  %v5684_v35 = vrot.slane %v911_v18, %v923_v16 }
 0x168   :  { %4347 = vmatmul.mubr.msk.f32.gmra.mxu1 %vm141_vm0, %v5476_v22  ;;  %4367 = vmatmul.mubr.msk.f32.gmra.mxu0 %vm141_vm0, %v5544_v62  ;;  %7610 = vst [vmem:[#allocation18_spill] sm:$0xff] %v5642_v30  ;;  %v5644_v31 = vrot.slane %v919_v26, %v923_v16  ;;  %v5646_v32 = vrot.slane %v920_v27, %v923_v16  ;;  %7613 = vst [vmem:[#allocation21_spill] sm:$0xff] %v5684_v35 }
 0x169   :  { %4349 = vmatprep.mubr.msk.f32.mxu1 %vm141_vm0, %v5480_v58  ;;  %4369 = vmatprep.mubr.msk.f32.mxu0 %vm141_vm0, %v5549_v2 }
 0x16a   :  { %7611 = vst [vmem:[#allocation19_spill] sm:$0xff] %v5644_v31  ;;  %7612 = vst [vmem:[#allocation20_spill] sm:$0xff] %v5646_v32 }
 0x16c   :  { %4350 = vmatmul.mubr.msk.f32.gmra.mxu1 %vm141_vm0, %v5493_v38  ;;  %4370 = vmatmul.mubr.msk.f32.gmra.mxu0 %vm141_vm0, %v5566_v59 }
 0x16d   :  { %4352 = vmatprep.mubr.msk.f32.mxu1 %vm141_vm0, %v5497_v40  ;;  %4372 = vmatprep.mubr.msk.f32.mxu0 %vm141_vm0, %v5570_v7 }
 0x170   :  { %4353 = vmatmul.mubr.msk.f32.gmra.mxu1 %vm141_vm0, %v5507_v1  ;;  %4373 = vmatmul.mubr.msk.f32.gmra.mxu0 %vm141_vm0, %v5585_v25 }
 0x171   :  { %4375 = vmatprep.mubr.msk.f32.mxu0 %vm141_vm0, %v5446_v52 }
 0x174   :  { %4376 = vmatmul.mubr.msk.f32.gmra.mxu0 %vm141_vm0, %v5455_v44 }
 0x175   :  { %4378 = vmatprep.mubr.msk.f32.mxu0 %vm141_vm0, %v5459_v6 }
 0x178   :  { %4379 = vmatmul.mubr.msk.f32.gmra.mxu0 %vm141_vm0, %v5476_v22 }
 0x179   :  { %4381 = vmatprep.mubr.msk.f32.mxu0 %vm141_vm0, %v5480_v58 }
 0x17c   :  { %4382 = vmatmul.mubr.msk.f32.gmra.mxu0 %vm141_vm0, %v5493_v38 }
 0x17d   :  { %4384 = vmatprep.mubr.msk.f32.mxu0 %vm141_vm0, %v5497_v40 }
 0x180   :  { %4385 = vmatmul.mubr.msk.f32.gmra.mxu0 %vm141_vm0, %v5507_v1 }
 0x204   :  { %v4313_v0 = vpop.f32.mrf.mxu1 }
 0x205   :  { %v5654_v33 = vadd.f32 %v4313_v0, %v5651_v55 }
 0x206   :  { %v555_v20 = vpop.f32.mrf.mxu1 }
 0x207   :  { %v5657_v39 = vadd.f32 %v5651_v55, %v555_v20 }
 0x208   :  { %v4316_v41 = vpop.f32.mrf.mxu1 }
 0x209   :  { %v5660_v43 = vadd.f32 %v4316_v41, %v5651_v55 }
 0x20a   :  { %v565_v46 = vpop.f32.mrf.mxu1 }
 0x20b   :  { %v5663_v24 = vadd.f32 %v5651_v55, %v565_v46 }
 0x20c   :  { %v4319_v48 = vpop.f32.mrf.mxu1 }
 0x20d   :  { %v5666_v49 = vadd.f32 %v4319_v48, %v5651_v55 }
 0x20e   :  { %v575_v50 = vpop.f32.mrf.mxu1 }
 0x20f   :  { %v5669_v51 = vadd.f32 %v5651_v55, %v575_v50 }
 0x210   :  { %v4322_v36 = vpop.f32.mrf.mxu1 }
 0x211   :  { %v5672_v28 = vadd.f32 %v4322_v36, %v5651_v55 }
 0x212   :  { %v585_v11 = vpop.f32.mrf.mxu1 }
 0x213   :  { %v5675_v23 = vadd.f32 %v5651_v55, %v585_v11  ;;  %v5734_v11 = vld [vmem:[%s7522_s8] ss:$0 sm:$0xff] }
 0x214   :  { %v4301_v56 = vpop.f32.mrf.mxu0  ;;  %v5677_v57 = vpop.f32.mrf.mxu1 }
 0x215   :  { %v5680_v60 = vadd.f32 %v4301_v56, %v5651_v55 }
 0x216   :  { %v515_v61 = vpop.f32.mrf.mxu0  ;;  %v5682_v17 = vpop.f32.mrf.mxu1 }
 0x217   :  { %v5687_v63 = vadd.f32 %v5651_v55, %v515_v61 }
 0x218   :  { %v4304_v3 = vpop.f32.mrf.mxu0  ;;  %v5689_v37 = vpop.f32.mrf.mxu1 }
 0x219   :  { %v5692_v21 = vadd.f32 %v4304_v3, %v5651_v55  ;;  %v941_v4 = vmul.f32 %v5684_v35, %v5687_v63 }
 0x21a   :  { %v5696_v47 = vpop.f32.mrf.mxu0  ;;  %v5698_v5 = vpop.f32.mrf.mxu1 }
 0x21b   :  { %4419 = vmatprep.mubr.msk.f32.mxu1 %vm141_vm0, %v941_v4 }
 0x21c   :  { %v4307_v8 = vpop.f32.mrf.mxu0  ;;  %v5701_v9 = vpop.f32.mrf.mxu1 }
 0x21d   :  { %v5704_v34 = vadd.f32 %v4307_v8, %v5651_v55 }
 0x21e   :  { %v5706_v42 = vpop.f32.mrf.mxu0  ;;  %v5708_v12 = vpop.f32.mrf.mxu1 }
 0x220   :  { %v4310_v13 = vpop.f32.mrf.mxu0  ;;  %v5710_v45 = vpop.f32.mrf.mxu1 }
 0x221   :  { %v5713_v14 = vadd.f32 %v4310_v13, %v5651_v55 }
 0x222   :  { %v5715_v54 = vpop.f32.mrf.mxu0  ;;  %v5717_v15 = vpop.f32.mrf.mxu1 }
 0x224   :  { %v4345_v18 = vpop.f32.mrf.mxu1  ;;  %v5719_v19 = vpop.f32.mrf.mxu0 }
 0x226   :  { %v706_v16 = vpop.f32.mrf.mxu1  ;;  %v5721_v26 = vpop.f32.mrf.mxu0 }
 0x228   :  { %v4348_v27 = vpop.f32.mrf.mxu1  ;;  %v5723_v0 = vpop.f32.mrf.mxu0 }
 0x22a   :  { %v716_v20 = vpop.f32.mrf.mxu1  ;;  %v5725_v41 = vpop.f32.mrf.mxu0 }
 0x22c   :  { %v4351_v46 = vpop.f32.mrf.mxu1  ;;  %v5727_v48 = vpop.f32.mrf.mxu0 }
 0x22d   :  { %v732_v58 = vadd.f32 %v4351_v46, %v5734_v11  ;;  %v5751_v46 = vld [vmem:[%s7523_s10] ss:$0 sm:$0xff] }
 0x22e   :  { %v726_v50 = vpop.f32.mrf.mxu1  ;;  %v5729_v36 = vpop.f32.mrf.mxu0 }
 0x22f   :  { %v727_v6 = vadd.f32 %v5734_v11, %v726_v50 }
 0x230   :  { %v4354_v56 = vpop.f32.mrf.mxu1  ;;  %v4374_v61 = vpop.f32.mrf.mxu0 }
 0x231   :  { %v742_v3 = vadd.f32 %v4354_v56, %v5734_v11 }
 0x232   :  { %v736_v4 = vpop.f32.mrf.mxu1  ;;  %v847_v8 = vpop.f32.mrf.mxu0 }
 0x233   :  { %v737_v13 = vadd.f32 %v5734_v11, %v736_v4  ;;  %4387 = vmatprep.subr.msk.mxu1 %vm141_vm0, %v742_v3 }
 0x234   :  { %v4377_v40 = vpop.f32.mrf.mxu0  ;;  %4388 = vmatpush3.xpose.msk.msra.mxu1 %vm141_vm0, %v742_v3  ;;  %v722_v3 = vadd.f32 %v4348_v27, %v5734_v11 }
 0x235   :  { %4389 = vmatprep.subr.msk.mxu1 %vm141_vm0, %v737_v13 }
 0x236   :  { %v857_v1 = vpop.f32.mrf.mxu0 }
 0x238   :  { %v4380_v38 = vpop.f32.mrf.mxu0  ;;  %4390 = vmatpush3.xpose.msk.msra.mxu1 %vm141_vm0, %v737_v13 }
 0x239   :  { %4391 = vmatprep.subr.msk.mxu1 %vm141_vm0, %v732_v58 }
 0x23a   :  { %v867_v56 = vpop.f32.mrf.mxu0 }
 0x23c   :  { %v4383_v22 = vpop.f32.mrf.mxu0  ;;  %4392 = vmatpush3.xpose.msk.msra.mxu1 %vm141_vm0, %v732_v58  ;;  %v717_v58 = vadd.f32 %v5734_v11, %v716_v20  ;;  %v873_v20 = vadd.f32 %v4380_v38, %v5751_v46  ;;  %v702_v38 = vadd.f32 %v5710_v45, %v5734_v11  ;;  %v692_v45 = vadd.f32 %v5701_v9, %v5734_v11 }
 0x23d   :  { %4393 = vmatprep.subr.msk.mxu1 %vm141_vm0, %v727_v6  ;;  %v883_v27 = vadd.f32 %v4383_v22, %v5751_v46  ;;  %v707_v22 = vadd.f32 %v5734_v11, %v706_v16  ;;  %v853_v16 = vadd.f32 %v4374_v61, %v5751_v46  ;;  %v838_v61 = vadd.f32 %v5751_v46, %v5729_v36 }
 0x23e   :  { %v877_v4 = vpop.f32.mrf.mxu0  ;;  %v828_v9 = vadd.f32 %v5751_v46, %v5725_v41  ;;  %v823_v36 = vadd.f32 %v5719_v19, %v5751_v46  ;;  %v677_v19 = vadd.f32 %v5734_v11, %v5698_v5  ;;  %v5820_v5 = vadd.f32 %v5651_v55, %v5696_v47 }
 0x23f   :  { %v5827_v41 = vadd.f32 %v5651_v55, %v5706_v42  ;;  %v944_v47 = vmul.f32 %v5684_v35, %v5692_v21  ;;  %v946_v42 = vmul.f32 %v5684_v35, %v5704_v34 }
 0x240   :  { %v4386_v52 = vpop.f32.mrf.mxu0  ;;  %4394 = vmatpush3.xpose.msk.msra.mxu1 %vm141_vm0, %v727_v6  ;;  %v712_v6 = vadd.f32 %v4345_v18, %v5734_v11  ;;  %v858_v18 = vadd.f32 %v5751_v46, %v857_v1  ;;  %v843_v1 = vadd.f32 %v5727_v48, %v5751_v46  ;;  %v687_v48 = vadd.f32 %v5734_v11, %v5708_v12 }
 0x241   :  { %v893_v13 = vadd.f32 %v4386_v52, %v5751_v46  ;;  %4395 = vmatprep.subr.msk.mxu1 %vm141_vm0, %v722_v3  ;;  %v878_v52 = vadd.f32 %v5751_v46, %v877_v4  ;;  %v818_v12 = vadd.f32 %v5751_v46, %v5721_v26  ;;  %v667_v26 = vadd.f32 %v5734_v11, %v5682_v17 }
 0x242   :  { %v887_v50 = vpop.f32.mrf.mxu0  ;;  %v943_v17 = vmul.f32 %v5684_v35, %v5820_v5 }
 0x243   :  { %v888_v44 = vadd.f32 %v5751_v46, %v887_v50  ;;  %4515 = vmatprep.subr.mxu0 %v893_v13  ;;  %v952_v50 = vmul.f32 %v5684_v35, %v5660_v43 }
 0x244   :  { %4396 = vmatpush3.xpose.msk.msra.mxu1 %vm141_vm0, %v722_v3  ;;  %4516 = vmatpush3.msra.mxu0 %v893_v13  ;;  %v868_v3 = vadd.f32 %v5751_v46, %v867_v56  ;;  %v848_v56 = vadd.f32 %v5751_v46, %v847_v8  ;;  %v945_v8 = vmul.f32 %v5684_v35, %v5827_v41 }
 0x245   :  { %4397 = vmatprep.subr.msk.mxu1 %vm141_vm0, %v717_v58  ;;  %4517 = vmatprep.subr.mxu0 %v888_v44  ;;  %v951_v13 = vmul.f32 %v5684_v35, %v5663_v24 }
 0x246   :  { %4518 = vmatpush3.msra.mxu0 %v888_v44  ;;  %v863_v44 = vadd.f32 %v4377_v40, %v5751_v46  ;;  %v697_v40 = vadd.f32 %v5734_v11, %v5717_v15  ;;  %v833_v15 = vadd.f32 %v5723_v0, %v5751_v46  ;;  %v682_v0 = vadd.f32 %v5689_v37, %v5734_v11 }
 0x247   :  { %4519 = vmatprep.subr.mxu0 %v883_v27  ;;  %v672_v37 = vadd.f32 %v5677_v57, %v5734_v11  ;;  %v942_v57 = vmul.f32 %v5684_v35, %v5680_v60  ;;  %v5837_v11 = vadd.f32 %v5651_v55, %v5715_v54  ;;  %v948_v55 = vmul.f32 %v5684_v35, %v5713_v14 }
 0x248   :  { %4398 = vmatpush3.xpose.msk.msra.mxu1 %vm141_vm0, %v717_v58  ;;  %4520 = vmatpush3.msra.mxu0 %v883_v27  ;;  %v949_v54 = vmul.f32 %v5684_v35, %v5657_v39  ;;  %v950_v46 = vmul.f32 %v5684_v35, %v5654_v33  ;;  %v953_v58 = vmul.f32 %v5684_v35, %v5669_v51 }
 0x249   :  { %4399 = vmatprep.subr.msk.mxu1 %vm141_vm0, %v712_v6  ;;  %4521 = vmatprep.subr.mxu0 %v878_v52  ;;  %v947_v4 = vmul.f32 %v5684_v35, %v5837_v11  ;;  %v954_v27 = vmul.f32 %v5684_v35, %v5666_v49 }
 0x24a   :  { %4522 = vmatpush3.msra.mxu0 %v878_v52  ;;  %v956_v52 = vmul.f32 %v5684_v35, %v5672_v28 }
 0x24b   :  { %4523 = vmatprep.subr.mxu0 %v873_v20 }
 0x24c   :  { %4400 = vmatpush3.xpose.msk.msra.mxu1 %vm141_vm0, %v712_v6  ;;  %4524 = vmatpush3.msra.mxu0 %v873_v20  ;;  %v955_v6 = vmul.f32 %v5684_v35, %v5675_v23  ;;  %v957_v20 = vmul.f32 %v5642_v30, %v5687_v63 }
 0x24d   :  { %4401 = vmatprep.subr.msk.mxu1 %vm141_vm0, %v707_v22  ;;  %4525 = vmatprep.subr.mxu0 %v868_v3 }
 0x24e   :  { %4526 = vmatpush3.msra.mxu0 %v868_v3  ;;  %v959_v3 = vmul.f32 %v5642_v30, %v5820_v5 }
 0x24f   :  { %4527 = vmatprep.subr.mxu0 %v863_v44 }
 0x250   :  { %4402 = vmatpush3.xpose.msk.msra.mxu1 %vm141_vm0, %v707_v22  ;;  %4528 = vmatpush3.msra.mxu0 %v863_v44  ;;  %v958_v22 = vmul.f32 %v5642_v30, %v5680_v60  ;;  %v960_v44 = vmul.f32 %v5642_v30, %v5692_v21 }
 0x251   :  { %4403 = vmatprep.subr.msk.mxu1 %vm141_vm0, %v702_v38  ;;  %4529 = vmatprep.subr.mxu0 %v858_v18 }
 0x252   :  { %4530 = vmatpush3.msra.mxu0 %v858_v18  ;;  %v962_v18 = vmul.f32 %v5642_v30, %v5704_v34 }
 0x253   :  { %4531 = vmatprep.subr.mxu0 %v853_v16 }
 0x254   :  { %4404 = vmatpush3.xpose.msk.msra.mxu1 %vm141_vm0, %v702_v38  ;;  %4532 = vmatpush3.msra.mxu0 %v853_v16  ;;  %v961_v38 = vmul.f32 %v5642_v30, %v5827_v41  ;;  %v963_v16 = vmul.f32 %v5642_v30, %v5837_v11 }
 0x255   :  { %4405 = vmatprep.subr.msk.mxu1 %vm141_vm0, %v697_v40  ;;  %4533 = vmatprep.subr.mxu0 %v848_v56 }
 0x256   :  { %4534 = vmatpush3.msra.mxu0 %v848_v56  ;;  %v965_v56 = vmul.f32 %v5642_v30, %v5657_v39 }
 0x257   :  { %4535 = vmatprep.subr.mxu0 %v843_v1 }
 0x258   :  { %4406 = vmatpush3.xpose.msk.msra.mxu1 %vm141_vm0, %v697_v40  ;;  %4536 = vmatpush3.msra.mxu0 %v843_v1  ;;  %v964_v40 = vmul.f32 %v5642_v30, %v5713_v14  ;;  %v966_v1 = vmul.f32 %v5642_v30, %v5654_v33 }
 0x259   :  { %4407 = vmatprep.subr.msk.mxu1 %vm141_vm0, %v692_v45  ;;  %4537 = vmatprep.subr.mxu0 %v838_v61 }
 0x25a   :  { %4538 = vmatpush3.msra.mxu0 %v838_v61  ;;  %v968_v61 = vmul.f32 %v5642_v30, %v5660_v43 }
 0x25b   :  { %4539 = vmatprep.subr.mxu0 %v833_v15 }
 0x25c   :  { %4408 = vmatpush3.xpose.msk.msra.mxu1 %vm141_vm0, %v692_v45  ;;  %4540 = vmatpush3.msra.mxu0 %v833_v15  ;;  %v967_v45 = vmul.f32 %v5642_v30, %v5663_v24  ;;  %v969_v15 = vmul.f32 %v5642_v30, %v5669_v51 }
 0x25d   :  { %4409 = vmatprep.subr.msk.mxu1 %vm141_vm0, %v687_v48  ;;  %4541 = vmatprep.subr.mxu0 %v828_v9 }
 0x25e   :  { %4542 = vmatpush3.msra.mxu0 %v828_v9  ;;  %v971_v9 = vmul.f32 %v5642_v30, %v5675_v23 }
 0x25f   :  { %4543 = vmatprep.subr.mxu0 %v823_v36 }
 0x260   :  { %4410 = vmatpush3.xpose.msk.msra.mxu1 %vm141_vm0, %v687_v48  ;;  %4544 = vmatpush3.msra.mxu0 %v823_v36  ;;  %v970_v48 = vmul.f32 %v5642_v30, %v5666_v49  ;;  %v972_v36 = vmul.f32 %v5642_v30, %v5672_v28 }
 0x261   :  { %4411 = vmatprep.subr.msk.mxu1 %vm141_vm0, %v682_v0  ;;  %4545 = vmatprep.subr.mxu0 %v818_v12 }
 0x262   :  { %4546 = vmatpush3.msra.mxu0 %v818_v12  ;;  %v974_v12 = vmul.f32 %v5644_v31, %v5680_v60 }
 0x264   :  { %4412 = vmatpush3.xpose.msk.msra.mxu1 %vm141_vm0, %v682_v0  ;;  %v973_v0 = vmul.f32 %v5644_v31, %v5687_v63 }
 0x265   :  { %4413 = vmatprep.subr.msk.mxu1 %vm141_vm0, %v677_v19 }
 0x268   :  { %4414 = vmatpush3.xpose.msk.msra.mxu1 %vm141_vm0, %v677_v19  ;;  %v975_v19 = vmul.f32 %v5644_v31, %v5820_v5 }
 0x269   :  { %4415 = vmatprep.subr.msk.mxu1 %vm141_vm0, %v672_v37 }
 0x26c   :  { %4416 = vmatpush3.xpose.msk.msra.mxu1 %vm141_vm0, %v672_v37  ;;  %v976_v37 = vmul.f32 %v5644_v31, %v5692_v21 }
 0x26d   :  { %4417 = vmatprep.subr.msk.mxu1 %vm141_vm0, %v667_v26 }
 0x270   :  { %4418 = vmatpush3.xpose.msk.msra.mxu1 %vm141_vm0, %v667_v26  ;;  %v977_v26 = vmul.f32 %v5644_v31, %v5827_v41 }
 0x273   :  { %4420 = vmatmul.mubr.msk.f32.vlgmr.msra.gmra.mxu1 %vm141_vm0, %v942_v57  ;;  %v978_v57 = vmul.f32 %v5644_v31, %v5704_v34 }
 0x274   :  { %4422 = vmatprep.mubr.msk.f32.mxu1 %vm141_vm0, %v943_v17  ;;  %v979_v17 = vmul.f32 %v5644_v31, %v5837_v11 }
 0x277   :  { %4423 = vmatmul.mubr.msk.f32.gmra.mxu1 %vm141_vm0, %v944_v47  ;;  %v980_v47 = vmul.f32 %v5644_v31, %v5713_v14 }
 0x278   :  { %4425 = vmatprep.mubr.msk.f32.mxu1 %vm141_vm0, %v945_v8  ;;  %v981_v8 = vmul.f32 %v5644_v31, %v5657_v39 }
 0x27b   :  { %4426 = vmatmul.mubr.msk.f32.gmra.mxu1 %vm141_vm0, %v946_v42  ;;  %v982_v42 = vmul.f32 %v5644_v31, %v5654_v33 }
 0x27c   :  { %4428 = vmatprep.mubr.msk.f32.mxu1 %vm141_vm0, %v947_v4  ;;  %v983_v4 = vmul.f32 %v5644_v31, %v5663_v24 }
 0x27f   :  { %4429 = vmatmul.mubr.msk.f32.gmra.mxu1 %vm141_vm0, %v948_v55  ;;  %v984_v55 = vmul.f32 %v5644_v31, %v5660_v43 }
 0x280   :  { %4431 = vmatprep.mubr.msk.f32.mxu1 %vm141_vm0, %v949_v54  ;;  %v985_v54 = vmul.f32 %v5644_v31, %v5669_v51 }
 0x283   :  { %4432 = vmatmul.mubr.msk.f32.gmra.mxu1 %vm141_vm0, %v950_v46  ;;  %v986_v46 = vmul.f32 %v5644_v31, %v5666_v49 }
 0x284   :  { %4434 = vmatprep.mubr.msk.f32.mxu1 %vm141_vm0, %v951_v13  ;;  %v987_v13 = vmul.f32 %v5644_v31, %v5675_v23 }
 0x287   :  { %4435 = vmatmul.mubr.msk.f32.gmra.mxu1 %vm141_vm0, %v952_v50  ;;  %v988_v50 = vmul.f32 %v5644_v31, %v5672_v28 }
 0x288   :  { %4437 = vmatprep.mubr.msk.f32.mxu1 %vm141_vm0, %v953_v58  ;;  %v989_v58 = vmul.f32 %v5646_v32, %v5687_v63  ;;  %v993_v63 = vmul.f32 %v5646_v32, %v5827_v41  ;;  %v997_v41 = vmul.f32 %v5646_v32, %v5657_v39  ;;  %v1001_v39 = vmul.f32 %v5646_v32, %v5669_v51  ;;  %v6023_v51 = vld [vmem:[%s7524_s1 + $0x8] sm:$0xff] }
 0x28b   :  { %4438 = vmatmul.mubr.msk.f32.gmra.mxu1 %vm141_vm0, %v954_v27  ;;  %v990_v27 = vmul.f32 %v5646_v32, %v5680_v60  ;;  %v994_v60 = vmul.f32 %v5646_v32, %v5704_v34  ;;  %v998_v34 = vmul.f32 %v5646_v32, %v5654_v33  ;;  %v1002_v33 = vmul.f32 %v5646_v32, %v5666_v49  ;;  %v6028_v49 = vld [vmem:[%s7524_s1] sm:$0xff] }
 0x28c   :  { %4440 = vmatprep.mubr.msk.f32.mxu1 %vm141_vm0, %v955_v6  ;;  %v991_v6 = vmul.f32 %v5646_v32, %v5820_v5  ;;  %v995_v5 = vmul.f32 %v5646_v32, %v5837_v11  ;;  %v999_v11 = vmul.f32 %v5646_v32, %v5663_v24  ;;  %v1003_v24 = vmul.f32 %v5646_v32, %v5675_v23 }
 0x28f   :  { %4441 = vmatmul.mubr.msk.f32.gmra.mxu1 %vm141_vm0, %v956_v52  ;;  %v992_v52 = vmul.f32 %v5646_v32, %v5692_v21  ;;  %v996_v21 = vmul.f32 %v5646_v32, %v5713_v14  ;;  %v1000_v14 = vmul.f32 %v5646_v32, %v5660_v43  ;;  %v1004_v43 = vmul.f32 %v5646_v32, %v5672_v28  ;;  %v6036_v28 = vld [vmem:[%s7524_s1 + $0x18] sm:$0xff] }
 0x290   :  { %4443 = vmatprep.mubr.msk.f32.mxu1 %vm141_vm0, %v957_v20 }
 0x293   :  { %4444 = vmatmul.mubr.msk.f32.gmra.mxu1 %vm141_vm0, %v958_v22 }
 0x294   :  { %4446 = vmatprep.mubr.msk.f32.mxu1 %vm141_vm0, %v959_v3 }
 0x297   :  { %4447 = vmatmul.mubr.msk.f32.gmra.mxu1 %vm141_vm0, %v960_v44 }
 0x298   :  { %4449 = vmatprep.mubr.msk.f32.mxu1 %vm141_vm0, %v961_v38  ;;  %v6045_v38 = vld [vmem:[%s7524_s1 + $0x10] sm:$0xff] }
 0x29b   :  { %4450 = vmatmul.mubr.msk.f32.gmra.mxu1 %vm141_vm0, %v962_v18 }
 0x29c   :  { %4452 = vmatprep.mubr.msk.f32.mxu1 %vm141_vm0, %v963_v16 }
 0x29f   :  { %4453 = vmatmul.mubr.msk.f32.gmra.mxu1 %vm141_vm0, %v964_v40  ;;  %v6054_v40 = vld [vmem:[%s7524_s1 + $0x28] sm:$0xff] }
 0x2a0   :  { %4455 = vmatprep.mubr.msk.f32.mxu1 %vm141_vm0, %v965_v56 }
 0x2a3   :  { %4456 = vmatmul.mubr.msk.f32.gmra.mxu1 %vm141_vm0, %v966_v1 }
 0x2a4   :  { %4458 = vmatprep.mubr.msk.f32.mxu1 %vm141_vm0, %v967_v45  ;;  %v6063_v45 = vld [vmem:[%s7524_s1 + $0x20] sm:$0xff] }
 0x2a7   :  { %4459 = vmatmul.mubr.msk.f32.gmra.mxu1 %vm141_vm0, %v968_v61 }
 0x2a8   :  { %4461 = vmatprep.mubr.msk.f32.mxu1 %vm141_vm0, %v969_v15 }
 0x2ab   :  { %4462 = vmatmul.mubr.msk.f32.gmra.mxu1 %vm141_vm0, %v970_v48  ;;  %v6072_v48 = vld [vmem:[%s7524_s1 + $0x38] sm:$0xff] }
 0x2ac   :  { %4464 = vmatprep.mubr.msk.f32.mxu1 %vm141_vm0, %v971_v9 }
 0x2af   :  { %4465 = vmatmul.mubr.msk.f32.gmra.mxu1 %vm141_vm0, %v972_v36 }
 0x2b0   :  { %4467 = vmatprep.mubr.msk.f32.mxu1 %vm141_vm0, %v973_v0  ;;  %v6081_v0 = vld [vmem:[%s7524_s1 + $0x30] sm:$0xff] }
 0x2b3   :  { %4468 = vmatmul.mubr.msk.f32.gmra.mxu1 %vm141_vm0, %v974_v12 }
 0x2b4   :  { %4470 = vmatprep.mubr.msk.f32.mxu1 %vm141_vm0, %v975_v19 }
 0x2b7   :  { %4471 = vmatmul.mubr.msk.f32.gmra.mxu1 %vm141_vm0, %v976_v37  ;;  %v6090_v37 = vld [vmem:[%s7524_s1 + $0x48] sm:$0xff] }
 0x2b8   :  { %4473 = vmatprep.mubr.msk.f32.mxu1 %vm141_vm0, %v977_v26 }
 0x2bb   :  { %4474 = vmatmul.mubr.msk.f32.gmra.mxu1 %vm141_vm0, %v978_v57 }
 0x2bc   :  { %4476 = vmatprep.mubr.msk.f32.mxu1 %vm141_vm0, %v979_v17  ;;  %v6099_v17 = vld [vmem:[%s7524_s1 + $0x40] sm:$0xff] }
 0x2bf   :  { %4477 = vmatmul.mubr.msk.f32.gmra.mxu1 %vm141_vm0, %v980_v47 }
 0x2c0   :  { %4479 = vmatprep.mubr.msk.f32.mxu1 %vm141_vm0, %v981_v8 }
 0x2c3   :  { %4480 = vmatmul.mubr.msk.f32.gmra.mxu1 %vm141_vm0, %v982_v42  ;;  %v6108_v42 = vld [vmem:[%s7524_s1 + $0x58] sm:$0xff] }
 0x2c4   :  { %4482 = vmatprep.mubr.msk.f32.mxu1 %vm141_vm0, %v983_v4 }
 0x2c7   :  { %4483 = vmatmul.mubr.msk.f32.gmra.mxu1 %vm141_vm0, %v984_v55 }
 0x2c8   :  { %4485 = vmatprep.mubr.msk.f32.mxu1 %vm141_vm0, %v985_v54  ;;  %v6117_v54 = vld [vmem:[%s7524_s1 + $0x50] sm:$0xff] }
 0x2cb   :  { %4486 = vmatmul.mubr.msk.f32.gmra.mxu1 %vm141_vm0, %v986_v46 }
 0x2cc   :  { %4488 = vmatprep.mubr.msk.f32.mxu1 %vm141_vm0, %v987_v13 }
 0x2cf   :  { %4489 = vmatmul.mubr.msk.f32.gmra.mxu1 %vm141_vm0, %v988_v50  ;;  %v6126_v50 = vld [vmem:[%s7524_s1 + $0x68] sm:$0xff] }
 0x2d0   :  { %4491 = vmatprep.mubr.msk.f32.mxu1 %vm141_vm0, %v989_v58 }
 0x2d3   :  { %4492 = vmatmul.mubr.msk.f32.gmra.mxu1 %vm141_vm0, %v990_v27 }
 0x2d4   :  { %4494 = vmatprep.mubr.msk.f32.mxu1 %vm141_vm0, %v991_v6  ;;  %v6135_v6 = vld [vmem:[%s7524_s1 + $0x60] sm:$0xff] }
 0x2d7   :  { %4495 = vmatmul.mubr.msk.f32.gmra.mxu1 %vm141_vm0, %v992_v52 }
 0x2d8   :  { %4497 = vmatprep.mubr.msk.f32.mxu1 %vm141_vm0, %v993_v63 }
 0x2db   :  { %4498 = vmatmul.mubr.msk.f32.gmra.mxu1 %vm141_vm0, %v994_v60  ;;  %v6144_v60 = vld [vmem:[%s7524_s1 + $0x78] sm:$0xff] }
 0x2dc   :  { %4500 = vmatprep.mubr.msk.f32.mxu1 %vm141_vm0, %v995_v5 }
 0x2df   :  { %4501 = vmatmul.mubr.msk.f32.gmra.mxu1 %vm141_vm0, %v996_v21 }
 0x2e0   :  { %4503 = vmatprep.mubr.msk.f32.mxu1 %vm141_vm0, %v997_v41  ;;  %v6153_v41 = vld [vmem:[%s7524_s1 + $0x70] sm:$0xff] }
 0x2e3   :  { %4504 = vmatmul.mubr.msk.f32.gmra.mxu1 %vm141_vm0, %v998_v34 }
 0x2e4   :  { %4506 = vmatprep.mubr.msk.f32.mxu1 %vm141_vm0, %v999_v11 }
 0x2e7   :  { %4507 = vmatmul.mubr.msk.f32.gmra.mxu1 %vm141_vm0, %v1000_v14 }
 0x2e8   :  { %4509 = vmatprep.mubr.msk.f32.mxu1 %vm141_vm0, %v1001_v39 }
 0x2eb   :  { %4510 = vmatmul.mubr.msk.f32.gmra.mxu1 %vm141_vm0, %v1002_v33 }
 0x2ec   :  { %4512 = vmatprep.mubr.msk.f32.mxu1 %vm141_vm0, %v1003_v24 }
 0x2ef   :  { %4513 = vmatmul.mubr.msk.f32.gmra.mxu1 %vm141_vm0, %v1004_v43 }
 0x333   :  { %v4421_v20 = vpop.f32.mrf.mxu1 }
 0x334   :  { %v6031_v23 = vadd.f32 %v4421_v20, %v6023_v51 }
 0x335   :  { %v1311_v22 = vpop.f32.mrf.mxu1 }
 0x336   :  { %v6039_v3 = vadd.f32 %v1311_v22, %v6028_v49  ;;  %1696 = vmax.xlane.f32.xlu1 %v6031_v23 }
 0x337   :  { %v4424_v44 = vpop.f32.mrf.mxu1 }
 0x338   :  { %v6048_v18 = vadd.f32 %v4424_v44, %v6036_v28  ;;  %1694 = vmax.xlane.f32.xlu0 %v6039_v3 }
 0x339   :  { %v1321_v16 = vpop.f32.mrf.mxu1 }
 0x33a   :  { %v6057_v56 = vadd.f32 %v1321_v16, %v6045_v38  ;;  %1700 = vmax.xlane.f32.xlu1 %v6048_v18 }
 0x33b   :  { %v4427_v1 = vpop.f32.mrf.mxu1 }
 0x33c   :  { %v6066_v61 = vadd.f32 %v4427_v1, %v6054_v40  ;;  %1698 = vmax.xlane.f32.xlu0 %v6057_v56 }
 0x33d   :  { %v1331_v15 = vpop.f32.mrf.mxu1 }
 0x33e   :  { %v6075_v9 = vadd.f32 %v1331_v15, %v6063_v45  ;;  %1704 = vmax.xlane.f32.xlu1 %v6066_v61 }
 0x33f   :  { %v4430_v36 = vpop.f32.mrf.mxu1 }
 0x340   :  { %v6084_v12 = vadd.f32 %v4430_v36, %v6072_v48  ;;  %1702 = vmax.xlane.f32.xlu0 %v6075_v9 }
 0x341   :  { %v1341_v19 = vpop.f32.mrf.mxu1 }
 0x342   :  { %v6093_v26 = vadd.f32 %v1341_v19, %v6081_v0  ;;  %1708 = vmax.xlane.f32.xlu1 %v6084_v12 }
 0x343   :  { %v4433_v57 = vpop.f32.mrf.mxu1 }
 0x344   :  { %v6102_v47 = vadd.f32 %v4433_v57, %v6090_v37  ;;  %1706 = vmax.xlane.f32.xlu0 %v6093_v26 }
 0x345   :  { %v1351_v8 = vpop.f32.mrf.mxu1 }
 0x346   :  { %v6111_v4 = vadd.f32 %v1351_v8, %v6099_v17  ;;  %1712 = vmax.xlane.f32.xlu1 %v6102_v47 }
 0x347   :  { %v4436_v55 = vpop.f32.mrf.mxu1 }
 0x348   :  { %v6120_v46 = vadd.f32 %v4436_v55, %v6108_v42  ;;  %1710 = vmax.xlane.f32.xlu0 %v6111_v4 }
 0x349   :  { %v1361_v13 = vpop.f32.mrf.mxu1 }
 0x34a   :  { %v6129_v58 = vadd.f32 %v1361_v13, %v6117_v54  ;;  %1716 = vmax.xlane.f32.xlu1 %v6120_v46 }
 0x34b   :  { %v4439_v27 = vpop.f32.mrf.mxu1 }
 0x34c   :  { %v6138_v52 = vadd.f32 %v4439_v27, %v6126_v50  ;;  %1714 = vmax.xlane.f32.xlu0 %v6129_v58 }
 0x34d   :  { %v1371_v63 = vpop.f32.mrf.mxu1 }
 0x34e   :  { %v6147_v5 = vadd.f32 %v1371_v63, %v6135_v6  ;;  %1720 = vmax.xlane.f32.xlu1 %v6138_v52 }
 0x34f   :  { %v4442_v21 = vpop.f32.mrf.mxu1 }
 0x350   :  { %v6156_v34 = vadd.f32 %v4442_v21, %v6144_v60  ;;  %1718 = vmax.xlane.f32.xlu0 %v6147_v5 }
 0x351   :  { %v1381_v11 = vpop.f32.mrf.mxu1 }
 0x352   :  { %v6160_v14 = vadd.f32 %v1381_v11, %v6153_v41  ;;  %1724 = vmax.xlane.f32.xlu1 %v6156_v34 }
 0x353   :  { %v4445_v39 = vpop.f32.mrf.mxu1 }
 0x354   :  { %v6164_v33 = vadd.f32 %v4445_v39, %v6023_v51  ;;  %1722 = vmax.xlane.f32.xlu0 %v6160_v14 }
 0x355   :  { %v1391_v24 = vpop.f32.mrf.mxu1 }
 0x356   :  { %v6168_v43 = vadd.f32 %v1391_v24, %v6028_v49  ;;  %1728 = vmax.xlane.f32.xlu1 %v6164_v33 }
 0x357   :  { %v4448_v20 = vpop.f32.mrf.mxu1 }
 0x358   :  { %v6172_v22 = vadd.f32 %v4448_v20, %v6036_v28  ;;  %1726 = vmax.xlane.f32.xlu0 %v6168_v43 }
 0x359   :  { %v1401_v44 = vpop.f32.mrf.mxu1 }
 0x35a   :  { %v6176_v16 = vadd.f32 %v1401_v44, %v6045_v38  ;;  %1732 = vmax.xlane.f32.xlu1 %v6172_v22 }
 0x35b   :  { %v4451_v1 = vpop.f32.mrf.mxu1 }
 0x35c   :  { %v6180_v15 = vadd.f32 %v4451_v1, %v6054_v40  ;;  %1730 = vmax.xlane.f32.xlu0 %v6176_v16 }
 0x35d   :  { %v1411_v36 = vpop.f32.mrf.mxu1 }
 0x35e   :  { %v6184_v19 = vadd.f32 %v1411_v36, %v6063_v45  ;;  %1736 = vmax.xlane.f32.xlu1 %v6180_v15 }
 0x35f   :  { %v4454_v57 = vpop.f32.mrf.mxu1 }
 0x360   :  { %v6188_v8 = vadd.f32 %v4454_v57, %v6072_v48  ;;  %1734 = vmax.xlane.f32.xlu0 %v6184_v19 }
 0x361   :  { %v1421_v55 = vpop.f32.mrf.mxu1 }
 0x362   :  { %v6192_v13 = vadd.f32 %v1421_v55, %v6081_v0  ;;  %1740 = vmax.xlane.f32.xlu1 %v6188_v8 }
 0x363   :  { %v4457_v27 = vpop.f32.mrf.mxu1 }
 0x364   :  { %v6196_v63 = vadd.f32 %v4457_v27, %v6090_v37  ;;  %1738 = vmax.xlane.f32.xlu0 %v6192_v13 }
 0x365   :  { %v1431_v21 = vpop.f32.mrf.mxu1 }
 0x366   :  { %v6200_v11 = vadd.f32 %v1431_v21, %v6099_v17  ;;  %1744 = vmax.xlane.f32.xlu1 %v6196_v63 }
 0x367   :  { %v4460_v39 = vpop.f32.mrf.mxu1 }
 0x368   :  { %v6204_v24 = vadd.f32 %v4460_v39, %v6108_v42  ;;  %1742 = vmax.xlane.f32.xlu0 %v6200_v11 }
 0x369   :  { %v1441_v20 = vpop.f32.mrf.mxu1 }
 0x36a   :  { %v6208_v44 = vadd.f32 %v1441_v20, %v6117_v54  ;;  %1748 = vmax.xlane.f32.xlu1 %v6204_v24 }
 0x36b   :  { %v4463_v1 = vpop.f32.mrf.mxu1 }
 0x36c   :  { %v6212_v36 = vadd.f32 %v4463_v1, %v6126_v50  ;;  %1746 = vmax.xlane.f32.xlu0 %v6208_v44 }
 0x36d   :  { %v1451_v57 = vpop.f32.mrf.mxu1 }
 0x36e   :  { %v6216_v55 = vadd.f32 %v1451_v57, %v6135_v6  ;;  %1752 = vmax.xlane.f32.xlu1 %v6212_v36 }
 0x36f   :  { %v4466_v27 = vpop.f32.mrf.mxu1 }
 0x370   :  { %v6220_v21 = vadd.f32 %v4466_v27, %v6144_v60  ;;  %1750 = vmax.xlane.f32.xlu0 %v6216_v55 }
 0x371   :  { %v1461_v39 = vpop.f32.mrf.mxu1 }
 0x372   :  { %v6224_v20 = vadd.f32 %v1461_v39, %v6153_v41  ;;  %1756 = vmax.xlane.f32.xlu1 %v6220_v21 }
 0x373   :  { %v4469_v1 = vpop.f32.mrf.mxu1 }
 0x374   :  { %v6228_v7 = vadd.f32 %v4469_v1, %v6023_v51  ;;  %1754 = vmax.xlane.f32.xlu0 %v6224_v20 }
 0x375   :  { %v1471_v57 = vpop.f32.mrf.mxu1 }
 0x376   :  { %v6232_v25 = vadd.f32 %v1471_v57, %v6028_v49  ;;  %1760 = vmax.xlane.f32.xlu1 %v6228_v7 }
 0x377   :  { %v4472_v27 = vpop.f32.mrf.mxu1 }
 0x378   :  { %v6236_v2 = vadd.f32 %v4472_v27, %v6036_v28  ;;  %1758 = vmax.xlane.f32.xlu0 %v6232_v25 }
 0x379   :  { %v1481_v39 = vpop.f32.mrf.mxu1 }
 0x37a   :  { %7614 = vst [vmem:[#allocation22_spill] sm:$0xff] %v6236_v2  ;;  %v6240_v59 = vadd.f32 %v1481_v39, %v6045_v38  ;;  %1764 = vmax.xlane.f32.xlu1 %v6236_v2 }
 0x37b   :  { %v4475_v1 = vpop.f32.mrf.mxu1 }
 0x37c   :  { %v6244_v53 = vadd.f32 %v4475_v1, %v6054_v40  ;;  %1762 = vmax.xlane.f32.xlu0 %v6240_v59 }
 0x37d   :  { %v1491_v57 = vpop.f32.mrf.mxu1 }
 0x37e   :  { %7615 = vst [vmem:[#allocation23_spill] sm:$0xff] %v6244_v53  ;;  %v6248_v62 = vadd.f32 %v1491_v57, %v6063_v45  ;;  %1768 = vmax.xlane.f32.xlu1 %v6244_v53 }
 0x37f   :  { %v4478_v27 = vpop.f32.mrf.mxu1 }
 0x380   :  { %v6252_v10 = vadd.f32 %v4478_v27, %v6072_v48  ;;  %1766 = vmax.xlane.f32.xlu0 %v6248_v62 }
 0x381   :  { %v1501_v39 = vpop.f32.mrf.mxu1 }
 0x382   :  { %7616 = vst [vmem:[#allocation24_spill] sm:$0xff] %v6252_v10  ;;  %v6256_v29 = vadd.f32 %v1501_v39, %v6081_v0  ;;  %1772 = vmax.xlane.f32.xlu1 %v6252_v10 }
 0x383   :  { %v4481_v1 = vpop.f32.mrf.mxu1 }
 0x384   :  { %v6260_v32 = vadd.f32 %v4481_v1, %v6090_v37  ;;  %1770 = vmax.xlane.f32.xlu0 %v6256_v29 }
 0x385   :  { %v1511_v57 = vpop.f32.mrf.mxu1 }
 0x386   :  { %7617 = vst [vmem:[#allocation25_spill] sm:$0xff] %v6260_v32  ;;  %v6264_v31 = vadd.f32 %v1511_v57, %v6099_v17  ;;  %1776 = vmax.xlane.f32.xlu1 %v6260_v32 }
 0x387   :  { %v4484_v27 = vpop.f32.mrf.mxu1 }
 0x388   :  { %v6268_v30 = vadd.f32 %v4484_v27, %v6108_v42  ;;  %1774 = vmax.xlane.f32.xlu0 %v6264_v31 }
 0x389   :  { %v1521_v39 = vpop.f32.mrf.mxu1 }
 0x38a   :  { %7618 = vst [vmem:[#allocation26_spill] sm:$0xff] %v6268_v30  ;;  %v6272_v35 = vadd.f32 %v1521_v39, %v6117_v54  ;;  %1780 = vmax.xlane.f32.xlu1 %v6268_v30 }
 0x38b   :  { %v4487_v1 = vpop.f32.mrf.mxu1 }
 0x38c   :  { %1778 = vmax.xlane.f32.xlu0 %v6272_v35  ;;  %v6277_v57 = vadd.f32 %v4487_v1, %v6126_v50 }
 0x38d   :  { %v1531_v10 = vpop.f32.mrf.mxu1 }
 0x38e   :  { %7619 = vst [vmem:[#allocation27_spill] sm:$0xff] %v6277_v57  ;;  %v6281_v27 = vadd.f32 %v1531_v10, %v6135_v6 }
 0x38f   :  { %v4490_v32 = vpop.f32.mrf.mxu1 }
 0x390   :  { %1784 = vmax.xlane.f32.xlu0 %v6277_v57  ;;  %v6285_v39 = vadd.f32 %v4490_v32, %v6144_v60 }
 0x391   :  { %v1541_v53 = vpop.f32.mrf.mxu1 }
 0x392   :  { %7620 = vst [vmem:[#allocation28_spill] sm:$0xff] %v6285_v39  ;;  %v6289_v30 = vadd.f32 %v1541_v53, %v6153_v41 }
 0x393   :  { %v4493_v1 = vpop.f32.mrf.mxu1 }
 0x394   :  { %1782 = vmax.xlane.f32.xlu0 %v6281_v27  ;;  %7621 = vst [vmem:[#allocation29_spill] sm:$0xff] %v6289_v30  ;;  %v6293_v57 = vadd.f32 %v4493_v1, %v6023_v51 }
 0x395   :  { %v1551_v10 = vpop.f32.mrf.mxu1 }
 0x396   :  { %v6297_v2 = vadd.f32 %v1551_v10, %v6028_v49 }
 0x397   :  { %v4496_v32 = vpop.f32.mrf.mxu1 }
 0x398   :  { %1788 = vmax.xlane.f32.xlu0 %v6285_v39  ;;  %v6301_v39 = vadd.f32 %v4496_v32, %v6036_v28 }
 0x399   :  { %v1561_v53 = vpop.f32.mrf.mxu1 }
 0x39a   :  { %7622 = vst [vmem:[#allocation30_spill] sm:$0xff] %v6301_v39 }
 0x39b   :  { %v4499_v51 = vpop.f32.mrf.mxu1 }
 0x39c   :  { %1786 = vmax.xlane.f32.xlu0 %v6289_v30  ;;  %v6305_v30 = vadd.f32 %v1561_v53, %v6045_v38  ;;  %v6309_v1 = vadd.f32 %v4499_v51, %v6054_v40 }
 0x39d   :  { %v1571_v49 = vpop.f32.mrf.mxu1 }
 0x39e   :  { %7623 = vst [vmem:[#allocation31_spill] sm:$0xff] %v6309_v1  ;;  %v6313_v10 = vadd.f32 %v1571_v49, %v6063_v45 }
 0x39f   :  { %v4502_v28 = vpop.f32.mrf.mxu1 }
 0x3a0   :  { %1792 = vmax.xlane.f32.xlu0 %v6293_v57  ;;  %v6317_v32 = vadd.f32 %v4502_v28, %v6072_v48 }
 0x3a1   :  { %v1581_v38 = vpop.f32.mrf.mxu1 }
 0x3a2   :  { %7624 = vst [vmem:[#allocation32_spill] sm:$0xff] %v6317_v32  ;;  %v6321_v53 = vadd.f32 %v1581_v38, %v6081_v0 }
 0x3a3   :  { %v4505_v40 = vpop.f32.mrf.mxu1 }
 0x3a4   :  { %1790 = vmax.xlane.f32.xlu0 %v6297_v2  ;;  %7625 = vst [vmem:[#allocation33_spill] sm:$0xff] %v6321_v53  ;;  %v6325_v51 = vadd.f32 %v4505_v40, %v6090_v37 }
 0x3a5   :  { %v1591_v45 = vpop.f32.mrf.mxu1 }
 0x3a6   :  { %7626 = vst [vmem:[#allocation34_spill] sm:$0xff] %v6325_v51  ;;  %v6330_v28 = vadd.f32 %v1591_v45, %v6099_v17 }
 0x3a7   :  { %v4508_v38 = vpop.f32.mrf.mxu1 }
 0x3a8   :  { %1796 = vmax.xlane.f32.xlu0 %v6301_v39 }
 0x3ac   :  { %1794 = vmax.xlane.f32.xlu0 %v6305_v30 }
 0x3b0   :  { %1800 = vmax.xlane.f32.xlu0 %v6309_v1 }
 0x3b4   :  { %1798 = vmax.xlane.f32.xlu0 %v6313_v10 }
 0x3b8   :  { %1804 = vmax.xlane.f32.xlu0 %v6317_v32 }
 0x3bc   :  { %1802 = vmax.xlane.f32.xlu0 %v6321_v53 }
 0x3bf   :  { %v1697_v49 = vpop.xlane.xlu1 %1696 }
 0x3c0   :  { %v1823_v1 = vsub.f32 %v6031_v23, %v1697_v49  ;;  %1808 = vmax.xlane.f32.xlu0 %v6325_v51  ;;  %v6336_v23 = vadd.f32 %v4508_v38, %v6108_v42  ;;  %v1601_v49 = vpop.f32.mrf.mxu1 }
 0x3c1   :  { %v1695_v48 = vpop.xlane.xlu0 %1694 }
 0x3c2   :  { %v1888_v32 = vmul.f32 1.442695, %v1823_v1  ;;  %v1822_v0 = vsub.f32 %v6039_v3, %v1695_v48  ;;  %v4511_v45 = vpop.f32.mrf.mxu1 }
 0x3c3   :  { %v1701_v39 = vpop.xlane.xlu1 %1700 }
 0x3c4   :  { %4804 = vpow2.f32 %v1888_v32  ;;  %v1886_v53 = vmul.f32 1.442695, %v1822_v0  ;;  %v1825_v37 = vsub.f32 %v6048_v18, %v1701_v39  ;;  %1806 = vmax.xlane.f32.xlu0 %v6330_v28  ;;  %v6341_v32 = vadd.f32 %v1601_v49, %v6117_v54  ;;  %v1611_v0 = vpop.f32.mrf.mxu1 }
 0x3c5   :  { %v1699_v40 = vpop.xlane.xlu0 %1698  ;;  %v6353_v49 = vadd.f32 %v1611_v0, %v6135_v6 }
 0x3c6   :  { %4806 = vpow2.f32 %v1886_v53  ;;  %v1892_v17 = vmul.f32 1.442695, %v1825_v37  ;;  %v1824_v1 = vsub.f32 %v6057_v56, %v1699_v40  ;;  %v6346_v53 = vadd.f32 %v4511_v45, %v6126_v50 }
 0x3c7   :  { %v1705_v51 = vpop.xlane.xlu1 %1704 }
 0x3c8   :  { %1812 = vmax.xlane.f32.xlu0 %v6336_v23  ;;  %4808 = vpow2.f32 %v1892_v17  ;;  %v1890_v39 = vmul.f32 1.442695, %v1824_v1  ;;  %v1827_v48 = vsub.f32 %v6066_v61, %v1705_v51  ;;  %v4514_v61 = vpop.f32.mrf.mxu1 }
 0x3c9   :  { %v1703_v3 = vpop.xlane.xlu0 %1702 }
 0x3ca   :  { %4810 = vpow2.f32 %v1890_v39  ;;  %v1896_v38 = vmul.f32 1.442695, %v1827_v48  ;;  %v1826_v37 = vsub.f32 %v6075_v9, %v1703_v3  ;;  %v6361_v3 = vadd.f32 %v4514_v61, %v6144_v60  ;;  %v1621_v6 = vpop.f32.mrf.mxu1 }
 0x3cb   :  { %v1709_v18 = vpop.xlane.xlu1 %1708 }
 0x3cc   :  { %1810 = vmax.xlane.f32.xlu0 %v6341_v32  ;;  %4812 = vpow2.f32 %v1896_v38  ;;  %v1894_v50 = vmul.f32 1.442695, %v1826_v37  ;;  %v1829_v51 = vsub.f32 %v6084_v12, %v1709_v18  ;;  %v6369_v18 = vadd.f32 %v1621_v6, %v6153_v41 }
 0x3cd   :  { %v1707_v42 = vpop.xlane.xlu0 %1706 }
 0x3ce   :  { %4814 = vpow2.f32 %v1894_v50  ;;  %v1900_v45 = vmul.f32 1.442695, %v1829_v51  ;;  %v1828_v39 = vsub.f32 %v6093_v26, %v1707_v42 }
 0x3cf   :  { %v1713_v56 = vpop.xlane.xlu1 %1712 }
 0x3d0   :  { %1816 = vmax.xlane.f32.xlu0 %v6346_v53  ;;  %4816 = vpow2.f32 %v1900_v45  ;;  %v1898_v60 = vmul.f32 1.442695, %v1828_v39  ;;  %v1831_v38 = vsub.f32 %v6102_v47, %v1713_v56 }
 0x3d1   :  { %v6350_v54 = vpop.eup %4804  ;;  %v1711_v40 = vpop.xlane.xlu0 %1710 }
 0x3d2   :  { %2016 = vadd.xlane.f32.xlu1 %v6350_v54  ;;  %4818 = vpow2.f32 %v1898_v60  ;;  %v1904_v42 = vmul.f32 1.442695, %v1831_v38  ;;  %v1830_v41 = vsub.f32 %v6111_v4, %v1711_v40 }
 0x3d3   :  { %v6358_v17 = vpop.eup %4806  ;;  %v1717_v9 = vpop.xlane.xlu1 %1716 }
 0x3d4   :  { %1814 = vmax.xlane.f32.xlu0 %v6353_v49  ;;  %4820 = vpow2.f32 %v1904_v42  ;;  %v1902_v47 = vmul.f32 1.442695, %v1830_v41  ;;  %v1833_v56 = vsub.f32 %v6120_v46, %v1717_v9 }
 0x3d5   :  { %v1715_v1 = vpop.xlane.xlu0 %1714  ;;  %v6366_v48 = vpop.eup %4808 }
 0x3d6   :  { %2014 = vadd.xlane.f32.xlu1 %v6358_v17  ;;  %4822 = vpow2.f32 %v1902_v47  ;;  %v1908_v4 = vmul.f32 1.442695, %v1833_v56  ;;  %v1832_v40 = vsub.f32 %v6129_v58, %v1715_v1 }
 0x3d7   :  { %v1721_v0 = vpop.xlane.xlu1 %1720  ;;  %v6374_v37 = vpop.eup %4810 }
 0x3d8   :  { %1820 = vmax.xlane.f32.xlu0 %v6361_v3  ;;  %4824 = vpow2.f32 %v1908_v4  ;;  %v1906_v46 = vmul.f32 1.442695, %v1832_v40  ;;  %v1835_v9 = vsub.f32 %v6138_v52, %v1721_v0 }
 0x3d9   :  { %v1719_v12 = vpop.xlane.xlu0 %1718  ;;  %v6380_v61 = vpop.eup %4812 }
 0x3da   :  { %2020 = vadd.xlane.f32.xlu1 %v6366_v48  ;;  %7627 = vst [vmem:[#allocation35_spill] sm:$0xff] %v6380_v61  ;;  %v1912_v1 = vmul.f32 1.442695, %v1835_v9 }
 0x3db   :  { %v1725_v50 = vpop.xlane.xlu1 %1724  ;;  %v6386_v6 = vpop.eup %4814 }
 0x3dc   :  { %1818 = vmax.xlane.f32.xlu0 %v6369_v18  ;;  %7628 = vst [vmem:[#allocation36_spill] sm:$0xff] %v6386_v6 }
 0x3dd   :  { %v6376_v26 = vpop.xlane.xlu0 %1722  ;;  %v6392_v60 = vpop.eup %4816 }
 0x3de   :  { %2018 = vadd.xlane.f32.xlu1 %v6374_v37 }
 0x3df   :  { %v1729_v39 = vpop.xlane.xlu1 %1728  ;;  %v6397_v41 = vpop.eup %4818 }
 0x3e1   :  { %v6382_v51 = vpop.xlane.xlu0 %1726  ;;  %v6404_v4 = vpop.eup %4820 }
 0x3e2   :  { %2024 = vadd.xlane.f32.xlu1 %v6380_v61 }
 0x3e5   :  { %v6388_v45 = vpop.xlane.xlu0 %1730 }
 0x3e6   :  { %2022 = vadd.xlane.f32.xlu1 %v6386_v6  ;;  %v6399_v6 = vpop.xlane.xlu1 %1732 }
 0x3e9   :  { %v1735_v38 = vpop.xlane.xlu0 %1734 }
 0x3ea   :  { %v1842_v61 = vsub.f32 %v6184_v19, %v1735_v38  ;;  %2028 = vadd.xlane.f32.xlu1 %v6392_v60  ;;  %v1834_v19 = vsub.f32 %v6147_v5, %v1719_v12  ;;  %v6408_v0 = vpop.xlane.xlu1 %1736 }
 0x3ec   :  { %v1926_v42 = vmul.f32 1.442695, %v1842_v61  ;;  %v1910_v61 = vmul.f32 1.442695, %v1834_v19  ;;  %v1839_v19 = vsub.f32 %v6164_v33, %v1729_v39  ;;  %v1838_v33 = vsub.f32 %v6168_v43, %v6382_v51 }
 0x3ed   :  { %v1739_v47 = vpop.xlane.xlu0 %1738 }
 0x3ee   :  { %4826 = vpow2.f32 %v1926_v42  ;;  %v1844_v58 = vsub.f32 %v6192_v13, %v1739_v47  ;;  %2026 = vadd.xlane.f32.xlu1 %v6397_v41  ;;  %v1837_v13 = vsub.f32 %v6156_v34, %v1725_v50 }
 0x3ef   :  { %4828 = vpow2.f32 %v1906_v46  ;;  %v6411_v46 = vpop.eup %4822 }
 0x3f0   :  { %v1930_v56 = vmul.f32 1.442695, %v1844_v58  ;;  %v1916_v12 = vmul.f32 1.442695, %v1837_v13  ;;  %v6417_v47 = vpop.eup %4824  ;;  %v6419_v58 = vpop.xlane.xlu1 %1740 }
 0x3f1   :  { %v1743_v40 = vpop.xlane.xlu0 %1742 }
 0x3f2   :  { %4830 = vpow2.f32 %v1930_v56  ;;  %v1846_v52 = vsub.f32 %v6200_v11, %v1743_v40  ;;  %2032 = vadd.xlane.f32.xlu1 %v6404_v4  ;;  %v1836_v11 = vsub.f32 %v6160_v14, %v6376_v26 }
 0x3f3   :  { %4832 = vpow2.f32 %v1912_v1 }
 0x3f4   :  { %v1934_v38 = vmul.f32 1.442695, %v1846_v52  ;;  %v6433_v52 = vpop.xlane.xlu1 %1744 }
 0x3f5   :  { %v1747_v9 = vpop.xlane.xlu0 %1746 }
 0x3f6   :  { %4834 = vpow2.f32 %v1934_v38  ;;  %v1848_v5 = vsub.f32 %v6208_v44, %v1747_v9  ;;  %2030 = vadd.xlane.f32.xlu1 %v6411_v46  ;;  %v1914_v44 = vmul.f32 1.442695, %v1836_v11 }
 0x3f7   :  { %4836 = vpow2.f32 %v1910_v61  ;;  %v1920_v61 = vmul.f32 1.442695, %v1839_v19 }
 0x3f8   :  { %v1938_v42 = vmul.f32 1.442695, %v1848_v5  ;;  %v1918_v5 = vmul.f32 1.442695, %v1838_v33  ;;  %v6449_v51 = vpop.xlane.xlu1 %1748 }
 0x3f9   :  { %v1751_v34 = vpop.xlane.xlu0 %1750 }
 0x3fa   :  { %4838 = vpow2.f32 %v1938_v42  ;;  %v1850_v50 = vsub.f32 %v6216_v55, %v1751_v34  ;;  %2036 = vadd.xlane.f32.xlu1 %v6417_v47 }
 0x3fb   :  { %v6423_v1 = vpop.eup %4826  ;;  %4840 = vpow2.f32 %v1916_v12  ;;  %v1840_v12 = vsub.f32 %v6176_v16, %v6388_v45 }
 0x3fc   :  { %v1942_v56 = vmul.f32 1.442695, %v1850_v50  ;;  %2054 = vadd.xlane.f32.xlu0 %v6423_v1  ;;  %v6427_v14 = vpop.eup %4828  ;;  %v1841_v50 = vsub.f32 %v6172_v22, %v6399_v6  ;;  %v1843_v22 = vsub.f32 %v6180_v15, %v6408_v0 }
 0x3fd   :  { %v1755_v26 = vpop.xlane.xlu0 %1754  ;;  %v1922_v16 = vmul.f32 1.442695, %v1840_v12 }
 0x3fe   :  { %4842 = vpow2.f32 %v1942_v56  ;;  %v1852_v40 = vsub.f32 %v6224_v20, %v1755_v26  ;;  %2034 = vadd.xlane.f32.xlu1 %v6427_v14  ;;  %v1753_v26 = vpop.xlane.xlu1 %1752 }
 0x3ff   :  { %v6431_v55 = vpop.eup %4830  ;;  %4844 = vpow2.f32 %v1914_v44 }
 0x400   :  { %v1946_v39 = vmul.f32 1.442695, %v1852_v40  ;;  %2058 = vadd.xlane.f32.xlu0 %v6431_v55  ;;  %v6438_v13 = vpop.eup %4832  ;;  %v1924_v40 = vmul.f32 1.442695, %v1841_v50 }
 0x401   :  { %v1759_v38 = vpop.xlane.xlu0 %1758 }
 0x402   :  { %4846 = vpow2.f32 %v1946_v39  ;;  %v1854_v20 = vsub.f32 %v6232_v25, %v1759_v38  ;;  %2040 = vadd.xlane.f32.xlu1 %v6438_v13  ;;  %v1928_v38 = vmul.f32 1.442695, %v1843_v22  ;;  %v1757_v0 = vpop.xlane.xlu1 %1756 }
 0x403   :  { %v6442_v9 = vpop.eup %4834  ;;  %4848 = vpow2.f32 %v1920_v61 }
 0x404   :  { %v1950_v11 = vmul.f32 1.442695, %v1854_v20  ;;  %2062 = vadd.xlane.f32.xlu0 %v6442_v9  ;;  %v6447_v43 = vpop.eup %4836  ;;  %v1845_v20 = vsub.f32 %v6188_v8, %v6419_v58 }
 0x405   :  { %v1763_v42 = vpop.xlane.xlu0 %1762 }
 0x406   :  { %4850 = vpow2.f32 %v1950_v11  ;;  %v1856_v25 = vsub.f32 %v6240_v59, %v1763_v42  ;;  %2038 = vadd.xlane.f32.xlu1 %v6447_v43  ;;  %v1932_v42 = vmul.f32 1.442695, %v1845_v20 }
 0x407   :  { %v6453_v34 = vpop.eup %4838  ;;  %4852 = vpow2.f32 %v1918_v5 }
 0x408   :  { %v1954_v45 = vmul.f32 1.442695, %v1856_v25  ;;  %2066 = vadd.xlane.f32.xlu0 %v6453_v34  ;;  %v6458_v44 = vpop.eup %4840  ;;  %v1847_v25 = vsub.f32 %v6196_v63, %v6433_v52 }
 0x409   :  { %v1767_v19 = vpop.xlane.xlu0 %1766 }
 0x40a   :  { %4854 = vpow2.f32 %v1954_v45  ;;  %v1858_v56 = vsub.f32 %v6248_v62, %v1767_v19  ;;  %2044 = vadd.xlane.f32.xlu1 %v6458_v44  ;;  %v1761_v45 = vpop.xlane.xlu1 %1760  ;;  %v1936_v19 = vmul.f32 1.442695, %v1847_v25 }
 0x40b   :  { %v6462_v59 = vpop.eup %4842  ;;  %4856 = vpow2.f32 %v1922_v16  ;;  %v1855_v25 = vsub.f32 %v6228_v7, %v1761_v45 }
 0x40c   :  { %v1958_v6 = vmul.f32 1.442695, %v1858_v56  ;;  %2070 = vadd.xlane.f32.xlu0 %v6462_v59  ;;  %v6467_v61 = vpop.eup %4844  ;;  %v1849_v56 = vsub.f32 %v6204_v24, %v6449_v51 }
 0x40d   :  { %v1771_v33 = vpop.xlane.xlu0 %1770 }
 0x40e   :  { %4858 = vpow2.f32 %v1958_v6  ;;  %v1860_v39 = vsub.f32 %v6256_v29, %v1771_v33  ;;  %2042 = vadd.xlane.f32.xlu1 %v6467_v61  ;;  %v1940_v22 = vmul.f32 1.442695, %v1849_v56  ;;  %v1851_v6 = vsub.f32 %v6212_v36, %v1753_v26  ;;  %v1765_v24 = vpop.xlane.xlu1 %1764  ;;  %v7631_v56 = vld [vmem:[#allocation22_spill] sm:$0xff] }
 0x40f   :  { %v6471_v62 = vpop.eup %4846  ;;  %4860 = vpow2.f32 %v1924_v40 }
 0x410   :  { %v1962_v5 = vmul.f32 1.442695, %v1860_v39  ;;  %2074 = vadd.xlane.f32.xlu0 %v6471_v62  ;;  %v6476_v15 = vpop.eup %4848  ;;  %v1944_v20 = vmul.f32 1.442695, %v1851_v6 }
 0x411   :  { %v1775_v12 = vpop.xlane.xlu0 %1774 }
 0x412   :  { %4862 = vpow2.f32 %v1962_v5  ;;  %v1862_v11 = vsub.f32 %v6264_v31, %v1775_v12  ;;  %2048 = vadd.xlane.f32.xlu1 %v6476_v15  ;;  %v1853_v5 = vsub.f32 %v6220_v21, %v1757_v0 }
 0x413   :  { %v6480_v29 = vpop.eup %4850  ;;  %4864 = vpow2.f32 %v1928_v38 }
 0x414   :  { %v1966_v8 = vmul.f32 1.442695, %v1862_v11  ;;  %2078 = vadd.xlane.f32.xlu0 %v6480_v29  ;;  %v6485_v58 = vpop.eup %4852 }
 0x415   :  { %v1779_v50 = vpop.xlane.xlu0 %1778 }
 0x416   :  { %4866 = vpow2.f32 %v1966_v8  ;;  %v1864_v16 = vsub.f32 %v6272_v35, %v1779_v50  ;;  %2046 = vadd.xlane.f32.xlu1 %v6485_v58  ;;  %v7629_v8 = vld [vmem:[#allocation29_spill] sm:$0xff] }
 0x417   :  { %v6489_v31 = vpop.eup %4854  ;;  %4868 = vpow2.f32 %v1932_v42  ;;  %v1948_v42 = vmul.f32 1.442695, %v1853_v5 }
 0x418   :  { %v1970_v63 = vmul.f32 1.442695, %v1864_v16  ;;  %2082 = vadd.xlane.f32.xlu0 %v6489_v31  ;;  %v6494_v52 = vpop.eup %4856 }
 0x419   :  { %v6496_v40 = vpop.xlane.xlu0 %1784 }
 0x41a   :  { %4870 = vpow2.f32 %v1970_v63  ;;  %2050 = vadd.xlane.f32.xlu1 %v6494_v52  ;;  %v1857_v63 = vsub.f32 %v7631_v56, %v1765_v24 }
 0x41b   :  { %v6499_v35 = vpop.eup %4858  ;;  %4872 = vpow2.f32 %v1936_v19  ;;  %v1952_v19 = vmul.f32 1.442695, %v1855_v25 }
 0x41c   :  { %2086 = vadd.xlane.f32.xlu0 %v6499_v35  ;;  %v6503_v33 = vpop.eup %4860  ;;  %4874 = vpow2.f32 %v1940_v22 }
 0x41d   :  { %v1783_v51 = vpop.xlane.xlu0 %1782 }
 0x41e   :  { %v1866_v39 = vsub.f32 %v6281_v27, %v1783_v51  ;;  %2052 = vadd.xlane.f32.xlu1 %v6503_v33  ;;  %v1769_v27 = vpop.xlane.xlu1 %1768  ;;  %v1956_v51 = vmul.f32 1.442695, %v1857_v63  ;;  %v7635_v63 = vld [vmem:[#allocation25_spill] sm:$0xff] }
 0x41f   :  { %v6507_v38 = vpop.eup %4862 }
 0x420   :  { %v1974_v12 = vmul.f32 1.442695, %v1866_v39  ;;  %2090 = vadd.xlane.f32.xlu0 %v6507_v38  ;;  %v6511_v36 = vpop.eup %4864  ;;  %v7632_v39 = vld [vmem:[#allocation23_spill] sm:$0xff] }
 0x421   :  { %v6513_v26 = vpop.xlane.xlu0 %1788 }
 0x422   :  { %4876 = vpow2.f32 %v1974_v12  ;;  %2056 = vadd.xlane.f32.xlu1 %v6511_v36  ;;  %v1773_v7 = vpop.xlane.xlu1 %1772 }
 0x423   :  { %v6516_v11 = vpop.eup %4866  ;;  %4878 = vpow2.f32 %v1944_v20  ;;  %v1859_v20 = vsub.f32 %v7632_v39, %v1769_v27 }
 0x424   :  { %2094 = vadd.xlane.f32.xlu0 %v6516_v11  ;;  %v6520_v21 = vpop.eup %4868  ;;  %4880 = vpow2.f32 %v1948_v42 }
 0x425   :  { %v1787_v0 = vpop.xlane.xlu0 %1786 }
 0x426   :  { %v1868_v50 = vsub.f32 %v7629_v8, %v1787_v0  ;;  %2060 = vadd.xlane.f32.xlu1 %v6520_v21  ;;  %v1777_v25 = vpop.xlane.xlu1 %1776  ;;  %v1960_v0 = vmul.f32 1.442695, %v1859_v20  ;;  %v7634_v8 = vld [vmem:[#allocation24_spill] sm:$0xff] }
 0x427   :  { %v6524_v16 = vpop.eup %4870 }
 0x428   :  { %7630 = vst [vmem:[#allocation29_spill] sm:$0xff] %v6524_v16  ;;  %v1978_v22 = vmul.f32 1.442695, %v1868_v50  ;;  %2098 = vadd.xlane.f32.xlu0 %v6524_v16  ;;  %v6528_v6 = vpop.eup %4872  ;;  %v1861_v50 = vsub.f32 %v7634_v8, %v1773_v7  ;;  %v7637_v8 = vld [vmem:[#allocation26_spill] sm:$0xff] }
 0x429   :  { %v6530_v45 = vpop.xlane.xlu0 %1792  ;;  %v6534_v5 = vpop.eup %4874 }
 0x42a   :  { %4882 = vpow2.f32 %v1978_v22  ;;  %2064 = vadd.xlane.f32.xlu1 %v6528_v6  ;;  %v1863_v22 = vsub.f32 %v7635_v63, %v1777_v25 }
 0x42b   :  { %4884 = vpow2.f32 %v1952_v19 }
 0x42c   :  { %4886 = vpow2.f32 %v1956_v51 }
 0x42d   :  { %v1791_v12 = vpop.xlane.xlu0 %1790 }
 0x42e   :  { %v1870_v24 = vsub.f32 %v6297_v2, %v1791_v12  ;;  %2068 = vadd.xlane.f32.xlu1 %v6534_v5  ;;  %v1964_v2 = vmul.f32 1.442695, %v1861_v50  ;;  %v1781_v12 = vpop.xlane.xlu1 %1780 }
 0x42f   :  { %v6538_v42 = vpop.eup %4876 }
 0x430   :  { %7633 = vst [vmem:[#allocation22_spill] sm:$0xff] %v6538_v42  ;;  %v1982_v56 = vmul.f32 1.442695, %v1870_v24  ;;  %2102 = vadd.xlane.f32.xlu0 %v6538_v42  ;;  %v6542_v19 = vpop.eup %4878  ;;  %v1968_v24 = vmul.f32 1.442695, %v1863_v22 }
 0x431   :  { %v1797_v27 = vpop.xlane.xlu0 %1796  ;;  %v6546_v39 = vpop.eup %4880 }
 0x432   :  { %4888 = vpow2.f32 %v1982_v56  ;;  %2072 = vadd.xlane.f32.xlu1 %v6542_v19  ;;  %v1865_v56 = vsub.f32 %v7637_v8, %v1781_v12 }
 0x433   :  { %4890 = vpow2.f32 %v1960_v0 }
 0x434   :  { %4892 = vpow2.f32 %v1964_v2  ;;  %v1972_v50 = vmul.f32 1.442695, %v1865_v56  ;;  %v1871_v56 = vsub.f32 %v6293_v57, %v6530_v45  ;;  %v7644_v45 = vld [vmem:[#allocation31_spill] sm:$0xff] }
 0x435   :  { %v1795_v51 = vpop.xlane.xlu0 %1794 }
 0x436   :  { %v1872_v20 = vsub.f32 %v6305_v30, %v1795_v51  ;;  %2076 = vadd.xlane.f32.xlu1 %v6546_v39  ;;  %v7638_v30 = vld [vmem:[#allocation27_spill] sm:$0xff] }
 0x437   :  { %v6550_v7 = vpop.eup %4882  ;;  %v1867_v63 = vsub.f32 %v7638_v30, %v6496_v40 }
 0x438   :  { %7636 = vst [vmem:[#allocation23_spill] sm:$0xff] %v6550_v7  ;;  %v1986_v42 = vmul.f32 1.442695, %v1872_v20  ;;  %2106 = vadd.xlane.f32.xlu0 %v6550_v7  ;;  %v6554_v0 = vpop.eup %4884 }
 0x439   :  { %v1801_v25 = vpop.xlane.xlu0 %1800  ;;  %v6559_v51 = vpop.eup %4886  ;;  %v1976_v20 = vmul.f32 1.442695, %v1867_v63  ;;  %v7641_v63 = vld [vmem:[#allocation33_spill] sm:$0xff] }
 0x43a   :  { %4894 = vpow2.f32 %v1986_v42  ;;  %2080 = vadd.xlane.f32.xlu1 %v6554_v0  ;;  %v7640_v42 = vld [vmem:[#allocation28_spill] sm:$0xff] }
 0x43b   :  { %4896 = vpow2.f32 %v1968_v24  ;;  %v1869_v8 = vsub.f32 %v7640_v42, %v6513_v26  ;;  %v7643_v42 = vld [vmem:[#allocation30_spill] sm:$0xff] }
 0x43c   :  { %4898 = vpow2.f32 %v1972_v50 }
 0x43d   :  { %v1799_v2 = vpop.xlane.xlu0 %1798 }
 0x43e   :  { %v1874_v22 = vsub.f32 %v6313_v10, %v1799_v2  ;;  %2084 = vadd.xlane.f32.xlu1 %v6559_v51  ;;  %v1980_v10 = vmul.f32 1.442695, %v1869_v8 }
 0x43f   :  { %v6563_v12 = vpop.eup %4888 }
 0x440   :  { %7639 = vst [vmem:[#allocation24_spill] sm:$0xff] %v6563_v12  ;;  %v1990_v7 = vmul.f32 1.442695, %v1874_v22  ;;  %2110 = vadd.xlane.f32.xlu0 %v6563_v12  ;;  %v6568_v24 = vpop.eup %4890  ;;  %v1984_v22 = vmul.f32 1.442695, %v1871_v56 }
 0x441   :  { %v1805_v40 = vpop.xlane.xlu0 %1804  ;;  %v6573_v30 = vpop.eup %4892 }
 0x442   :  { %4900 = vpow2.f32 %v1990_v7  ;;  %2088 = vadd.xlane.f32.xlu1 %v6568_v24  ;;  %v1873_v7 = vsub.f32 %v7643_v42, %v1797_v27 }
 0x443   :  { %4902 = vpow2.f32 %v1976_v20 }
 0x444   :  { %4904 = vpow2.f32 %v1980_v10  ;;  %v1988_v57 = vmul.f32 1.442695, %v1873_v7 }
 0x445   :  { %v1803_v50 = vpop.xlane.xlu0 %1802 }
 0x446   :  { %v1876_v2 = vsub.f32 %v7641_v63, %v1803_v50  ;;  %2092 = vadd.xlane.f32.xlu1 %v6573_v30  ;;  %v1875_v50 = vsub.f32 %v7644_v45, %v1801_v25 }
 0x447   :  { %v6577_v26 = vpop.eup %4894 }
 0x448   :  { %7642 = vst [vmem:[#allocation25_spill] sm:$0xff] %v6577_v26  ;;  %v1994_v12 = vmul.f32 1.442695, %v1876_v2  ;;  %2114 = vadd.xlane.f32.xlu0 %v6577_v26  ;;  %v6581_v20 = vpop.eup %4896  ;;  %v1992_v56 = vmul.f32 1.442695, %v1875_v50  ;;  %v7645_v2 = vld [vmem:[#allocation32_spill] sm:$0xff] }
 0x449   :  { %v1809_v8 = vpop.xlane.xlu0 %1808  ;;  %v6585_v63 = vpop.eup %4898  ;;  %v1877_v42 = vsub.f32 %v7645_v2, %v1805_v40 }
 0x44a   :  { %4906 = vpow2.f32 %v1994_v12  ;;  %2096 = vadd.xlane.f32.xlu1 %v6581_v20 }
 0x44b   :  { %4908 = vpow2.f32 %v1984_v22  ;;  %v1996_v25 = vmul.f32 1.442695, %v1877_v42 }
 0x44c   :  { %4910 = vpow2.f32 %v1988_v57 }
 0x44d   :  { %v1807_v16 = vpop.xlane.xlu0 %1806 }
 0x44e   :  { %v1878_v10 = vsub.f32 %v6330_v28, %v1807_v16  ;;  %2100 = vadd.xlane.f32.xlu1 %v6585_v63  ;;  %v7646_v28 = vld [vmem:[#allocation34_spill] sm:$0xff] }
 0x44f   :  { %v6589_v27 = vpop.eup %4900  ;;  %v1879_v16 = vsub.f32 %v7646_v28, %v1809_v8 }
 0x450   :  { %v1998_v12 = vmul.f32 1.442695, %v1878_v10  ;;  %2118 = vadd.xlane.f32.xlu0 %v6589_v27  ;;  %v6593_v22 = vpop.eup %4902 }
 0x451   :  { %v1813_v7 = vpop.xlane.xlu0 %1812  ;;  %v6597_v45 = vpop.eup %4904  ;;  %v2000_v10 = vmul.f32 1.442695, %v1879_v16 }
 0x452   :  { %4912 = vpow2.f32 %v1998_v12  ;;  %2104 = vadd.xlane.f32.xlu1 %v6593_v22  ;;  %v1881_v57 = vsub.f32 %v6336_v23, %v1813_v7 }
 0x453   :  { %4914 = vpow2.f32 %v1992_v56 }
 0x454   :  { %4916 = vpow2.f32 %v1996_v25  ;;  %v2004_v8 = vmul.f32 1.442695, %v1881_v57 }
 0x455   :  { %v1811_v26 = vpop.xlane.xlu0 %1810 }
 0x456   :  { %v1880_v40 = vsub.f32 %v6341_v32, %v1811_v26  ;;  %2108 = vadd.xlane.f32.xlu1 %v6597_v45 }
 0x457   :  { %v6602_v50 = vpop.eup %4906 }
 0x458   :  { %v2002_v2 = vmul.f32 1.442695, %v1880_v40  ;;  %2122 = vadd.xlane.f32.xlu0 %v6602_v50  ;;  %v6605_v56 = vpop.eup %4908 }
 0x459   :  { %v1817_v42 = vpop.xlane.xlu0 %1816  ;;  %v6609_v32 = vpop.eup %4910 }
 0x45a   :  { %4918 = vpow2.f32 %v2002_v2  ;;  %2112 = vadd.xlane.f32.xlu1 %v6605_v56  ;;  %v1883_v23 = vsub.f32 %v6346_v53, %v1817_v42 }
 0x45b   :  { %v2017_v12 = vpop.xlane.xlu1 %2016  ;;  %4920 = vpow2.f32 %v2000_v10 }
 0x45c   :  { %4922 = vpow2.f32 %v2004_v8  ;;  %v2008_v16 = vmul.f32 1.442695, %v1883_v23 }
 0x45d   :  { %v1815_v26 = vpop.xlane.xlu0 %1814  ;;  %4924 = vrcp.f32 %v2017_v12 }
 0x45e   :  { %v1882_v7 = vsub.f32 %v6353_v49, %v1815_v26  ;;  %2116 = vadd.xlane.f32.xlu1 %v6609_v32 }
 0x45f   :  { %v6613_v25 = vpop.eup %4912  ;;  %v2015_v28 = vpop.xlane.xlu1 %2014 }
 0x460   :  { %v2006_v57 = vmul.f32 1.442695, %v1882_v7  ;;  %4926 = vrcp.f32 %v2015_v28  ;;  %2126 = vadd.xlane.f32.xlu0 %v6613_v25  ;;  %v6616_v40 = vpop.eup %4914 }
 0x461   :  { %v1821_v53 = vpop.xlane.xlu0 %1820  ;;  %v6620_v42 = vpop.eup %4916 }
 0x462   :  { %4928 = vpow2.f32 %v2006_v57  ;;  %v1885_v10 = vsub.f32 %v6361_v3, %v1821_v53  ;;  %2120 = vadd.xlane.f32.xlu1 %v6616_v40 }
 0x463   :  { %v2021_v49 = vpop.xlane.xlu1 %2020  ;;  %4930 = vpow2.f32 %v2008_v16 }
 0x464   :  { %v2012_v2 = vmul.f32 1.442695, %v1885_v10  ;;  %4932 = vrcp.f32 %v2021_v49 }
 0x465   :  { %v1819_v8 = vpop.xlane.xlu0 %1818 }
 0x466   :  { %v1884_v12 = vsub.f32 %v6369_v18, %v1819_v8  ;;  %2124 = vadd.xlane.f32.xlu1 %v6620_v42  ;;  %4934 = vpow2.f32 %v2012_v2 }
 0x467   :  { %v6624_v23 = vpop.eup %4918  ;;  %v2019_v26 = vpop.xlane.xlu1 %2018 }
 0x468   :  { %v2010_v7 = vmul.f32 1.442695, %v1884_v12  ;;  %4936 = vrcp.f32 %v2019_v26  ;;  %2130 = vadd.xlane.f32.xlu0 %v6624_v23  ;;  %v6627_v3 = vpop.eup %4920 }
 0x469   :  { %v6630_v28 = vpop.eup %4922 }
 0x46a   :  { %4938 = vpow2.f32 %v2010_v7  ;;  %2128 = vadd.xlane.f32.xlu1 %v6627_v3  ;;  %7647 = vst [vmem:[#allocation26_spill] sm:$0xff] %v6630_v28  ;;  %v4925_v57 = vpop.eup %4924 }
 0x46b   :  { %v2025_v16 = vpop.xlane.xlu1 %2024  ;;  %v2207_v2 = vmul.f32 %v4925_v57, %v6350_v54 }
 0x46c   :  { %4940 = vrcp.f32 %v2025_v16 }
 0x46d   :  { %v4927_v18 = vpop.eup %4926 }
 0x46e   :  { %2132 = vadd.xlane.f32.xlu1 %v6630_v28  ;;  %v2206_v53 = vmul.f32 %v4927_v18, %v6358_v17  ;;  %v7652_v28 = vld [vmem:[#allocation35_spill] sm:$0xff] }
 0x46f   :  { %v6634_v10 = vpop.eup %4928  ;;  %v2023_v49 = vpop.xlane.xlu1 %2022 }
 0x470   :  { %7648 = vst [vmem:[#allocation27_spill] sm:$0xff] %v6634_v10  ;;  %4942 = vrcp.f32 %v2023_v49  ;;  %4547 = vmatprep.mubr.f32.mxu0 %v2206_v53  ;;  %2134 = vadd.xlane.f32.xlu0 %v6634_v10  ;;  %v6638_v8 = vpop.eup %4930 }
 0x471   :  { %7649 = vst [vmem:[#allocation28_spill] sm:$0xff] %v6638_v8  ;;  %4548 = vmatmul.mubr.f32.vlgmr.msra.gmra.mxu0 %v2207_v2  ;;  %v4933_v12 = vpop.eup %4932 }
 0x472   :  { %2136 = vadd.xlane.f32.xlu1 %v6638_v8  ;;  %v2209_v57 = vmul.f32 %v4933_v12, %v6366_v48  ;;  %v7651_v8 = vld [vmem:[#allocation36_spill] sm:$0xff] }
 0x473   :  { %v2029_v26 = vpop.xlane.xlu1 %2028  ;;  %v6641_v7 = vpop.eup %4934 }
 0x474   :  { %7650 = vst [vmem:[#allocation33_spill] sm:$0xff] %v6641_v7  ;;  %4944 = vrcp.f32 %v2029_v26 }
 0x475   :  { %v4937_v17 = vpop.eup %4936 }
 0x476   :  { %2140 = vadd.xlane.f32.xlu1 %v6641_v7  ;;  %v2208_v16 = vmul.f32 %v4937_v17, %v6374_v37 }
 0x477   :  { %v6645_v18 = vpop.eup %4938  ;;  %v2027_v54 = vpop.xlane.xlu1 %2026 }
 0x478   :  { %4946 = vrcp.f32 %v2027_v54  ;;  %4550 = vmatprep.mubr.f32.mxu0 %v2208_v16  ;;  %2138 = vadd.xlane.f32.xlu0 %v6645_v18 }
 0x479   :  { %4551 = vmatmul.mubr.f32.gmra.mxu0 %v2209_v57  ;;  %v4941_v49 = vpop.eup %4940 }
 0x47a   :  { %v2211_v37 = vmul.f32 %v4941_v49, %v7652_v28 }
 0x47b   :  { %v2033_v53 = vpop.xlane.xlu1 %2032 }
 0x47c   :  { %4948 = vrcp.f32 %v2033_v53 }
 0x47d   :  { %v4943_v2 = vpop.eup %4942 }
 0x47e   :  { %v2210_v10 = vmul.f32 %v4943_v2, %v7651_v8 }
 0x47f   :  { %v2031_v7 = vpop.xlane.xlu1 %2030 }
 0x480   :  { %4950 = vrcp.f32 %v2031_v7  ;;  %4553 = vmatprep.mubr.f32.mxu0 %v2210_v10 }
 0x481   :  { %4554 = vmatmul.mubr.f32.gmra.mxu0 %v2211_v37  ;;  %v4945_v17 = vpop.eup %4944 }
 0x482   :  { %v2213_v54 = vmul.f32 %v4945_v17, %v6392_v60 }
 0x483   :  { %v2037_v26 = vpop.xlane.xlu1 %2036 }
 0x484   :  { %4952 = vrcp.f32 %v2037_v26 }
 0x485   :  { %v4947_v48 = vpop.eup %4946  ;;  %v2055_v2 = vpop.xlane.xlu0 %2054 }
 0x486   :  { %v2212_v12 = vmul.f32 %v4947_v48, %v6397_v41 }
 0x487   :  { %v2035_v16 = vpop.xlane.xlu1 %2034 }
 0x488   :  { %4954 = vrcp.f32 %v2035_v16  ;;  %4556 = vmatprep.mubr.f32.mxu0 %v2212_v12 }
 0x489   :  { %4557 = vmatmul.mubr.f32.gmra.mxu0 %v2213_v54  ;;  %v4949_v57 = vpop.eup %4948  ;;  %v2059_v37 = vpop.xlane.xlu0 %2058 }
 0x48a   :  { %v2215_v7 = vmul.f32 %v4949_v57, %v6404_v4 }
 0x48b   :  { %v2041_v8 = vpop.xlane.xlu1 %2040 }
 0x48c   :  { %4956 = vrcp.f32 %v2041_v8 }
 0x48d   :  { %v4951_v53 = vpop.eup %4950 }
 0x48e   :  { %v2214_v28 = vmul.f32 %v4951_v53, %v6411_v46  ;;  %v2063_v46 = vpop.xlane.xlu0 %2062 }
 0x48f   :  { %v2039_v10 = vpop.xlane.xlu1 %2038 }
 0x490   :  { %4958 = vrcp.f32 %v2039_v10  ;;  %4559 = vmatprep.mubr.f32.mxu0 %v2214_v28 }
 0x491   :  { %4560 = vmatmul.mubr.f32.gmra.mxu0 %v2215_v7  ;;  %v4953_v49 = vpop.eup %4952 }
 0x492   :  { %v2217_v48 = vmul.f32 %v4953_v49, %v6417_v47  ;;  %v2067_v53 = vpop.xlane.xlu0 %2066 }
 0x493   :  { %v2045_v41 = vpop.xlane.xlu1 %2044 }
 0x494   :  { %4960 = vrcp.f32 %v2045_v41 }
 0x495   :  { %v4955_v60 = vpop.eup %4954 }
 0x496   :  { %v2216_v26 = vmul.f32 %v4955_v60, %v6427_v14  ;;  %v2071_v10 = vpop.xlane.xlu0 %2070 }
 0x497   :  { %v2043_v17 = vpop.xlane.xlu1 %2042 }
 0x498   :  { %4962 = vrcp.f32 %v2043_v17  ;;  %4562 = vmatprep.mubr.f32.mxu0 %v2216_v26 }
 0x499   :  { %4563 = vmatmul.mubr.f32.gmra.mxu0 %v2217_v48  ;;  %v4957_v16 = vpop.eup %4956 }
 0x49a   :  { %v2219_v57 = vmul.f32 %v4957_v16, %v6438_v13  ;;  %v2075_v60 = vpop.xlane.xlu0 %2074 }
 0x49b   :  { %v2049_v12 = vpop.xlane.xlu1 %2048 }
 0x49c   :  { %4964 = vrcp.f32 %v2049_v12 }
 0x49d   :  { %v4959_v4 = vpop.eup %4958 }
 0x49e   :  { %v2218_v54 = vmul.f32 %v4959_v4, %v6447_v43 }
 0x49f   :  { %v2047_v8 = vpop.xlane.xlu1 %2046 }
 0x4a0   :  { %4966 = vrcp.f32 %v2047_v8  ;;  %4565 = vmatprep.mubr.f32.mxu0 %v2218_v54 }
 0x4a1   :  { %4566 = vmatmul.mubr.f32.gmra.mxu0 %v2219_v57  ;;  %v4961_v28 = vpop.eup %4960 }
 0x4a2   :  { %v2221_v49 = vmul.f32 %v4961_v28, %v6458_v44  ;;  %v2079_v44 = vpop.xlane.xlu0 %2078 }
 0x4a3   :  { %v2051_v14 = vpop.xlane.xlu1 %2050 }
 0x4a4   :  { %4968 = vrcp.f32 %v2051_v14 }
 0x4a5   :  { %v4963_v47 = vpop.eup %4962  ;;  %4970 = vrcp.f32 %v2055_v2 }
 0x4a6   :  { %v2220_v7 = vmul.f32 %v4963_v47, %v6467_v61  ;;  %v2083_v8 = vpop.xlane.xlu0 %2082 }
 0x4a7   :  { %v2053_v41 = vpop.xlane.xlu1 %2052 }
 0x4a8   :  { %4972 = vrcp.f32 %v2053_v41  ;;  %4568 = vmatprep.mubr.f32.mxu0 %v2220_v7 }
 0x4a9   :  { %4569 = vmatmul.mubr.f32.gmra.mxu0 %v2221_v49  ;;  %4974 = vrcp.f32 %v2059_v37  ;;  %v4965_v43 = vpop.eup %4964 }
 0x4aa   :  { %v2223_v12 = vmul.f32 %v4965_v43, %v6476_v15  ;;  %v2087_v47 = vpop.xlane.xlu0 %2086 }
 0x4ab   :  { %v2057_v13 = vpop.xlane.xlu1 %2056 }
 0x4ac   :  { %4976 = vrcp.f32 %v2057_v13 }
 0x4ad   :  { %v4967_v26 = vpop.eup %4966  ;;  %4978 = vrcp.f32 %v2063_v46 }
 0x4ae   :  { %v2222_v17 = vmul.f32 %v4967_v26, %v6485_v58 }
 0x4af   :  { %v2061_v48 = vpop.xlane.xlu1 %2060 }
 0x4b0   :  { %4980 = vrcp.f32 %v2061_v48  ;;  %4571 = vmatprep.mubr.f32.mxu0 %v2222_v17 }
 0x4b1   :  { %v4969_v61 = vpop.eup %4968  ;;  %4572 = vmatmul.mubr.f32.gmra.mxu0 %v2223_v12  ;;  %4982 = vrcp.f32 %v2067_v53 }
 0x4b2   :  { %v2224_v2 = vmul.f32 %v4969_v61, %v6494_v52  ;;  %v4971_v16 = vpop.eup %4970 }
 0x4b3   :  { %v2065_v37 = vpop.xlane.xlu1 %2064  ;;  %v2226_v46 = vmul.f32 %v4971_v16, %v6423_v1 }
 0x4b4   :  { %4984 = vrcp.f32 %v2065_v37  ;;  %4574 = vmatprep.mubr.f32.mxu0 %v2224_v2 }
 0x4b5   :  { %v4973_v4 = vpop.eup %4972  ;;  %4986 = vrcp.f32 %v2071_v10 }
 0x4b6   :  { %v2225_v54 = vmul.f32 %v4973_v4, %v6503_v33  ;;  %v4975_v15 = vpop.eup %4974 }
 0x4b7   :  { %v2069_v58 = vpop.xlane.xlu1 %2068  ;;  %v2228_v14 = vmul.f32 %v4975_v15, %v6431_v55 }
 0x4b8   :  { %4988 = vrcp.f32 %v2069_v58  ;;  %4575 = vmatmul.mubr.f32.gmra.mxu0 %v2225_v54 }
 0x4b9   :  { %v4977_v57 = vpop.eup %4976  ;;  %4577 = vmatprep.mubr.f32.mxu0 %v2226_v46  ;;  %4990 = vrcp.f32 %v2075_v60  ;;  %v2091_v60 = vpop.xlane.xlu0 %2090 }
 0x4ba   :  { %v2227_v52 = vmul.f32 %v4977_v57, %v6511_v36  ;;  %v4979_v28 = vpop.eup %4978  ;;  %v117_v36 = vld [vmem:[%s7525_s11 + $0x18] sm:$0xff] }
 0x4bb   :  { %v2073_v53 = vpop.xlane.xlu1 %2072  ;;  %v2230_v7 = vmul.f32 %v4979_v28, %v6442_v9  ;;  %4643 = vmatprep.subr.mxu0 %v117_v36 }
 0x4bc   :  { %4992 = vrcp.f32 %v2073_v53  ;;  %4578 = vmatmul.mubr.f32.gmra.mxu0 %v2227_v52 }
 0x4bd   :  { %v4981_v33 = vpop.eup %4980  ;;  %4580 = vmatprep.mubr.f32.mxu0 %v2228_v14  ;;  %4994 = vrcp.f32 %v2079_v44  ;;  %4644 = vmatpush3.msra.mxu0 %v117_v36  ;;  %v2095_v61 = vpop.xlane.xlu0 %2094 }
 0x4be   :  { %v2229_v1 = vmul.f32 %v4981_v33, %v6520_v21  ;;  %v4983_v41 = vpop.eup %4982 }
 0x4bf   :  { %v2077_v10 = vpop.xlane.xlu1 %2076  ;;  %v2232_v21 = vmul.f32 %v4983_v41, %v6453_v34 }
 0x4c0   :  { %4996 = vrcp.f32 %v2077_v10  ;;  %4581 = vmatmul.mubr.f32.gmra.mxu0 %v2229_v1 }
 0x4c1   :  { %v4985_v55 = vpop.eup %4984  ;;  %4583 = vmatprep.mubr.f32.mxu0 %v2230_v7  ;;  %4998 = vrcp.f32 %v2083_v8  ;;  %v2099_v58 = vpop.xlane.xlu0 %2098  ;;  %v116_v7 = vld [vmem:[%s7525_s11 + $0x10] sm:$0xff] }
 0x4c2   :  { %v2231_v49 = vmul.f32 %v4985_v55, %v6528_v6  ;;  %v4987_v43 = vpop.eup %4986  ;;  %4645 = vmatprep.subr.mxu0 %v116_v7 }
 0x4c3   :  { %v2081_v13 = vpop.xlane.xlu1 %2080  ;;  %v2234_v48 = vmul.f32 %v4987_v43, %v6462_v59  ;;  %4646 = vmatpush3.msra.mxu0 %v116_v7 }
 0x4c4   :  { %5000 = vrcp.f32 %v2081_v13  ;;  %4584 = vmatmul.mubr.f32.gmra.mxu0 %v2231_v49  ;;  %v7653_v13 = vld [vmem:[#allocation29_spill] sm:$0xff] }
 0x4c5   :  { %v4989_v9 = vpop.eup %4988  ;;  %4586 = vmatprep.mubr.f32.mxu0 %v2232_v21  ;;  %5002 = vrcp.f32 %v2087_v47  ;;  %v2103_v57 = vpop.xlane.xlu0 %2102 }
 0x4c6   :  { %v2233_v26 = vmul.f32 %v4989_v9, %v6534_v5  ;;  %v4991_v12 = vpop.eup %4990 }
 0x4c7   :  { %v2085_v17 = vpop.xlane.xlu1 %2084  ;;  %v2236_v2 = vmul.f32 %v4991_v12, %v6471_v62 }
 0x4c8   :  { %5004 = vrcp.f32 %v2085_v17  ;;  %4587 = vmatmul.mubr.f32.gmra.mxu0 %v2233_v26  ;;  %v7654_v17 = vld [vmem:[#allocation22_spill] sm:$0xff] }
 0x4c9   :  { %v4993_v6 = vpop.eup %4992  ;;  %4589 = vmatprep.mubr.f32.mxu0 %v2234_v48  ;;  %5006 = vrcp.f32 %v2091_v60  ;;  %v2107_v28 = vpop.xlane.xlu0 %2106 }
 0x4ca   :  { %v2235_v34 = vmul.f32 %v4993_v6, %v6542_v19  ;;  %v4995_v37 = vpop.eup %4994 }
 0x4cb   :  { %v2089_v44 = vpop.xlane.xlu1 %2088  ;;  %v2238_v4 = vmul.f32 %v4995_v37, %v6480_v29 }
 0x4cc   :  { %5008 = vrcp.f32 %v2089_v44  ;;  %4590 = vmatmul.mubr.f32.gmra.mxu0 %v2235_v34  ;;  %v7655_v44 = vld [vmem:[#allocation23_spill] sm:$0xff] }
 0x4cd   :  { %v4997_v5 = vpop.eup %4996  ;;  %4592 = vmatprep.mubr.f32.mxu0 %v2236_v2  ;;  %5010 = vrcp.f32 %v2095_v61  ;;  %v2111_v10 = vpop.xlane.xlu0 %2110 }
 0x4ce   :  { %v2237_v16 = vmul.f32 %v4997_v5, %v6546_v39  ;;  %v4999_v54 = vpop.eup %4998 }
 0x4cf   :  { %v2093_v59 = vpop.xlane.xlu1 %2092  ;;  %v2240_v15 = vmul.f32 %v4999_v54, %v6489_v31 }
 0x4d0   :  { %5012 = vrcp.f32 %v2093_v59  ;;  %4593 = vmatmul.mubr.f32.gmra.mxu0 %v2237_v16 }
 0x4d1   :  { %v5001_v19 = vpop.eup %5000  ;;  %4595 = vmatprep.mubr.f32.mxu0 %v2238_v4  ;;  %5014 = vrcp.f32 %v2099_v58  ;;  %v2115_v55 = vpop.xlane.xlu0 %2114  ;;  %v7656_v4 = vld [vmem:[#allocation24_spill] sm:$0xff] }
 0x4d2   :  { %v2239_v46 = vmul.f32 %v5001_v19, %v6554_v0  ;;  %v5003_v8 = vpop.eup %5002 }
 0x4d3   :  { %v2097_v62 = vpop.xlane.xlu1 %2096  ;;  %v2242_v53 = vmul.f32 %v5003_v8, %v6499_v35 }
 0x4d4   :  { %5016 = vrcp.f32 %v2097_v62  ;;  %4596 = vmatmul.mubr.f32.gmra.mxu0 %v2239_v46 }
 0x4d5   :  { %v5005_v39 = vpop.eup %5004  ;;  %4598 = vmatprep.mubr.f32.mxu0 %v2240_v15  ;;  %5018 = vrcp.f32 %v2103_v57  ;;  %v7657_v15 = vld [vmem:[#allocation25_spill] sm:$0xff] }
 0x4d6   :  { %v2241_v29 = vmul.f32 %v5005_v39, %v6559_v51  ;;  %v5007_v14 = vpop.eup %5006 }
 0x4d7   :  { %v2101_v52 = vpop.xlane.xlu1 %2100  ;;  %v2244_v47 = vmul.f32 %v5007_v14, %v6507_v38 }
 0x4d8   :  { %5020 = vrcp.f32 %v2101_v52  ;;  %4599 = vmatmul.mubr.f32.gmra.mxu0 %v2241_v29 }
 0x4d9   :  { %v5009_v0 = vpop.eup %5008  ;;  %4601 = vmatprep.mubr.f32.mxu0 %v2242_v53  ;;  %5022 = vrcp.f32 %v2107_v28  ;;  %v2119_v60 = vpop.xlane.xlu0 %2118 }
 0x4da   :  { %v2243_v31 = vmul.f32 %v5009_v0, %v6568_v24  ;;  %v5011_v1 = vpop.eup %5010 }
 0x4db   :  { %v2105_v33 = vpop.xlane.xlu1 %2104  ;;  %v2246_v24 = vmul.f32 %v5011_v1, %v6516_v11 }
 0x4dc   :  { %5024 = vrcp.f32 %v2105_v33  ;;  %4602 = vmatmul.mubr.f32.gmra.mxu0 %v2243_v31 }
 0x4dd   :  { %v5013_v51 = vpop.eup %5012  ;;  %4604 = vmatprep.mubr.f32.mxu0 %v2244_v47  ;;  %5026 = vrcp.f32 %v2111_v10 }
 0x4de   :  { %v2245_v35 = vmul.f32 %v5013_v51, %v6573_v30  ;;  %v5015_v41 = vpop.eup %5014 }
 0x4df   :  { %v2109_v36 = vpop.xlane.xlu1 %2108  ;;  %v2248_v21 = vmul.f32 %v5015_v41, %v7653_v13  ;;  %v7659_v41 = vld [vmem:[#allocation27_spill] sm:$0xff] }
 0x4e0   :  { %5028 = vrcp.f32 %v2109_v36  ;;  %4605 = vmatmul.mubr.f32.gmra.mxu0 %v2245_v35 }
 0x4e1   :  { %v5017_v38 = vpop.eup %5016  ;;  %4607 = vmatprep.mubr.f32.mxu0 %v2246_v24  ;;  %5030 = vrcp.f32 %v2115_v55  ;;  %v2123_v6 = vpop.xlane.xlu0 %2122 }
 0x4e2   :  { %v2247_v49 = vmul.f32 %v5017_v38, %v6581_v20  ;;  %v5019_v43 = vpop.eup %5018 }
 0x4e3   :  { %v2113_v30 = vpop.xlane.xlu1 %2112  ;;  %v2250_v48 = vmul.f32 %v5019_v43, %v7654_v17 }
 0x4e4   :  { %5032 = vrcp.f32 %v2113_v30  ;;  %4608 = vmatmul.mubr.f32.gmra.mxu0 %v2247_v49 }
 0x4e5   :  { %v5021_v9 = vpop.eup %5020  ;;  %4610 = vmatprep.mubr.f32.mxu0 %v2248_v21  ;;  %5034 = vrcp.f32 %v2119_v60  ;;  %v7661_v21 = vld [vmem:[#allocation33_spill] sm:$0xff]  ;;  %v114_v60 = vld [vmem:[%s7525_s11] sm:$0xff] }
 0x4e6   :  { %v2249_v11 = vmul.f32 %v5021_v9, %v6585_v63  ;;  %v5023_v12 = vpop.eup %5022 }
 0x4e7   :  { %v2117_v26 = vpop.xlane.xlu1 %2116  ;;  %v2252_v2 = vmul.f32 %v5023_v12, %v7655_v44 }
 0x4e8   :  { %5036 = vrcp.f32 %v2117_v26  ;;  %4611 = vmatmul.mubr.f32.gmra.mxu0 %v2249_v11 }
 0x4e9   :  { %v5025_v20 = vpop.eup %5024  ;;  %4613 = vmatprep.mubr.f32.mxu0 %v2250_v48  ;;  %5038 = vrcp.f32 %v2123_v6  ;;  %v2127_v5 = vpop.xlane.xlu0 %2126 }
 0x4ea   :  { %v2251_v61 = vmul.f32 %v5025_v20, %v6593_v22  ;;  %v5027_v37 = vpop.eup %5026 }
 0x4eb   :  { %v2121_v34 = vpop.xlane.xlu1 %2120  ;;  %v2254_v54 = vmul.f32 %v5027_v37, %v7656_v4 }
 0x4ec   :  { %5040 = vrcp.f32 %v2121_v34  ;;  %4614 = vmatmul.mubr.f32.gmra.mxu0 %v2251_v61 }
 0x4ed   :  { %v5029_v63 = vpop.eup %5028  ;;  %4616 = vmatprep.mubr.f32.mxu0 %v2252_v2  ;;  %5042 = vrcp.f32 %v2127_v5 }
 0x4ee   :  { %v2253_v16 = vmul.f32 %v5029_v63, %v6597_v45  ;;  %v5031_v58 = vpop.eup %5030 }
 0x4ef   :  { %v2125_v59 = vpop.xlane.xlu1 %2124  ;;  %v2256_v8 = vmul.f32 %v5031_v58, %v7657_v15 }
 0x4f0   :  { %5044 = vrcp.f32 %v2125_v59  ;;  %4617 = vmatmul.mubr.f32.gmra.mxu0 %v2253_v16 }
 0x4f1   :  { %v5033_v22 = vpop.eup %5032  ;;  %4619 = vmatprep.mubr.f32.mxu0 %v2254_v54  ;;  %v2131_v19 = vpop.xlane.xlu0 %2130 }
 0x4f2   :  { %v2255_v46 = vmul.f32 %v5033_v22, %v6605_v56  ;;  %5046 = vrcp.f32 %v2131_v19  ;;  %v5035_v57 = vpop.eup %5034 }
 0x4f3   :  { %v2129_v62 = vpop.xlane.xlu1 %2128  ;;  %v2258_v52 = vmul.f32 %v5035_v57, %v6589_v27 }
 0x4f4   :  { %5048 = vrcp.f32 %v2129_v62  ;;  %4620 = vmatmul.mubr.f32.gmra.mxu0 %v2255_v46 }
 0x4f5   :  { %v5037_v45 = vpop.eup %5036  ;;  %4622 = vmatprep.mubr.f32.mxu0 %v2256_v8 }
 0x4f6   :  { %v2257_v39 = vmul.f32 %v5037_v45, %v6609_v32  ;;  %v5039_v53 = vpop.eup %5038 }
 0x4f7   :  { %v2133_v29 = vpop.xlane.xlu1 %2132  ;;  %v2260_v31 = vmul.f32 %v5039_v53, %v6602_v50  ;;  %v115_v50 = vld [vmem:[%s7525_s11 + $0x8] sm:$0xff] }
 0x4f8   :  { %5050 = vrcp.f32 %v2133_v29  ;;  %4623 = vmatmul.mubr.f32.gmra.mxu0 %v2257_v39  ;;  %4647 = vmatprep.subr.mxu0 %v115_v50  ;;  %v7662_v29 = vld [vmem:[#allocation21_spill] sm:$0xff] }
 0x4f9   :  { %v5041_v14 = vpop.eup %5040  ;;  %4625 = vmatprep.mubr.f32.mxu0 %v2258_v52  ;;  %v2135_v56 = vpop.xlane.xlu0 %2134  ;;  %4648 = vmatpush3.msra.mxu0 %v115_v50 }
 0x4fa   :  { %5052 = vrcp.f32 %v2135_v56  ;;  %v2259_v28 = vmul.f32 %v5041_v14, %v6616_v40  ;;  %v5043_v33 = vpop.eup %5042  ;;  %4649 = vmatprep.subr.mxu0 %v114_v60  ;;  %v7663_v14 = vld [vmem:[#allocation18_spill] sm:$0xff] }
 0x4fb   :  { %v2137_v0 = vpop.xlane.xlu1 %2136  ;;  %v2262_v1 = vmul.f32 %v5043_v33, %v6613_v25  ;;  %v7658_v25 = vld [vmem:[#allocation26_spill] sm:$0xff]  ;;  %4650 = vmatpush3.msra.mxu0 %v114_v60 }
 0x4fc   :  { %5054 = vrcp.f32 %v2137_v0  ;;  %4626 = vmatmul.mubr.f32.gmra.mxu0 %v2259_v28 }
 0x4fd   :  { %v5045_v47 = vpop.eup %5044  ;;  %4628 = vmatprep.mubr.f32.mxu0 %v2260_v31 }
 0x4fe   :  { %v2261_v32 = vmul.f32 %v5045_v47, %v6620_v42 }
 0x4ff   :  { %v2141_v27 = vpop.xlane.xlu1 %2140  ;;  %v5047_v10 = vpop.eup %5046 }
 0x500   :  { %4629 = vmatmul.mubr.f32.gmra.mxu0 %v2261_v32  ;;  %5056 = vrcp.f32 %v2141_v27  ;;  %v2264_v7 = vmul.f32 %v5047_v10, %v6624_v23 }
 0x501   :  { %v5049_v51 = vpop.eup %5048  ;;  %4631 = vmatprep.mubr.f32.mxu0 %v2262_v1  ;;  %v2139_v35 = vpop.xlane.xlu0 %2138 }
 0x502   :  { %5058 = vrcp.f32 %v2139_v35  ;;  %v2263_v40 = vmul.f32 %v5049_v51, %v6627_v3  ;;  %v7660_v3 = vld [vmem:[#allocation28_spill] sm:$0xff] }
 0x504   :  { %4632 = vmatmul.mubr.f32.gmra.mxu0 %v2263_v40 }
 0x505   :  { %v5051_v42 = vpop.eup %5050  ;;  %4634 = vmatprep.mubr.f32.mxu0 %v2264_v7 }
 0x506   :  { %v2265_v36 = vmul.f32 %v5051_v42, %v7658_v25 }
 0x507   :  { %v5053_v24 = vpop.eup %5052 }
 0x508   :  { %4635 = vmatmul.mubr.f32.gmra.mxu0 %v2265_v36  ;;  %v2266_v55 = vmul.f32 %v5053_v24, %v7659_v41 }
 0x509   :  { %v5055_v38 = vpop.eup %5054 }
 0x50a   :  { %4637 = vmatprep.mubr.f32.mxu0 %v2266_v55  ;;  %v2267_v49 = vmul.f32 %v5055_v38, %v7660_v3 }
 0x50c   :  { %4638 = vmatmul.mubr.f32.gmra.mxu0 %v2267_v49 }
 0x50d   :  { %v5057_v30 = vpop.eup %5056 }
 0x50e   :  { %v2269_v43 = vmul.f32 %v5057_v30, %v7661_v21 }
 0x50f   :  { %v5059_v13 = vpop.eup %5058 }
 0x510   :  { %v2268_v23 = vmul.f32 %v5059_v13, %v6645_v18 }
 0x512   :  { %4640 = vmatprep.mubr.f32.mxu0 %v2268_v23 }
 0x513   :  { %4641 = vmatmul.mubr.f32.gmra.mxu0 %v2269_v43 }
 0x531   :  { %v4549_v9 = vpop.f32.mrf.mxu0 }
 0x532   :  { %v2656_v42 = vmul.f32 %v4549_v9, %v7662_v29 }
 0x533   :  { %v2336_v11 = vpop.f32.mrf.mxu0 }
 0x534   :  { %v2655_v25 = vmul.f32 %v2336_v11, %v7662_v29  ;;  %v2726_v38 = vsel %vm141_vm0, %v2656_v42, 0.0 }
 0x536   :  { %v2719_v49 = vsel %vm141_vm0, %v2655_v25, 0.0 }
 0x539   :  { %v4552_v26 = vpop.f32.mrf.mxu0 }
 0x53a   :  { %v2658_v36 = vmul.f32 %v4552_v26, %v7662_v29 }
 0x53b   :  { %v2346_v17 = vpop.f32.mrf.mxu0 }
 0x53c   :  { %v2657_v41 = vmul.f32 %v2346_v17, %v7662_v29  ;;  %v2740_v30 = vsel %vm141_vm0, %v2658_v36, 0.0 }
 0x53e   :  { %v2733_v43 = vsel %vm141_vm0, %v2657_v41, 0.0 }
 0x541   :  { %v4555_v48 = vpop.f32.mrf.mxu0 }
 0x542   :  { %v2660_v3 = vmul.f32 %v4555_v48, %v7662_v29 }
 0x543   :  { %v2356_v12 = vpop.f32.mrf.mxu0 }
 0x544   :  { %v2659_v13 = vmul.f32 %v2356_v12, %v7662_v29 }
 0x549   :  { %v4558_v6 = vpop.f32.mrf.mxu0 }
 0x54a   :  { %v2662_v23 = vmul.f32 %v4558_v6, %v7662_v29  ;;  %v2754_v6 = vsel %vm141_vm0, %v2660_v3, 0.0 }
 0x54b   :  { %v2366_v20 = vpop.f32.mrf.mxu0 }
 0x54c   :  { %v2661_v60 = vmul.f32 %v2366_v20, %v7662_v29 }
 0x551   :  { %v4561_v61 = vpop.f32.mrf.mxu0 }
 0x552   :  { %v2664_v9 = vmul.f32 %v4561_v61, %v7662_v29 }
 0x553   :  { %v2376_v18 = vpop.f32.mrf.mxu0 }
 0x554   :  { %v2663_v11 = vmul.f32 %v2376_v18, %v7662_v29  ;;  %v2747_v18 = vsel %vm141_vm0, %v2659_v13, 0.0 }
 0x559   :  { %v4564_v34 = vpop.f32.mrf.mxu0 }
 0x55a   :  { %v2666_v26 = vmul.f32 %v4564_v34, %v7662_v29  ;;  %v6797_v34 = vsel %vm141_vm0, %v2662_v23, 0.0 }
 0x55b   :  { %v2386_v44 = vpop.f32.mrf.mxu0 }
 0x55c   :  { %v2665_v17 = vmul.f32 %v2386_v44, %v7662_v29 }
 0x561   :  { %v6721_v2 = vpop.f32.mrf.mxu0 }
 0x562   :  { %v2668_v44 = vmul.f32 %v6721_v2, %v7662_v29  ;;  %v6818_v2 = vsel %vm141_vm0, %v2665_v17, 0.0 }
 0x563   :  { %v6723_v37 = vpop.f32.mrf.mxu0 }
 0x564   :  { %v6830_v3 = vsel %vm141_vm0, %v2668_v44, 0.0  ;;  %v6834_v13 = vmul.f32 %v6723_v37, %v7662_v29 }
 0x569   :  { %v4570_v5 = vpop.f32.mrf.mxu0 }
 0x56a   :  { %v2670_v52 = vmul.f32 %v4570_v5, %v7662_v29 }
 0x56b   :  { %v6725_v63 = vpop.f32.mrf.mxu0 }
 0x56c   :  { %v2824_v0 = vsel %vm141_vm0, %v2670_v52, 0.0 }
 0x571   :  { %v4573_v16 = vpop.f32.mrf.mxu0 }
 0x572   :  { %v2672_v48 = vmul.f32 %v4573_v16, %v7663_v14  ;;  %v7665_v16 = vld [vmem:[#allocation19_spill] sm:$0xff] }
 0x573   :  { %v2416_v59 = vpop.f32.mrf.mxu0 }
 0x574   :  { %v2671_v12 = vmul.f32 %v2416_v59, %v7663_v14 }
 0x578   :  { %v4576_v4 = vpop.f32.mrf.mxu0 }
 0x579   :  { %v2674_v52 = vmul.f32 %v4576_v4, %v7663_v14  ;;  %v6808_v4 = vsel %vm141_vm0, %v2664_v9, 0.0 }
 0x57a   :  { %v2426_v54 = vpop.f32.mrf.mxu0 }
 0x57b   :  { %v2673_v20 = vmul.f32 %v2426_v54, %v7663_v14  ;;  %v6811_v54 = vsel %vm141_vm0, %v2663_v11, 0.0  ;;  %v2741_v25 = vsel %vm141_vm0, %v2674_v52, 0.0 }
 0x57c   :  { %v4579_v58 = vpop.f32.mrf.mxu0  ;;  %v2742_v52 = vadd.f32 %v2741_v25, %v2740_v30 }
 0x57d   :  { %v2676_v61 = vmul.f32 %v4579_v58, %v7663_v14  ;;  %v2734_v36 = vsel %vm141_vm0, %v2673_v20, 0.0 }
 0x57e   :  { %v6727_v22 = vpop.f32.mrf.mxu0  ;;  %v2735_v20 = vadd.f32 %v2734_v36, %v2733_v43 }
 0x57f   :  { %v2755_v41 = vsel %vm141_vm0, %v2676_v61, 0.0 }
 0x580   :  { %v6729_v19 = vpop.f32.mrf.mxu0  ;;  %v2756_v61 = vadd.f32 %v2755_v41, %v2754_v6 }
 0x582   :  { %v6731_v46 = vpop.f32.mrf.mxu0 }
 0x583   :  { %v2677_v25 = vmul.f32 %v6731_v46, %v7663_v14 }
 0x584   :  { %v6733_v62 = vpop.f32.mrf.mxu0 }
 0x585   :  { %v2680_v36 = vmul.f32 %v6733_v62, %v7663_v14 }
 0x586   :  { %v6735_v15 = vpop.f32.mrf.mxu0 }
 0x588   :  { %v6737_v8 = vpop.f32.mrf.mxu0 }
 0x58a   :  { %v6739_v57 = vpop.f32.mrf.mxu0 }
 0x58c   :  { %v6741_v45 = vpop.f32.mrf.mxu0 }
 0x58e   :  { %v6743_v39 = vpop.f32.mrf.mxu0 }
 0x590   :  { %v4594_v53 = vpop.f32.mrf.mxu0 }
 0x591   :  { %v2686_v56 = vmul.f32 %v4594_v53, %v7663_v14 }
 0x592   :  { %v6747_v28 = vpop.f32.mrf.mxu0 }
 0x593   :  { %v2825_v31 = vsel %vm141_vm0, %v2686_v56, 0.0  ;;  %v6805_v56 = vsel %vm141_vm0, %v2661_v60, 0.0 }
 0x594   :  { %v6751_v33 = vadd.f32 %v2825_v31, %v2824_v0  ;;  %v4597_v47 = vpop.f32.mrf.mxu0  ;;  %v6815_v0 = vsel %vm141_vm0, %v2666_v26, 0.0  ;;  %v2727_v31 = vsel %vm141_vm0, %v2672_v48, 0.0  ;;  %v7666_v48 = vld [vmem:[#allocation20_spill] sm:$0xff] }
 0x595   :  { %v2688_v59 = vmul.f32 %v4597_v47, %v7665_v16  ;;  %v2720_v47 = vsel %vm141_vm0, %v2671_v12, 0.0  ;;  %v2728_v11 = vadd.f32 %v2727_v31, %v2726_v38 }
 0x596   :  { %7664 = vst [vmem:[#allocation30_spill] sm:$0xff] %v6751_v33  ;;  %v2496_v32 = vpop.f32.mrf.mxu0 }
 0x597   :  { %v2687_v58 = vmul.f32 %v2496_v32, %v7665_v16  ;;  %v2675_v32 = vmul.f32 %v6727_v22, %v7663_v14  ;;  %v2729_v23 = vsel %vm141_vm0, %v2688_v59, 0.0  ;;  %v2721_v22 = vadd.f32 %v2720_v47, %v2719_v49 }
 0x598   :  { %v4600_v27 = vpop.f32.mrf.mxu0  ;;  %v2678_v59 = vmul.f32 %v6729_v19, %v7663_v14  ;;  %v2730_v33 = vadd.f32 %v2729_v23, %v2728_v11 }
 0x599   :  { %v2690_v60 = vmul.f32 %v4600_v27, %v7665_v16  ;;  %v2722_v26 = vsel %vm141_vm0, %v2687_v58, 0.0  ;;  %v2748_v37 = vsel %vm141_vm0, %v2675_v32, 0.0 }
 0x59a   :  { %v2506_v1 = vpop.f32.mrf.mxu0  ;;  %v2723_v38 = vadd.f32 %v2722_v26, %v2721_v22  ;;  %v2749_v47 = vadd.f32 %v2748_v37, %v2747_v18  ;;  %v2769_v32 = vsel %vm141_vm0, %v2678_v59, 0.0  ;;  %v2679_v37 = vmul.f32 %v6735_v15, %v7663_v14 }
 0x59b   :  { %v2689_v17 = vmul.f32 %v2506_v1, %v7665_v16  ;;  %v2743_v58 = vsel %vm141_vm0, %v2690_v60, 0.0  ;;  %v2770_v22 = vadd.f32 %v2769_v32, %v6797_v34 }
 0x59c   :  { %v6753_v10 = vpop.f32.mrf.mxu0  ;;  %v2744_v23 = vadd.f32 %v2743_v58, %v2742_v52  ;;  %v2783_v52 = vsel %vm141_vm0, %v2680_v36, 0.0 }
 0x59d   :  { %v2692_v1 = vmul.f32 %v6753_v10, %v7665_v16  ;;  %v2736_v43 = vsel %vm141_vm0, %v2689_v17, 0.0 }
 0x59e   :  { %v6755_v51 = vpop.f32.mrf.mxu0 }
 0x59f   :  { %v2691_v6 = vmul.f32 %v6755_v51, %v7665_v16  ;;  %v2737_v51 = vadd.f32 %v2736_v43, %v2735_v20  ;;  %v2757_v11 = vsel %vm141_vm0, %v2692_v1, 0.0 }
 0x5a0   :  { %v6757_v35 = vpop.f32.mrf.mxu0  ;;  %v2758_v59 = vadd.f32 %v2757_v11, %v2756_v61 }
 0x5a1   :  { %v2694_v18 = vmul.f32 %v6757_v35, %v7665_v16  ;;  %v2750_v62 = vsel %vm141_vm0, %v2691_v6, 0.0  ;;  %v2762_v35 = vsel %vm141_vm0, %v2677_v25, 0.0  ;;  %v2776_v25 = vsel %vm141_vm0, %v2679_v37, 0.0 }
 0x5a2   :  { %v6759_v40 = vpop.f32.mrf.mxu0  ;;  %v2763_v6 = vadd.f32 %v2762_v35, %v6805_v56 }
 0x5a3   :  { %v2693_v17 = vmul.f32 %v6759_v40, %v7665_v16  ;;  %v2771_v58 = vsel %vm141_vm0, %v2694_v18, 0.0 }
 0x5a4   :  { %v6761_v50 = vpop.f32.mrf.mxu0 }
 0x5a5   :  { %v2696_v1 = vmul.f32 %v6761_v50, %v7665_v16  ;;  %v2784_v50 = vadd.f32 %v2783_v52, %v6808_v4 }
 0x5a6   :  { %v6763_v7 = vpop.f32.mrf.mxu0 }
 0x5a7   :  { %v2695_v15 = vmul.f32 %v6763_v7, %v7665_v16  ;;  %v2681_v7 = vmul.f32 %v6739_v57, %v7663_v14 }
 0x5a8   :  { %v6768_v24 = vpop.f32.mrf.mxu0 }
 0x5a9   :  { %v2698_v18 = vmul.f32 %v6768_v24, %v7665_v16 }
 0x5aa   :  { %v6771_v55 = vpop.f32.mrf.mxu0 }
 0x5ab   :  { %v2799_v37 = vsel %vm141_vm0, %v2698_v18, 0.0 }
 0x5ac   :  { %v6779_v21 = vpop.f32.mrf.mxu0 }
 0x5ae   :  { %v6789_v5 = vpop.f32.mrf.mxu0 }
 0x5b0   :  { %v6802_v53 = vpop.f32.mrf.mxu0 }
 0x5b2   :  { %v6822_v42 = vpop.f32.mrf.mxu0 }
 0x5b4   :  { %v4621_v9 = vpop.f32.mrf.mxu0 }
 0x5b5   :  { %v2704_v12 = vmul.f32 %v4621_v9, %v7666_v48 }
 0x5b6   :  { %v2576_v44 = vpop.f32.mrf.mxu0 }
 0x5b7   :  { %v2703_v27 = vmul.f32 %v2576_v44, %v7666_v48  ;;  %v2731_v49 = vsel %vm141_vm0, %v2704_v12, 0.0 }
 0x5b8   :  { %v4624_v30 = vpop.f32.mrf.mxu0  ;;  %v2732_v60 = vadd.f32 %v2731_v49, %v2730_v33 }
 0x5b9   :  { %v2724_v31 = vsel %vm141_vm0, %v2703_v27, 0.0  ;;  %v2706_v19 = vmul.f32 %v4624_v30, %v7666_v48  ;;  %v2764_v30 = vsel %vm141_vm0, %v2693_v17, 0.0 }
 0x5ba   :  { %v2725_v10 = vadd.f32 %v2724_v31, %v2723_v38  ;;  %v2586_v41 = vpop.f32.mrf.mxu0  ;;  %v2751_v38 = vadd.f32 %v2750_v62, %v2749_v47  ;;  %v2682_v31 = vmul.f32 %v6737_v8, %v7663_v14  ;;  %v2765_v32 = vadd.f32 %v2764_v30, %v2763_v6 }
 0x5bb   :  { %v2705_v9 = vmul.f32 %v2586_v41, %v7666_v48  ;;  %v2745_v26 = vsel %vm141_vm0, %v2706_v19, 0.0  ;;  %v2772_v41 = vadd.f32 %v2771_v58, %v2770_v22  ;;  %v2778_v8 = vsel %vm141_vm0, %v2695_v15, 0.0 }
 0x5bc   :  { %v4627_v46 = vpop.f32.mrf.mxu0  ;;  %4651 = vmatprep.mubr.msk.f32.mxu0 %vm141_vm0, %v2725_v10  ;;  %v2746_v27 = vadd.f32 %v2745_v26, %v2744_v23  ;;  %v2785_v23 = vsel %vm141_vm0, %v2696_v1, 0.0  ;;  %v2797_v11 = vsel %vm141_vm0, %v2682_v31, 0.0  ;;  %v2790_v62 = vsel %vm141_vm0, %v2681_v7, 0.0 }
 0x5bd   :  { %v2738_v33 = vsel %vm141_vm0, %v2705_v9, 0.0  ;;  %v2708_v12 = vmul.f32 %v4627_v46, %v7666_v48  ;;  %4652 = vmatmul.mubr.msk.f32.vlgmr.msra.gmra.mxu0 %vm141_vm0, %v2732_v60  ;;  %v2697_v60 = vmul.f32 %v6771_v55, %v7665_v16  ;;  %v2683_v55 = vmul.f32 %v6743_v39, %v7663_v14 }
 0x5be   :  { %v2739_v20 = vadd.f32 %v2738_v33, %v2737_v51  ;;  %v2596_v44 = vpop.f32.mrf.mxu0  ;;  %v2777_v51 = vadd.f32 %v2776_v25, %v6811_v54  ;;  %v2786_v22 = vadd.f32 %v2785_v23, %v2784_v50 }
 0x5bf   :  { %v2707_v40 = vmul.f32 %v2596_v44, %v7666_v48  ;;  %v2759_v34 = vsel %vm141_vm0, %v2708_v12, 0.0  ;;  %v2684_v12 = vmul.f32 %v6741_v45, %v7663_v14  ;;  %v2792_v24 = vsel %vm141_vm0, %v2697_v60, 0.0 }
 0x5c0   :  { %v4630_v49 = vpop.f32.mrf.mxu0  ;;  %4654 = vmatprep.mubr.msk.f32.mxu0 %vm141_vm0, %v2739_v20  ;;  %v2760_v36 = vadd.f32 %v2759_v34, %v2758_v59  ;;  %v2779_v54 = vadd.f32 %v2778_v8, %v2777_v51  ;;  %v2699_v20 = vmul.f32 %v6789_v5, %v7665_v16  ;;  %v2791_v45 = vadd.f32 %v2790_v62, %v6818_v2 }
 0x5c1   :  { %v2752_v61 = vsel %vm141_vm0, %v2707_v40, 0.0  ;;  %v2710_v43 = vmul.f32 %v4630_v49, %v7666_v48  ;;  %4655 = vmatmul.mubr.msk.f32.gmra.mxu0 %vm141_vm0, %v2746_v27  ;;  %v2700_v59 = vmul.f32 %v6779_v21, %v7665_v16  ;;  %v2804_v58 = vsel %vm141_vm0, %v2683_v55, 0.0  ;;  %v6970_v55 = vld [vmem:[%s7526_s12] ss:$0 sm:$0xff] }
 0x5c2   :  { %v2753_v19 = vadd.f32 %v2752_v61, %v2751_v38  ;;  %v2606_v47 = vpop.f32.mrf.mxu0  ;;  %v2798_v38 = vadd.f32 %v2797_v11, %v6815_v0  ;;  %v2803_v34 = vsel %vm141_vm0, %v6834_v13, 0.0  ;;  %v2811_v49 = vsel %vm141_vm0, %v2684_v12, 0.0  ;;  %v7667_v11 = vld [vmem:[#allocation30_spill] sm:$0xff]  ;;  %v7668_v12 = vld [vmem:[#allocation11_spill] sm:$0xff] }
 0x5c3   :  { %v2709_v10 = vmul.f32 %v2606_v47, %v7666_v48  ;;  %v2773_v56 = vsel %vm141_vm0, %v2710_v43, 0.0  ;;  %v2793_v2 = vadd.f32 %v2792_v24, %v2791_v45  ;;  %v2806_v61 = vsel %vm141_vm0, %v2699_v20, 0.0  ;;  %v7670_v45 = vld [vmem:[#allocation13_spill] sm:$0xff] }
 0x5c4   :  { %v4633_v4 = vpop.f32.mrf.mxu0  ;;  %4657 = vmatprep.mubr.msk.f32.mxu0 %vm141_vm0, %v2753_v19  ;;  %v2774_v17 = vadd.f32 %v2773_v56, %v2772_v41  ;;  %v2800_v21 = vadd.f32 %v2799_v37, %v2798_v38  ;;  %v2805_v6 = vadd.f32 %v2804_v58, %v2803_v34  ;;  %v2685_v13 = vmul.f32 %v6747_v28, %v7663_v14  ;;  %v7671_v38 = vld [vmem:[#allocation12_spill] sm:$0xff] }
 0x5c5   :  { %v2766_v9 = vsel %vm141_vm0, %v2709_v10, 0.0  ;;  %v2712_v57 = vmul.f32 %v4633_v4, %v7666_v48  ;;  %4658 = vmatmul.mubr.msk.f32.gmra.mxu0 %vm141_vm0, %v2760_v36  ;;  %v2813_v50 = vsel %vm141_vm0, %v2700_v59, 0.0  ;;  %v2812_v47 = vadd.f32 %v2811_v49, %v6830_v3  ;;  %v7672_v49 = vld [vmem:[#allocation15_spill] sm:$0xff] }
 0x5c6   :  { %v2767_v26 = vadd.f32 %v2766_v9, %v2765_v32  ;;  %v2616_v46 = vpop.f32.mrf.mxu0  ;;  %v2669_v36 = vmul.f32 %v6725_v63, %v7662_v29  ;;  %v2807_v10 = vadd.f32 %v2806_v61, %v2805_v6  ;;  %v2701_v41 = vmul.f32 %v6822_v42, %v7665_v16  ;;  %v7673_v61 = vld [vmem:[#allocation14_spill] sm:$0xff] }
 0x5c7   :  { %v2711_v33 = vmul.f32 %v2616_v46, %v7666_v48  ;;  %v2787_v35 = vsel %vm141_vm0, %v2712_v57, 0.0  ;;  %v2814_v14 = vadd.f32 %v2813_v50, %v2812_v47  ;;  %v2702_v28 = vmul.f32 %v6802_v53, %v7665_v16  ;;  %v7674_v50 = vld [vmem:[#allocation17_spill] sm:$0xff] }
 0x5c8   :  { %v4636_v52 = vpop.f32.mrf.mxu0  ;;  %4660 = vmatprep.mubr.msk.f32.mxu0 %vm141_vm0, %v2767_v26  ;;  %v2788_v5 = vadd.f32 %v2787_v35, %v2786_v22  ;;  %v2818_v23 = vsel %vm141_vm0, %v2685_v13, 0.0  ;;  %v2817_v4 = vsel %vm141_vm0, %v2669_v36, 0.0  ;;  %v2820_v42 = vsel %vm141_vm0, %v2701_v41, 0.0 }
 0x5c9   :  { %v2780_v39 = vsel %vm141_vm0, %v2711_v33, 0.0  ;;  %v2714_v44 = vmul.f32 %v4636_v52, %v7666_v48  ;;  %4661 = vmatmul.mubr.msk.f32.gmra.mxu0 %vm141_vm0, %v2774_v17  ;;  %v2819_v60 = vadd.f32 %v2818_v23, %v2817_v4  ;;  %v2827_v16 = vsel %vm141_vm0, %v2702_v28, 0.0  ;;  %v7669_v52 = vld [vmem:[#allocation10_spill] sm:$0xff] }
 0x5ca   :  { %v2781_v27 = vadd.f32 %v2780_v39, %v2779_v54  ;;  %v2626_v40 = vpop.f32.mrf.mxu0  ;;  %v2828_v18 = vadd.f32 %v2827_v16, %v7667_v11 }
 0x5cb   :  { %v2713_v1 = vmul.f32 %v2626_v40, %v7666_v48  ;;  %v2801_v30 = vsel %vm141_vm0, %v2714_v44, 0.0  ;;  %v2821_v57 = vadd.f32 %v2820_v42, %v2819_v60  ;;  %v7678_v60 = vld [vmem:[#allocation5_spill] sm:$0xff] }
 0x5cc   :  { %v4639_v15 = vpop.f32.mrf.mxu0  ;;  %4663 = vmatprep.mubr.msk.f32.mxu0 %vm141_vm0, %v2781_v27  ;;  %v2802_v25 = vadd.f32 %v2801_v30, %v2800_v21 }
 0x5cd   :  { %v2794_v0 = vsel %vm141_vm0, %v2713_v1, 0.0  ;;  %v2716_v43 = vmul.f32 %v4639_v15, %v7666_v48  ;;  %4664 = vmatmul.mubr.msk.f32.gmra.mxu0 %vm141_vm0, %v2788_v5 }
 0x5ce   :  { %v2795_v31 = vadd.f32 %v2794_v0, %v2793_v2  ;;  %v2636_v19 = vpop.f32.mrf.mxu0 }
 0x5cf   :  { %v2715_v7 = vmul.f32 %v2636_v19, %v7666_v48  ;;  %v2815_v32 = vsel %vm141_vm0, %v2716_v43, 0.0 }
 0x5d0   :  { %4666 = vmatprep.mubr.msk.f32.mxu0 %vm141_vm0, %v2795_v31  ;;  %v2816_v63 = vadd.f32 %v2815_v32, %v2814_v14  ;;  %v7676_v14 = vld [vmem:[#allocation3_spill] sm:$0xff] }
 0x5d1   :  { %v2808_v3 = vsel %vm141_vm0, %v2715_v7, 0.0  ;;  %4667 = vmatmul.mubr.msk.f32.gmra.mxu0 %vm141_vm0, %v2802_v25  ;;  %v7675_v7 = vld [vmem:[#allocation16_spill] sm:$0xff] }
 0x5d2   :  { %v2809_v56 = vadd.f32 %v2808_v3, %v2807_v10 }
 0x5d3   :  { %v4642_v29 = vpop.f32.mrf.mxu0 }
 0x5d4   :  { %v2718_v8 = vmul.f32 %v4642_v29, %v7666_v48  ;;  %4669 = vmatprep.mubr.msk.f32.mxu0 %vm141_vm0, %v2809_v56 }
 0x5d5   :  { %v2646_v53 = vpop.f32.mrf.mxu0  ;;  %4670 = vmatmul.mubr.msk.f32.gmra.mxu0 %vm141_vm0, %v2816_v63  ;;  %v7677_v63 = vld [vmem:[#allocation2_spill] sm:$0xff] }
 0x5d6   :  { %v2717_v9 = vmul.f32 %v2646_v53, %v7666_v48  ;;  %v2829_v51 = vsel %vm141_vm0, %v2718_v8, 0.0 }
 0x5d7   :  { %v2830_v62 = vadd.f32 %v2829_v51, %v2828_v18  ;;  %v7679_v51 = vld [vmem:[#allocation4_spill] sm:$0xff] }
 0x5d8   :  { %v2822_v26 = vsel %vm141_vm0, %v2717_v9, 0.0 }
 0x5d9   :  { %v2823_v46 = vadd.f32 %v2822_v26, %v2821_v57 }
 0x5db   :  { %4672 = vmatprep.mubr.msk.f32.mxu0 %vm141_vm0, %v2823_v46 }
 0x5dc   :  { %4673 = vmatmul.mubr.msk.f32.gmra.mxu0 %vm141_vm0, %v2830_v62  ;;  %v7680_v62 = vld [vmem:[#allocation7_spill] sm:$0xff] }
 0x67d   :  { %v4653_v17 = vpop.f32.mrf.mxu0 }
 0x67e   :  { %v2957_v48 = vadd.f32 %v4653_v17, %v6970_v55 }
 0x67f   :  { %v2951_v33 = vpop.f32.mrf.mxu0 }
 0x680   :  { %v6974_v22 = vadd.f32 %v2957_v48, %v7668_v12  ;;  %v2952_v54 = vadd.f32 %v6970_v55, %v2951_v33  ;;  %v7681_v12 = vld [vmem:[#allocation6_spill] sm:$0xff] }
 0x681   :  { %v4656_v35 = vpop.f32.mrf.mxu0 }
 0x682   :  { %v6978_v24 = vadd.f32 %v2952_v54, %v7669_v52  ;;  %v2967_v20 = vadd.f32 %v4656_v35, %v6970_v55  ;;  %v3049_v39 = vsel %vm141_vm0, %v6974_v22, 0.0 }
 0x683   :  { %3050 = vadd.xlane.f32.xlu1 %v3049_v39  ;;  %v2961_v44 = vpop.f32.mrf.mxu0 }
 0x684   :  { %v6984_v37 = vadd.f32 %v2967_v20, %v7670_v45  ;;  %v2962_v59 = vadd.f32 %v6970_v55, %v2961_v44  ;;  %v3046_v27 = vsel %vm141_vm0, %v6978_v24, 0.0  ;;  %v7682_v45 = vld [vmem:[#allocation9_spill] sm:$0xff] }
 0x685   :  { %v4659_v40 = vpop.f32.mrf.mxu0  ;;  %3047 = vadd.xlane.f32.xlu0 %v3046_v27 }
 0x686   :  { %v6990_v58 = vadd.f32 %v2962_v59, %v7671_v38  ;;  %v2977_v5 = vadd.f32 %v4659_v40, %v6970_v55  ;;  %v3055_v1 = vsel %vm141_vm0, %v6984_v37, 0.0  ;;  %v7683_v40 = vld [vmem:[#allocation8_spill] sm:$0xff] }
 0x687   :  { %3056 = vadd.xlane.f32.xlu1 %v3055_v1  ;;  %v2971_v34 = vpop.f32.mrf.mxu0 }
 0x688   :  { %v6996_v2 = vadd.f32 %v2977_v5, %v7672_v49  ;;  %v2972_v30 = vadd.f32 %v6970_v55, %v2971_v34  ;;  %v3052_v15 = vsel %vm141_vm0, %v6990_v58, 0.0  ;;  %v122_v34 = vld [vmem:[%s7527_s15 + $0x18] sm:$0xff]  ;;  %v121_v49 = vld [vmem:[%s7527_s15 + $0x10] sm:$0xff] }
 0x689   :  { %v4662_v21 = vpop.f32.mrf.mxu0  ;;  %3053 = vadd.xlane.f32.xlu0 %v3052_v15  ;;  %4675 = vmatprep.subr.mxu1 %v122_v34 }
 0x68a   :  { %v7002_v0 = vadd.f32 %v2972_v30, %v7673_v61  ;;  %v2987_v43 = vadd.f32 %v4662_v21, %v6970_v55  ;;  %v3061_v6 = vsel %vm141_vm0, %v6996_v2, 0.0  ;;  %4676 = vmatpush3.msra.mxu1 %v122_v34  ;;  %v119_v30 = vld [vmem:[%s7527_s15] sm:$0xff] }
 0x68b   :  { %3062 = vadd.xlane.f32.xlu1 %v3061_v6  ;;  %v2981_v13 = vpop.f32.mrf.mxu0  ;;  %4677 = vmatprep.subr.mxu1 %v121_v49 }
 0x68c   :  { %v7008_v31 = vadd.f32 %v2987_v43, %v7674_v50  ;;  %v2982_v19 = vadd.f32 %v6970_v55, %v2981_v13  ;;  %v3058_v47 = vsel %vm141_vm0, %v7002_v0, 0.0  ;;  %4678 = vmatpush3.msra.mxu1 %v121_v49 }
 0x68d   :  { %v4665_v25 = vpop.f32.mrf.mxu0  ;;  %3059 = vadd.xlane.f32.xlu0 %v3058_v47 }
 0x68e   :  { %v7014_v36 = vadd.f32 %v2982_v19, %v7675_v7  ;;  %v2997_v10 = vadd.f32 %v4665_v25, %v6970_v55  ;;  %v3067_v41 = vsel %vm141_vm0, %v7008_v31, 0.0 }
 0x68f   :  { %3068 = vadd.xlane.f32.xlu1 %v3067_v41  ;;  %v2991_v32 = vpop.f32.mrf.mxu0 }
 0x690   :  { %v7020_v28 = vadd.f32 %v2997_v10, %v7676_v14  ;;  %v2992_v3 = vadd.f32 %v6970_v55, %v2991_v32  ;;  %v3064_v23 = vsel %vm141_vm0, %v7014_v36, 0.0 }
 0x691   :  { %v4668_v56 = vpop.f32.mrf.mxu0  ;;  %3065 = vadd.xlane.f32.xlu0 %v3064_v23 }
 0x692   :  { %v7026_v29 = vadd.f32 %v2992_v3, %v7677_v63  ;;  %v3007_v4 = vadd.f32 %v4668_v56, %v6970_v55  ;;  %v3073_v42 = vsel %vm141_vm0, %v7020_v28, 0.0 }
 0x693   :  { %3074 = vadd.xlane.f32.xlu1 %v3073_v42  ;;  %v3001_v8 = vpop.f32.mrf.mxu0 }
 0x694   :  { %v7032_v16 = vadd.f32 %v3007_v4, %v7678_v60  ;;  %v3002_v53 = vadd.f32 %v6970_v55, %v3001_v8  ;;  %v3070_v9 = vsel %vm141_vm0, %v7026_v29, 0.0 }
 0x695   :  { %v4671_v57 = vpop.f32.mrf.mxu0  ;;  %3071 = vadd.xlane.f32.xlu0 %v3070_v9 }
 0x696   :  { %v7038_v11 = vadd.f32 %v3002_v53, %v7679_v51  ;;  %v3017_v18 = vadd.f32 %v4671_v57, %v6970_v55  ;;  %v3079_v26 = vsel %vm141_vm0, %v7032_v16, 0.0 }
 0x697   :  { %3080 = vadd.xlane.f32.xlu1 %v3079_v26  ;;  %v3011_v46 = vpop.f32.mrf.mxu0 }
 0x698   :  { %v7044_v17 = vadd.f32 %v3017_v18, %v7680_v62  ;;  %v3012_v48 = vadd.f32 %v6970_v55, %v3011_v46  ;;  %v3076_v33 = vsel %vm141_vm0, %v7038_v11, 0.0 }
 0x699   :  { %3077 = vadd.xlane.f32.xlu0 %v3076_v33 }
 0x69a   :  { %v7050_v54 = vadd.f32 %v3012_v48, %v7681_v12  ;;  %v3085_v35 = vsel %vm141_vm0, %v7044_v17, 0.0 }
 0x69b   :  { %3086 = vadd.xlane.f32.xlu1 %v3085_v35 }
 0x69c   :  { %v4674_v52 = vpop.f32.mrf.mxu0  ;;  %v3082_v20 = vsel %vm141_vm0, %v7050_v54, 0.0 }
 0x69d   :  { %v3027_v39 = vadd.f32 %v4674_v52, %v6970_v55  ;;  %3083 = vadd.xlane.f32.xlu0 %v3082_v20 }
 0x69e   :  { %v3021_v44 = vpop.f32.mrf.mxu0 }
 0x69f   :  { %v7058_v59 = vadd.f32 %v3027_v39, %v7682_v45  ;;  %v3022_v27 = vadd.f32 %v6970_v55, %v3021_v44  ;;  %v120_v55 = vld [vmem:[%s7527_s15 + $0x8] sm:$0xff] }
 0x6a0   :  { %4679 = vmatprep.subr.mxu1 %v120_v55 }
 0x6a1   :  { %v7062_v38 = vadd.f32 %v3022_v27, %v7683_v40  ;;  %v3091_v5 = vsel %vm141_vm0, %v7058_v59, 0.0  ;;  %4680 = vmatpush3.msra.mxu1 %v120_v55 }
 0x6a2   :  { %3092 = vadd.xlane.f32.xlu1 %v3091_v5  ;;  %4681 = vmatprep.subr.mxu1 %v119_v30 }
 0x6a3   :  { %v3088_v1 = vsel %vm141_vm0, %v7062_v38, 0.0  ;;  %4682 = vmatpush3.msra.mxu1 %v119_v30 }
 0x6a4   :  { %3089 = vadd.xlane.f32.xlu0 %v3088_v1 }
 0x70c   :  { %v3051_v15 = vpop.xlane.xlu1 %3050 }
 0x70d   :  { %v3095_v21 = vmul.f32 0.03125, %v3051_v15 }
 0x70e   :  { %v3048_v61 = vpop.xlane.xlu0 %3047 }
 0x70f   :  { %v7081_v43 = vsub.f32 %v6974_v22, %v3095_v21  ;;  %v3094_v6 = vmul.f32 0.03125, %v3048_v61 }
 0x710   :  { %v3057_v13 = vpop.xlane.xlu1 %3056 }
 0x711   :  { %v7084_v50 = vsub.f32 %v6978_v24, %v3094_v6  ;;  %v3097_v19 = vmul.f32 0.03125, %v3057_v13  ;;  %v3127_v47 = vmul.f32 %v7081_v43, %v7081_v43 }
 0x712   :  { %v3054_v25 = vpop.xlane.xlu0 %3053 }
 0x713   :  { %v7089_v7 = vsub.f32 %v6984_v37, %v3097_v19  ;;  %v3096_v10 = vmul.f32 0.03125, %v3054_v25  ;;  %v3145_v41 = vsel %vm141_vm0, %v3127_v47, 0.0  ;;  %v3126_v32 = vmul.f32 %v7084_v50, %v7084_v50 }
 0x714   :  { %v3063_v14 = vpop.xlane.xlu1 %3062  ;;  %3146 = vadd.xlane.f32.xlu1 %v3145_v41 }
 0x715   :  { %v7095_v3 = vsub.f32 %v6990_v58, %v3096_v10  ;;  %v3099_v23 = vmul.f32 0.03125, %v3063_v14  ;;  %v3142_v56 = vsel %vm141_vm0, %v3126_v32, 0.0  ;;  %v3129_v63 = vmul.f32 %v7089_v7, %v7089_v7 }
 0x716   :  { %v3060_v4 = vpop.xlane.xlu0 %3059  ;;  %3143 = vadd.xlane.f32.xlu0 %v3142_v56 }
 0x717   :  { %v7101_v42 = vsub.f32 %v6996_v2, %v3099_v23  ;;  %v3098_v8 = vmul.f32 0.03125, %v3060_v4  ;;  %v3151_v60 = vsel %vm141_vm0, %v3129_v63, 0.0  ;;  %v3128_v53 = vmul.f32 %v7095_v3, %v7095_v3 }
 0x718   :  { %v3069_v9 = vpop.xlane.xlu1 %3068  ;;  %3152 = vadd.xlane.f32.xlu1 %v3151_v60 }
 0x719   :  { %v7107_v57 = vsub.f32 %v7002_v0, %v3098_v8  ;;  %v3101_v51 = vmul.f32 0.03125, %v3069_v9  ;;  %v3148_v18 = vsel %vm141_vm0, %v3128_v53, 0.0  ;;  %v3131_v26 = vmul.f32 %v7101_v42, %v7101_v42 }
 0x71a   :  { %v3066_v46 = vpop.xlane.xlu0 %3065  ;;  %3149 = vadd.xlane.f32.xlu0 %v3148_v18 }
 0x71b   :  { %v7113_v62 = vsub.f32 %v7008_v31, %v3101_v51  ;;  %v3100_v48 = vmul.f32 0.03125, %v3066_v46  ;;  %v3157_v33 = vsel %vm141_vm0, %v3131_v26, 0.0  ;;  %v3130_v12 = vmul.f32 %v7107_v57, %v7107_v57 }
 0x71c   :  { %v3075_v35 = vpop.xlane.xlu1 %3074  ;;  %3158 = vadd.xlane.f32.xlu1 %v3157_v33 }
 0x71d   :  { %v7119_v52 = vsub.f32 %v7014_v36, %v3100_v48  ;;  %v3103_v20 = vmul.f32 0.03125, %v3075_v35  ;;  %v3154_v39 = vsel %vm141_vm0, %v3130_v12, 0.0  ;;  %v3133_v44 = vmul.f32 %v7113_v62, %v7113_v62 }
 0x71e   :  { %v3072_v45 = vpop.xlane.xlu0 %3071  ;;  %3155 = vadd.xlane.f32.xlu0 %v3154_v39 }
 0x71f   :  { %v7125_v27 = vsub.f32 %v7020_v28, %v3103_v20  ;;  %v3102_v40 = vmul.f32 0.03125, %v3072_v45  ;;  %v3163_v5 = vsel %vm141_vm0, %v3133_v44, 0.0  ;;  %v3132_v1 = vmul.f32 %v7119_v52, %v7119_v52 }
 0x720   :  { %v3081_v34 = vpop.xlane.xlu1 %3080  ;;  %3164 = vadd.xlane.f32.xlu1 %v3163_v5 }
 0x721   :  { %v7131_v49 = vsub.f32 %v7026_v29, %v3102_v40  ;;  %v3105_v55 = vmul.f32 0.03125, %v3081_v34  ;;  %v3160_v30 = vsel %vm141_vm0, %v3132_v1, 0.0  ;;  %v3135_v15 = vmul.f32 %v7125_v27, %v7125_v27 }
 0x722   :  { %v3078_v21 = vpop.xlane.xlu0 %3077  ;;  %3161 = vadd.xlane.f32.xlu0 %v3160_v30 }
 0x723   :  { %v7137_v61 = vsub.f32 %v7032_v16, %v3105_v55  ;;  %v3104_v6 = vmul.f32 0.03125, %v3078_v21  ;;  %v3169_v13 = vsel %vm141_vm0, %v3135_v15, 0.0  ;;  %v3134_v19 = vmul.f32 %v7131_v49, %v7131_v49 }
 0x724   :  { %v3087_v47 = vpop.xlane.xlu1 %3086  ;;  %3170 = vadd.xlane.f32.xlu1 %v3169_v13 }
 0x725   :  { %v7143_v25 = vsub.f32 %v7038_v11, %v3104_v6  ;;  %v3107_v10 = vmul.f32 0.03125, %v3087_v47  ;;  %v3166_v41 = vsel %vm141_vm0, %v3134_v19, 0.0  ;;  %v3137_v32 = vmul.f32 %v7137_v61, %v7137_v61 }
 0x726   :  { %v3084_v14 = vpop.xlane.xlu0 %3083  ;;  %3167 = vadd.xlane.f32.xlu0 %v3166_v41 }
 0x727   :  { %v7149_v23 = vsub.f32 %v7044_v17, %v3107_v10  ;;  %v3106_v56 = vmul.f32 0.03125, %v3084_v14  ;;  %v3175_v63 = vsel %vm141_vm0, %v3137_v32, 0.0  ;;  %v3136_v4 = vmul.f32 %v7143_v25, %v7143_v25 }
 0x728   :  { %3176 = vadd.xlane.f32.xlu1 %v3175_v63 }
 0x729   :  { %v7155_v8 = vsub.f32 %v7050_v54, %v3106_v56  ;;  %v3172_v60 = vsel %vm141_vm0, %v3136_v4, 0.0  ;;  %v3139_v53 = vmul.f32 %v7149_v23, %v7149_v23 }
 0x72a   :  { %3173 = vadd.xlane.f32.xlu0 %v3172_v60 }
 0x72b   :  { %v3093_v9 = vpop.xlane.xlu1 %3092  ;;  %v3181_v51 = vsel %vm141_vm0, %v3139_v53, 0.0  ;;  %v3138_v18 = vmul.f32 %v7155_v8, %v7155_v8 }
 0x72c   :  { %v3109_v26 = vmul.f32 0.03125, %v3093_v9  ;;  %3182 = vadd.xlane.f32.xlu1 %v3181_v51 }
 0x72d   :  { %v3090_v46 = vpop.xlane.xlu0 %3089  ;;  %v3178_v48 = vsel %vm141_vm0, %v3138_v18, 0.0 }
 0x72e   :  { %v7165_v33 = vsub.f32 %v7058_v59, %v3109_v26  ;;  %v3108_v12 = vmul.f32 0.03125, %v3090_v46  ;;  %3179 = vadd.xlane.f32.xlu0 %v3178_v48 }
 0x730   :  { %v7168_v35 = vsub.f32 %v7062_v38, %v3108_v12  ;;  %v3141_v20 = vmul.f32 %v7165_v33, %v7165_v33 }
 0x732   :  { %v3187_v39 = vsel %vm141_vm0, %v3141_v20, 0.0  ;;  %v3140_v44 = vmul.f32 %v7168_v35, %v7168_v35  ;;  %v7179_v20 = vld [vmem:[%s7528_s13] ss:$0 sm:$0xff] }
 0x733   :  { %3188 = vadd.xlane.f32.xlu1 %v3187_v39 }
 0x734   :  { %v3184_v45 = vsel %vm141_vm0, %v3140_v44, 0.0 }
 0x735   :  { %3185 = vadd.xlane.f32.xlu0 %v3184_v45 }
 0x79d   :  { %v3147_v40 = vpop.xlane.xlu1 %3146 }
 0x79e   :  { %v3191_v5 = vmul.f32 0.03125, %v3147_v40 }
 0x79f   :  { %v3144_v1 = vpop.xlane.xlu0 %3143 }
 0x7a0   :  { %v3207_v34 = vadd.f32 1e-05, %v3191_v5  ;;  %v3190_v55 = vmul.f32 0.03125, %v3144_v1 }
 0x7a1   :  { %v3153_v30 = vpop.xlane.xlu1 %3152 }
 0x7a2   :  { %5060 = vrsqrt.f32 %v3207_v34  ;;  %v3206_v15 = vadd.f32 1e-05, %v3190_v55  ;;  %v3193_v21 = vmul.f32 0.03125, %v3153_v30 }
 0x7a3   :  { %v3150_v6 = vpop.xlane.xlu0 %3149 }
 0x7a4   :  { %5062 = vrsqrt.f32 %v3206_v15  ;;  %v3209_v13 = vadd.f32 1e-05, %v3193_v21  ;;  %v3192_v19 = vmul.f32 0.03125, %v3150_v6 }
 0x7a5   :  { %v3159_v47 = vpop.xlane.xlu1 %3158 }
 0x7a6   :  { %5064 = vrsqrt.f32 %v3209_v13  ;;  %v3208_v10 = vadd.f32 1e-05, %v3192_v19  ;;  %v3195_v41 = vmul.f32 0.03125, %v3159_v47 }
 0x7a7   :  { %v3156_v32 = vpop.xlane.xlu0 %3155 }
 0x7a8   :  { %5066 = vrsqrt.f32 %v3208_v10  ;;  %v3211_v14 = vadd.f32 1e-05, %v3195_v41  ;;  %v3194_v56 = vmul.f32 0.03125, %v3156_v32 }
 0x7a9   :  { %v3165_v63 = vpop.xlane.xlu1 %3164 }
 0x7aa   :  { %5068 = vrsqrt.f32 %v3211_v14  ;;  %v3210_v4 = vadd.f32 1e-05, %v3194_v56  ;;  %v3197_v60 = vmul.f32 0.03125, %v3165_v63 }
 0x7ab   :  { %v3162_v53 = vpop.xlane.xlu0 %3161 }
 0x7ac   :  { %5070 = vrsqrt.f32 %v3210_v4  ;;  %v3213_v9 = vadd.f32 1e-05, %v3197_v60  ;;  %v3196_v51 = vmul.f32 0.03125, %v3162_v53 }
 0x7ad   :  { %v3171_v18 = vpop.xlane.xlu1 %3170 }
 0x7ae   :  { %5072 = vrsqrt.f32 %v3213_v9  ;;  %v3212_v26 = vadd.f32 1e-05, %v3196_v51  ;;  %v3199_v46 = vmul.f32 0.03125, %v3171_v18 }
 0x7af   :  { %v5061_v48 = vpop.eup %5060  ;;  %v3168_v12 = vpop.xlane.xlu0 %3167 }
 0x7b0   :  { %v3239_v39 = vmul.f32 %v5061_v48, %v7081_v43  ;;  %5074 = vrsqrt.f32 %v3212_v26  ;;  %v3215_v44 = vadd.f32 1e-05, %v3199_v46  ;;  %v3198_v45 = vmul.f32 0.03125, %v3168_v12  ;;  %v7187_v43 = vld [vmem:[%s7529_s14] ss:$0 sm:$0xff] }
 0x7b1   :  { %v5063_v40 = vpop.eup %5062  ;;  %v3177_v5 = vpop.xlane.xlu1 %3176 }
 0x7b2   :  { %5076 = vrsqrt.f32 %v3215_v44  ;;  %v3214_v1 = vadd.f32 1e-05, %v3198_v45  ;;  %v3201_v34 = vmul.f32 0.03125, %v3177_v5  ;;  %v3261_v30 = vmul.f32 %v7179_v20, %v3239_v39 }
 0x7b3   :  { %v5065_v55 = vpop.eup %5064  ;;  %v3174_v15 = vpop.xlane.xlu0 %3173  ;;  %v3238_v21 = vmul.f32 %v5063_v40, %v7084_v50 }
 0x7b4   :  { %5078 = vrsqrt.f32 %v3214_v1  ;;  %v3217_v6 = vadd.f32 1e-05, %v3201_v34  ;;  %v3200_v13 = vmul.f32 0.03125, %v3174_v15  ;;  %v3241_v41 = vmul.f32 %v5065_v55, %v7089_v7 }
 0x7b5   :  { %v5067_v19 = vpop.eup %5066  ;;  %v3183_v47 = vpop.xlane.xlu1 %3182  ;;  %v3260_v10 = vmul.f32 %v7179_v20, %v3238_v21  ;;  %v3283_v60 = vadd.f32 %v7187_v43, %v3261_v30 }
 0x7b6   :  { %5080 = vrsqrt.f32 %v3217_v6  ;;  %v3216_v32 = vadd.f32 1e-05, %v3200_v13  ;;  %v3203_v14 = vmul.f32 0.03125, %v3183_v47  ;;  %v3240_v56 = vmul.f32 %v5067_v19, %v7095_v3 }
 0x7b7   :  { %v5069_v50 = vpop.eup %5068  ;;  %v3180_v63 = vpop.xlane.xlu0 %3179  ;;  %v3282_v4 = vadd.f32 %v7187_v43, %v3260_v10  ;;  %v3263_v53 = vmul.f32 %v7179_v20, %v3241_v41 }
 0x7b8   :  { %5082 = vrsqrt.f32 %v3216_v32  ;;  %v3219_v9 = vadd.f32 1e-05, %v3203_v14  ;;  %v3202_v51 = vmul.f32 0.03125, %v3180_v63  ;;  %v3262_v18 = vmul.f32 %v7179_v20, %v3240_v56 }
 0x7b9   :  { %v5071_v26 = vpop.eup %5070  ;;  %4683 = vmatprep.mubr.msk.f32.mxu1 %vm141_vm0, %v3282_v4  ;;  %v3243_v7 = vmul.f32 %v5069_v50, %v7101_v42  ;;  %v3285_v39 = vadd.f32 %v7187_v43, %v3263_v53 }
 0x7ba   :  { %5084 = vrsqrt.f32 %v3219_v9  ;;  %v3218_v3 = vadd.f32 1e-05, %v3202_v51  ;;  %4684 = vmatmul.mubr.msk.f32.vlgmr.msra.gmra.mxu1 %vm141_vm0, %v3283_v60  ;;  %v3284_v46 = vadd.f32 %v7187_v43, %v3262_v18  ;;  %v3242_v48 = vmul.f32 %v5071_v26, %v7107_v57 }
 0x7bb   :  { %v5073_v12 = vpop.eup %5072  ;;  %v3265_v40 = vmul.f32 %v7179_v20, %v3243_v7 }
 0x7bc   :  { %5086 = vrsqrt.f32 %v3218_v3  ;;  %v3189_v44 = vpop.xlane.xlu1 %3188  ;;  %4686 = vmatprep.mubr.msk.f32.mxu1 %vm141_vm0, %v3284_v46  ;;  %v3264_v45 = vmul.f32 %v7179_v20, %v3242_v48  ;;  %v3245_v42 = vmul.f32 %v5073_v12, %v7113_v62 }
 0x7bd   :  { %v5075_v5 = vpop.eup %5074  ;;  %v3205_v1 = vmul.f32 0.03125, %v3189_v44  ;;  %v3287_v6 = vadd.f32 %v7187_v43, %v3265_v40 }
 0x7be   :  { %4687 = vmatmul.mubr.msk.f32.gmra.mxu1 %vm141_vm0, %v3285_v39  ;;  %v3186_v34 = vpop.xlane.xlu0 %3185  ;;  %v3286_v57 = vadd.f32 %v7187_v43, %v3264_v45  ;;  %v3244_v55 = vmul.f32 %v5075_v5, %v7119_v52  ;;  %v3267_v62 = vmul.f32 %v7179_v20, %v3245_v42 }
 0x7bf   :  { %v5077_v30 = vpop.eup %5076  ;;  %v3221_v15 = vadd.f32 1e-05, %v3205_v1  ;;  %v3204_v21 = vmul.f32 0.03125, %v3186_v34  ;;  %v135_v1 = vld [vmem:[%s7530_s17 + $0x58] sm:$0xff]  ;;  %v134_v34 = vld [vmem:[%s7530_s17 + $0x50] sm:$0xff] }
 0x7c0   :  { %4689 = vmatprep.mubr.msk.f32.mxu1 %vm141_vm0, %v3286_v57  ;;  %v3266_v13 = vmul.f32 %v7179_v20, %v3244_v55  ;;  %v3247_v19 = vmul.f32 %v5077_v30, %v7125_v27  ;;  %v3289_v14 = vadd.f32 %v7187_v43, %v3267_v62  ;;  %v133_v57 = vld [vmem:[%s7530_s17 + $0x48] sm:$0xff]  ;;  %v132_v55 = vld [vmem:[%s7530_s17 + $0x40] sm:$0xff]  ;;  %v131_v30 = vld [vmem:[%s7530_s17 + $0x38] sm:$0xff] }
 0x7c1   :  { %v5079_v47 = vpop.eup %5078  ;;  %5088 = vrsqrt.f32 %v3221_v15  ;;  %v3220_v10 = vadd.f32 1e-05, %v3204_v21  ;;  %v130_v15 = vld [vmem:[%s7530_s17 + $0x30] sm:$0xff]  ;;  %v129_v21 = vld [vmem:[%s7530_s17 + $0x28] sm:$0xff] }
 0x7c2   :  { %4690 = vmatmul.mubr.msk.f32.gmra.mxu1 %vm141_vm0, %v3287_v6  ;;  %v3288_v52 = vadd.f32 %v7187_v43, %v3266_v13  ;;  %v3246_v41 = vmul.f32 %v5079_v47, %v7131_v49  ;;  %v3269_v50 = vmul.f32 %v7179_v20, %v3247_v19  ;;  %v128_v6 = vld [vmem:[%s7530_s17 + $0x20] sm:$0xff]  ;;  %v127_v13 = vld [vmem:[%s7530_s17 + $0x18] sm:$0xff]  ;;  %v126_v62 = vld [vmem:[%s7530_s17 + $0x10] sm:$0xff] }
 0x7c3   :  { %v5081_v32 = vpop.eup %5080  ;;  %5090 = vrsqrt.f32 %v3220_v10  ;;  %v125_v19 = vld [vmem:[%s7530_s17 + $0x8] sm:$0xff]  ;;  %v124_v47 = vld [vmem:[%s7530_s17] sm:$0xff] }
 0x7c4   :  { %4692 = vmatprep.mubr.msk.f32.mxu1 %vm141_vm0, %v3288_v52  ;;  %v3268_v56 = vmul.f32 %v7179_v20, %v3246_v41  ;;  %v3249_v27 = vmul.f32 %v5081_v32, %v7137_v61  ;;  %v3291_v53 = vadd.f32 %v7187_v43, %v3269_v50  ;;  %v7301_v10 = vld [vmem:[%s7531_s16] ss:$0 sm:$0xff] }
 0x7c5   :  { %v5083_v63 = vpop.eup %5082 }
 0x7c6   :  { %4693 = vmatmul.mubr.msk.f32.gmra.mxu1 %vm141_vm0, %v3289_v14  ;;  %v3290_v4 = vadd.f32 %v7187_v43, %v3268_v56  ;;  %v3248_v60 = vmul.f32 %v5083_v63, %v7143_v25  ;;  %v3271_v51 = vmul.f32 %v7179_v20, %v3249_v27 }
 0x7c7   :  { %v5085_v49 = vpop.eup %5084 }
 0x7c8   :  { %4695 = vmatprep.mubr.msk.f32.mxu1 %vm141_vm0, %v3290_v4  ;;  %v3270_v9 = vmul.f32 %v7179_v20, %v3248_v60  ;;  %v3251_v18 = vmul.f32 %v5085_v49, %v7149_v23  ;;  %v3293_v25 = vadd.f32 %v7187_v43, %v3271_v51 }
 0x7c9   :  { %v5087_v26 = vpop.eup %5086 }
 0x7ca   :  { %4696 = vmatmul.mubr.msk.f32.gmra.mxu1 %vm141_vm0, %v3291_v53  ;;  %v3292_v61 = vadd.f32 %v7187_v43, %v3270_v9  ;;  %v3250_v7 = vmul.f32 %v5087_v26, %v7155_v8  ;;  %v3273_v46 = vmul.f32 %v7179_v20, %v3251_v18 }
 0x7cc   :  { %4698 = vmatprep.mubr.msk.f32.mxu1 %vm141_vm0, %v3292_v61  ;;  %v3272_v3 = vmul.f32 %v7179_v20, %v3250_v7  ;;  %v3295_v8 = vadd.f32 %v7187_v43, %v3273_v46 }
 0x7ce   :  { %v5089_v48 = vpop.eup %5088  ;;  %4699 = vmatmul.mubr.msk.f32.gmra.mxu1 %vm141_vm0, %v3293_v25  ;;  %v3294_v23 = vadd.f32 %v7187_v43, %v3272_v3 }
 0x7cf   :  { %v3253_v12 = vmul.f32 %v5089_v48, %v7165_v33  ;;  %v139_v33 = vld [vmem:[%s7530_s17 + $0x78] sm:$0xff] }
 0x7d0   :  { %v5091_v39 = vpop.eup %5090  ;;  %4701 = vmatprep.mubr.msk.f32.mxu1 %vm141_vm0, %v3294_v23  ;;  %4707 = vmatprep.subr.mxu0 %v139_v33 }
 0x7d1   :  { %v3252_v44 = vmul.f32 %v5091_v39, %v7168_v35  ;;  %v3275_v45 = vmul.f32 %v7179_v20, %v3253_v12  ;;  %4708 = vmatpush3.msra.mxu0 %v139_v33  ;;  %v138_v35 = vld [vmem:[%s7530_s17 + $0x70] sm:$0xff] }
 0x7d2   :  { %4702 = vmatmul.mubr.msk.f32.gmra.mxu1 %vm141_vm0, %v3295_v8  ;;  %4709 = vmatprep.subr.mxu0 %v138_v35 }
 0x7d3   :  { %v3274_v40 = vmul.f32 %v7179_v20, %v3252_v44  ;;  %v3297_v5 = vadd.f32 %v7187_v43, %v3275_v45  ;;  %4710 = vmatpush3.msra.mxu0 %v138_v35  ;;  %v137_v20 = vld [vmem:[%s7530_s17 + $0x68] sm:$0xff] }
 0x7d4   :  { %4711 = vmatprep.subr.mxu0 %v137_v20 }
 0x7d5   :  { %v3296_v42 = vadd.f32 %v7187_v43, %v3274_v40  ;;  %4712 = vmatpush3.msra.mxu0 %v137_v20  ;;  %v136_v43 = vld [vmem:[%s7530_s17 + $0x60] sm:$0xff] }
 0x7d6   :  { %4713 = vmatprep.subr.mxu0 %v136_v43 }
 0x7d7   :  { %4704 = vmatprep.mubr.msk.f32.mxu1 %vm141_vm0, %v3296_v42  ;;  %4714 = vmatpush3.msra.mxu0 %v136_v43 }
 0x7d8   :  { %4705 = vmatmul.mubr.msk.f32.gmra.mxu1 %vm141_vm0, %v3297_v5  ;;  %4715 = vmatprep.subr.mxu0 %v135_v1 }
 0x7d9   :  { %4716 = vmatpush3.msra.mxu0 %v135_v1 }
 0x7da   :  { %4717 = vmatprep.subr.mxu0 %v134_v34 }
 0x7db   :  { %4718 = vmatpush3.msra.mxu0 %v134_v34 }
 0x7dc   :  { %4719 = vmatprep.subr.mxu0 %v133_v57 }
 0x7dd   :  { %4720 = vmatpush3.msra.mxu0 %v133_v57 }
 0x7de   :  { %4721 = vmatprep.subr.mxu0 %v132_v55 }
 0x7df   :  { %4722 = vmatpush3.msra.mxu0 %v132_v55 }
 0x7e0   :  { %4723 = vmatprep.subr.mxu0 %v131_v30 }
 0x7e1   :  { %4724 = vmatpush3.msra.mxu0 %v131_v30 }
 0x7e2   :  { %4725 = vmatprep.subr.mxu0 %v130_v15 }
 0x7e3   :  { %4726 = vmatpush3.msra.mxu0 %v130_v15 }
 0x7e4   :  { %4727 = vmatprep.subr.mxu0 %v129_v21 }
 0x7e5   :  { %4728 = vmatpush3.msra.mxu0 %v129_v21 }
 0x7e6   :  { %4729 = vmatprep.subr.mxu0 %v128_v6 }
 0x7e7   :  { %4730 = vmatpush3.msra.mxu0 %v128_v6 }
 0x7e8   :  { %4731 = vmatprep.subr.mxu0 %v127_v13 }
 0x7e9   :  { %4732 = vmatpush3.msra.mxu0 %v127_v13 }
 0x7ea   :  { %4733 = vmatprep.subr.mxu0 %v126_v62 }
 0x7eb   :  { %4734 = vmatpush3.msra.mxu0 %v126_v62 }
 0x7ec   :  { %4735 = vmatprep.subr.mxu0 %v125_v19 }
 0x7ed   :  { %4736 = vmatpush3.msra.mxu0 %v125_v19 }
 0x7ee   :  { %4737 = vmatprep.subr.mxu0 %v124_v47 }
 0x7ef   :  { %4738 = vmatpush3.msra.mxu0 %v124_v47 }
 0x87a   :  { %v4685_v52 = vpop.f32.mrf.mxu1 }
 0x87b   :  { %v7304_v41 = vadd.f32 %v4685_v52, %v7301_v10 }
 0x87c   :  { %v3418_v32 = vpop.f32.mrf.mxu1 }
 0x87d   :  { %v3514_v14 = vmul.f32 0.044715, %v7304_v41  ;;  %v7308_v56 = vadd.f32 %v7301_v10, %v3418_v32 }
 0x87e   :  { %v4688_v50 = vpop.f32.mrf.mxu1 }
 0x87f   :  { %v3530_v27 = vmul.f32 %v3514_v14, %v7304_v41  ;;  %v3513_v63 = vmul.f32 0.044715, %v7308_v56  ;;  %v7313_v4 = vadd.f32 %v4688_v50, %v7301_v10 }
 0x880   :  { %v3428_v60 = vpop.f32.mrf.mxu1 }
 0x881   :  { %v3546_v49 = vmul.f32 %v3530_v27, %v7304_v41  ;;  %v3529_v53 = vmul.f32 %v3513_v63, %v7308_v56  ;;  %v3516_v9 = vmul.f32 0.044715, %v7313_v4  ;;  %v7319_v51 = vadd.f32 %v7301_v10, %v3428_v60 }
 0x882   :  { %v4691_v18 = vpop.f32.mrf.mxu1 }
 0x883   :  { %v3562_v26 = vadd.f32 %v3546_v49, %v7304_v41  ;;  %v3532_v61 = vmul.f32 %v3516_v9, %v7313_v4  ;;  %v3515_v7 = vmul.f32 0.044715, %v7319_v51  ;;  %v7325_v25 = vadd.f32 %v4691_v18, %v7301_v10 }
 0x884   :  { %v3438_v3 = vpop.f32.mrf.mxu1  ;;  %v3545_v46 = vmul.f32 %v3529_v53, %v7308_v56 }
 0x885   :  { %v3578_v48 = vmul.f32 0.7978846, %v3562_v26  ;;  %v3531_v23 = vmul.f32 %v3515_v7, %v7319_v51  ;;  %v3518_v12 = vmul.f32 0.044715, %v7325_v25  ;;  %v7331_v39 = vadd.f32 %v7301_v10, %v3438_v3 }
 0x886   :  { %v4694_v8 = vpop.f32.mrf.mxu1  ;;  %v3561_v44 = vadd.f32 %v3545_v46, %v7308_v56  ;;  %v3548_v45 = vmul.f32 %v3532_v61, %v7313_v4 }
 0x887   :  { %5092 = vtanh.f32 %v3578_v48  ;;  %v3534_v40 = vmul.f32 %v3518_v12, %v7325_v25  ;;  %v3517_v42 = vmul.f32 0.044715, %v7331_v39  ;;  %v7338_v5 = vadd.f32 %v4694_v8, %v7301_v10 }
 0x888   :  { %v3448_v33 = vpop.f32.mrf.mxu1  ;;  %v3577_v35 = vmul.f32 0.7978846, %v3561_v44  ;;  %v3547_v20 = vmul.f32 %v3531_v23, %v7319_v51  ;;  %v3564_v43 = vadd.f32 %v3548_v45, %v7313_v4  ;;  %v3498_v44 = vmul.f32 0.5, %v7304_v41 }
 0x889   :  { %v3533_v1 = vmul.f32 %v3517_v42, %v7331_v39  ;;  %v3520_v34 = vmul.f32 0.044715, %v7338_v5  ;;  %v7345_v57 = vadd.f32 %v7301_v10, %v3448_v33  ;;  %v3550_v55 = vmul.f32 %v3534_v40, %v7325_v25 }
 0x88a   :  { %v4697_v30 = vpop.f32.mrf.mxu1  ;;  %5094 = vtanh.f32 %v3577_v35  ;;  %v3563_v15 = vadd.f32 %v3547_v20, %v7319_v51  ;;  %v3580_v21 = vmul.f32 0.7978846, %v3564_v43 }
 0x88b   :  { %v3536_v6 = vmul.f32 %v3520_v34, %v7338_v5  ;;  %v3519_v13 = vmul.f32 0.044715, %v7345_v57  ;;  %v7352_v62 = vadd.f32 %v4697_v30, %v7301_v10  ;;  %v3549_v19 = vmul.f32 %v3533_v1, %v7331_v39 }
 0x88c   :  { %v3458_v47 = vpop.f32.mrf.mxu1  ;;  %v3579_v52 = vmul.f32 0.7978846, %v3563_v15  ;;  %5096 = vtanh.f32 %v3580_v21  ;;  %v3566_v32 = vadd.f32 %v3550_v55, %v7325_v25  ;;  %v3497_v55 = vmul.f32 0.5, %v7308_v56 }
 0x88d   :  { %v3535_v14 = vmul.f32 %v3519_v13, %v7345_v57  ;;  %v3522_v50 = vmul.f32 0.044715, %v7352_v62  ;;  %v7359_v27 = vadd.f32 %v7301_v10, %v3458_v47  ;;  %v3565_v63 = vadd.f32 %v3549_v19, %v7331_v39 }
 0x88e   :  { %v4700_v60 = vpop.f32.mrf.mxu1  ;;  %5098 = vtanh.f32 %v3579_v52  ;;  %v3582_v49 = vmul.f32 0.7978846, %v3566_v32  ;;  %v3552_v53 = vmul.f32 %v3536_v6, %v7338_v5 }
 0x88f   :  { %v3538_v9 = vmul.f32 %v3522_v50, %v7352_v62  ;;  %v3521_v18 = vmul.f32 0.044715, %v7359_v27  ;;  %v7366_v26 = vadd.f32 %v4700_v60, %v7301_v10  ;;  %v3581_v61 = vmul.f32 0.7978846, %v3565_v63 }
 0x890   :  { %v3468_v7 = vpop.f32.mrf.mxu1  ;;  %5100 = vtanh.f32 %v3582_v49  ;;  %v3551_v3 = vmul.f32 %v3535_v14, %v7345_v57  ;;  %v3568_v46 = vadd.f32 %v3552_v53, %v7338_v5 }
 0x891   :  { %v3554_v48 = vmul.f32 %v3538_v9, %v7352_v62  ;;  %v3537_v23 = vmul.f32 %v3521_v18, %v7359_v27  ;;  %v3524_v12 = vmul.f32 0.044715, %v7366_v26  ;;  %v7374_v8 = vadd.f32 %v7301_v10, %v3468_v7 }
 0x892   :  { %v4703_v45 = vpop.f32.mrf.mxu1  ;;  %5102 = vtanh.f32 %v3581_v61  ;;  %v3567_v40 = vadd.f32 %v3551_v3, %v7345_v57  ;;  %v3584_v42 = vmul.f32 0.7978846, %v3568_v46 }
 0x893   :  { %v3570_v33 = vadd.f32 %v3554_v48, %v7352_v62  ;;  %v3540_v35 = vmul.f32 %v3524_v12, %v7366_v26  ;;  %v3523_v20 = vmul.f32 0.044715, %v7374_v8  ;;  %v7382_v43 = vadd.f32 %v4703_v45, %v7301_v10 }
 0x894   :  { %v5093_v1 = vpop.eup %5092  ;;  %v3478_v34 = vpop.f32.mrf.mxu1  ;;  %v3583_v30 = vmul.f32 0.7978846, %v3567_v40  ;;  %5104 = vtanh.f32 %v3584_v42  ;;  %v3553_v41 = vmul.f32 %v3537_v23, %v7359_v27 }
 0x895   :  { %v3556_v15 = vmul.f32 %v3540_v35, %v7366_v26  ;;  %v3539_v21 = vmul.f32 %v3523_v20, %v7374_v8  ;;  %v3526_v6 = vmul.f32 0.044715, %v7382_v43  ;;  %v7390_v13 = vadd.f32 %v7301_v10, %v3478_v34 }
 0x896   :  { %v3610_v19 = vadd.f32 1.0, %v5093_v1  ;;  %5106 = vtanh.f32 %v3583_v30  ;;  %v3569_v47 = vadd.f32 %v3553_v41, %v7359_v27  ;;  %v3586_v52 = vmul.f32 0.7978846, %v3570_v33 }
 0x897   :  { %v5095_v32 = vpop.eup %5094  ;;  %v3572_v56 = vadd.f32 %v3556_v15, %v7366_v26  ;;  %v3542_v14 = vmul.f32 %v3526_v6, %v7382_v43  ;;  %v3525_v50 = vmul.f32 0.044715, %v7390_v13  ;;  %v3555_v63 = vmul.f32 %v3539_v21, %v7374_v8 }
 0x898   :  { %v4706_v60 = vpop.f32.mrf.mxu1  ;;  %v3609_v49 = vadd.f32 1.0, %v5095_v32  ;;  %v3626_v53 = vmul.f32 %v3610_v19, %v3498_v44  ;;  %v3585_v9 = vmul.f32 0.7978846, %v3569_v47  ;;  %5108 = vtanh.f32 %v3586_v52 }
 0x899   :  { %v5097_v18 = vpop.eup %5096  ;;  %v3558_v61 = vmul.f32 %v3542_v14, %v7382_v43  ;;  %v3541_v7 = vmul.f32 %v3525_v50, %v7390_v13  ;;  %v7400_v3 = vadd.f32 %v4706_v60, %v7301_v10  ;;  %v3571_v46 = vadd.f32 %v3555_v63, %v7374_v8 }
 0x89a   :  { %v3488_v48 = vpop.f32.mrf.mxu1  ;;  %v3625_v23 = vmul.f32 %v3609_v49, %v3497_v55  ;;  %v3612_v12 = vadd.f32 1.0, %v5097_v18  ;;  %5110 = vtanh.f32 %v3585_v9  ;;  %v3588_v45 = vmul.f32 0.7978846, %v3572_v56 }
 0x89b   :  { %v5099_v40 = vpop.eup %5098  ;;  %v3574_v44 = vadd.f32 %v3558_v61, %v7382_v43  ;;  %v3528_v42 = vmul.f32 0.044715, %v7400_v3  ;;  %v7406_v33 = vadd.f32 %v7301_v10, %v3488_v48  ;;  %v3587_v35 = vmul.f32 0.7978846, %v3571_v46 }
 0x89c   :  { %4739 = vmatprep.mubr.f32.mxu0 %v3625_v23  ;;  %v3499_v20 = vmul.f32 0.5, %v7319_v51  ;;  %v3611_v1 = vadd.f32 1.0, %v5099_v40  ;;  %v3500_v34 = vmul.f32 0.5, %v7313_v4  ;;  %5112 = vtanh.f32 %v3588_v45 }
 0x89d   :  { %v5101_v55 = vpop.eup %5100  ;;  %v3544_v30 = vmul.f32 %v3528_v42, %v7400_v3  ;;  %v3527_v41 = vmul.f32 0.044715, %v7406_v33  ;;  %4740 = vmatmul.mubr.f32.vlgmr.msra.gmra.mxu0 %v3626_v53  ;;  %5114 = vtanh.f32 %v3587_v35  ;;  %v3557_v15 = vmul.f32 %v3541_v7, %v7390_v13 }
 0x89e   :  { %v3627_v21 = vmul.f32 %v3611_v1, %v3499_v20  ;;  %v3614_v10 = vadd.f32 1.0, %v5101_v55  ;;  %v3590_v6 = vmul.f32 0.7978846, %v3574_v44  ;;  %v3628_v52 = vmul.f32 %v3612_v12, %v3500_v34 }
 0x89f   :  { %v5103_v19 = vpop.eup %5102  ;;  %v3560_v47 = vmul.f32 %v3544_v30, %v7400_v3  ;;  %v3543_v51 = vmul.f32 %v3527_v41, %v7406_v33  ;;  %v3573_v4 = vadd.f32 %v3557_v15, %v7390_v13  ;;  %v3501_v32 = vmul.f32 0.5, %v7331_v39 }
 0x8a0   :  { %4742 = vmatprep.mubr.f32.mxu0 %v3627_v21  ;;  %v3613_v56 = vadd.f32 1.0, %v5103_v19  ;;  %v3502_v14 = vmul.f32 0.5, %v7325_v25  ;;  %5116 = vtanh.f32 %v3590_v6  ;;  %v3503_v39 = vmul.f32 0.5, %v7345_v57 }
 0x8a1   :  { %v5105_v50 = vpop.eup %5104  ;;  %v3576_v63 = vadd.f32 %v3560_v47, %v7400_v3  ;;  %4743 = vmatmul.mubr.f32.gmra.mxu0 %v3628_v52  ;;  %v3589_v60 = vmul.f32 0.7978846, %v3573_v4  ;;  %v3559_v49 = vmul.f32 %v3543_v51, %v7406_v33  ;;  %v3504_v23 = vmul.f32 0.5, %v7338_v5 }
 0x8a2   :  { %v3629_v53 = vmul.f32 %v3613_v56, %v3501_v32  ;;  %v3630_v9 = vmul.f32 %v3614_v10, %v3502_v14  ;;  %v3616_v61 = vadd.f32 1.0, %v5105_v50  ;;  %v3505_v35 = vmul.f32 0.5, %v7359_v27 }
 0x8a3   :  { %v5107_v18 = vpop.eup %5106  ;;  %5118 = vtanh.f32 %v3589_v60  ;;  %v3575_v7 = vadd.f32 %v3559_v49, %v7406_v33  ;;  %v3592_v46 = vmul.f32 0.7978846, %v3576_v63  ;;  %v3506_v57 = vmul.f32 0.5, %v7352_v62 }
 0x8a4   :  { %4745 = vmatprep.mubr.f32.mxu0 %v3629_v53  ;;  %v3615_v25 = vadd.f32 1.0, %v5107_v18  ;;  %v3632_v44 = vmul.f32 %v3616_v61, %v3504_v23  ;;  %v3507_v5 = vmul.f32 0.5, %v7374_v8  ;;  %v3508_v6 = vmul.f32 0.5, %v7366_v26 }
 0x8a5   :  { %v5109_v48 = vpop.eup %5108  ;;  %4746 = vmatmul.mubr.f32.gmra.mxu0 %v3630_v9  ;;  %v3591_v12 = vmul.f32 0.7978846, %v3575_v7  ;;  %5120 = vtanh.f32 %v3592_v46  ;;  %v3509_v62 = vmul.f32 0.5, %v7390_v13  ;;  %v3510_v4 = vmul.f32 0.5, %v7382_v43  ;;  %v3998_v13 = vld [vmem:[%s7532_s18] ss:$0 sm:$0xff] }
 0x8a6   :  { %v3631_v45 = vmul.f32 %v3615_v25, %v3503_v39  ;;  %v3618_v42 = vadd.f32 1.0, %v5109_v48  ;;  %v3511_v50 = vmul.f32 0.5, %v7406_v33  ;;  %v3512_v26 = vmul.f32 0.5, %v7400_v3 }
 0x8a7   :  { %v5111_v40 = vpop.eup %5110  ;;  %5122 = vtanh.f32 %v3591_v12 }
 0x8a8   :  { %4748 = vmatprep.mubr.f32.mxu0 %v3631_v45  ;;  %v3617_v20 = vadd.f32 1.0, %v5111_v40  ;;  %v3634_v30 = vmul.f32 %v3618_v42, %v3506_v57 }
 0x8a9   :  { %v5113_v1 = vpop.eup %5112  ;;  %4749 = vmatmul.mubr.f32.gmra.mxu0 %v3632_v44 }
 0x8aa   :  { %v5115_v34 = vpop.eup %5114  ;;  %v3633_v55 = vmul.f32 %v3617_v20, %v3505_v35  ;;  %v3620_v15 = vadd.f32 1.0, %v5113_v1 }
 0x8ab   :  { %v3619_v41 = vadd.f32 1.0, %v5115_v34 }
 0x8ac   :  { %4751 = vmatprep.mubr.f32.mxu0 %v3633_v55  ;;  %v3636_v27 = vmul.f32 %v3620_v15, %v3508_v6 }
 0x8ad   :  { %v5117_v21 = vpop.eup %5116  ;;  %4752 = vmatmul.mubr.f32.gmra.mxu0 %v3634_v30  ;;  %v3635_v10 = vmul.f32 %v3619_v41, %v3507_v5 }
 0x8ae   :  { %v3622_v47 = vadd.f32 1.0, %v5117_v21 }
 0x8af   :  { %4754 = vmatprep.mubr.f32.mxu0 %v3635_v10 }
 0x8b0   :  { %v5119_v19 = vpop.eup %5118  ;;  %v3638_v56 = vmul.f32 %v3622_v47, %v3510_v4 }
 0x8b1   :  { %4755 = vmatmul.mubr.f32.gmra.mxu0 %v3636_v27  ;;  %v3621_v51 = vadd.f32 1.0, %v5119_v19 }
 0x8b2   :  { %v5121_v52 = vpop.eup %5120 }
 0x8b3   :  { %v3637_v8 = vmul.f32 %v3621_v51, %v3509_v62  ;;  %v3624_v14 = vadd.f32 1.0, %v5121_v52 }
 0x8b4   :  { %v5123_v32 = vpop.eup %5122 }
 0x8b5   :  { %4757 = vmatprep.mubr.f32.mxu0 %v3637_v8  ;;  %v3623_v63 = vadd.f32 1.0, %v5123_v32  ;;  %v3640_v49 = vmul.f32 %v3624_v14, %v3512_v26 }
 0x8b6   :  { %4758 = vmatmul.mubr.f32.gmra.mxu0 %v3638_v56 }
 0x8b7   :  { %v3639_v60 = vmul.f32 %v3623_v63, %v3511_v50 }
 0x8b9   :  { %4760 = vmatprep.mubr.f32.mxu0 %v3639_v60 }
 0x8ba   :  { %4761 = vmatmul.mubr.f32.gmra.mxu0 %v3640_v49 }
 0x95d   :  { %v4741_v43 = vpop.f32.mrf.mxu0 }
 0x95e   :  { %v3719_v53 = vadd.f32 %v4741_v43, %v3998_v13 }
 0x95f   :  { %v3713_v9 = vpop.f32.mrf.mxu0 }
 0x960   :  { %v3793_v18 = vadd.f32 %v3719_v53, %v6974_v22  ;;  %v3714_v61 = vadd.f32 %v3998_v13, %v3713_v9 }
 0x961   :  { %v4744_v7 = vpop.f32.mrf.mxu0 }
 0x962   :  { %3809 = vst.msk [vmem:[%s7533_s19 + $0x8] sm:$0xff] %vm141_vm0, %v3793_v18  ;;  %v3792_v3 = vadd.f32 %v3714_v61, %v6978_v24  ;;  %v3729_v33 = vadd.f32 %v4744_v7, %v3998_v13 }
 0x963   :  { %v3723_v46 = vpop.f32.mrf.mxu0 }
 0x964   :  { %3808 = vst.msk [vmem:[%s7533_s19] sm:$0xff] %vm141_vm0, %v3792_v3  ;;  %v3795_v39 = vadd.f32 %v3729_v33, %v6984_v37  ;;  %v3724_v25 = vadd.f32 %v3998_v13, %v3723_v46 }
 0x965   :  { %v4747_v22 = vpop.f32.mrf.mxu0 }
 0x966   :  { %3811 = vst.msk [vmem:[%s7533_s19 + $0x18] sm:$0xff] %vm141_vm0, %v3795_v39  ;;  %v3794_v48 = vadd.f32 %v3724_v25, %v6990_v58  ;;  %v3739_v23 = vadd.f32 %v4747_v22, %v3998_v13 }
 0x967   :  { %v3733_v24 = vpop.f32.mrf.mxu0 }
 0x968   :  { %3810 = vst.msk [vmem:[%s7533_s19 + $0x10] sm:$0xff] %vm141_vm0, %v3794_v48  ;;  %v3797_v12 = vadd.f32 %v3739_v23, %v6996_v2  ;;  %v3734_v45 = vadd.f32 %v3998_v13, %v3733_v24 }
 0x969   :  { %v4750_v37 = vpop.f32.mrf.mxu0 }
 0x96a   :  { %3813 = vst.msk [vmem:[%s7533_s19 + $0x28] sm:$0xff] %vm141_vm0, %v3797_v12  ;;  %v3796_v40 = vadd.f32 %v3734_v45, %v7002_v0  ;;  %v3749_v44 = vadd.f32 %v4750_v37, %v3998_v13 }
 0x96b   :  { %v3743_v58 = vpop.f32.mrf.mxu0 }
 0x96c   :  { %3812 = vst.msk [vmem:[%s7533_s19 + $0x20] sm:$0xff] %vm141_vm0, %v3796_v40  ;;  %v3799_v42 = vadd.f32 %v3749_v44, %v7008_v31  ;;  %v3744_v35 = vadd.f32 %v3998_v13, %v3743_v58 }
 0x96d   :  { %v4753_v2 = vpop.f32.mrf.mxu0 }
 0x96e   :  { %3815 = vst.msk [vmem:[%s7533_s19 + $0x38] sm:$0xff] %vm141_vm0, %v3799_v42  ;;  %v3798_v20 = vadd.f32 %v3744_v35, %v7014_v36  ;;  %v3759_v1 = vadd.f32 %v4753_v2, %v3998_v13 }
 0x96f   :  { %v3753_v0 = vpop.f32.mrf.mxu0 }
 0x970   :  { %3814 = vst.msk [vmem:[%s7533_s19 + $0x30] sm:$0xff] %vm141_vm0, %v3798_v20  ;;  %v3801_v57 = vadd.f32 %v3759_v1, %v7020_v28  ;;  %v3754_v34 = vadd.f32 %v3998_v13, %v3753_v0 }
 0x971   :  { %v4756_v31 = vpop.f32.mrf.mxu0 }
 0x972   :  { %3817 = vst.msk [vmem:[%s7533_s19 + $0x48] sm:$0xff] %vm141_vm0, %v3801_v57  ;;  %v3800_v55 = vadd.f32 %v3754_v34, %v7026_v29  ;;  %v3769_v30 = vadd.f32 %v4756_v31, %v3998_v13 }
 0x973   :  { %v3763_v36 = vpop.f32.mrf.mxu0 }
 0x974   :  { %3816 = vst.msk [vmem:[%s7533_s19 + $0x40] sm:$0xff] %vm141_vm0, %v3800_v55  ;;  %v3803_v5 = vadd.f32 %v3769_v30, %v7032_v16  ;;  %v3764_v41 = vadd.f32 %v3998_v13, %v3763_v36 }
 0x976   :  { %3819 = vst.msk [vmem:[%s7533_s19 + $0x58] sm:$0xff] %vm141_vm0, %v3803_v5  ;;  %v3802_v28 = vadd.f32 %v3764_v41, %v7038_v11  ;;  %v4759_v15 = vpop.f32.mrf.mxu0 }
 0x977   :  { %v3779_v21 = vadd.f32 %v4759_v15, %v3998_v13 }
 0x978   :  { %3818 = vst.msk [vmem:[%s7533_s19 + $0x50] sm:$0xff] %vm141_vm0, %v3802_v28  ;;  %v3773_v29 = vpop.f32.mrf.mxu0 }
 0x979   :  { %v3805_v10 = vadd.f32 %v3779_v21, %v7044_v17  ;;  %v3774_v6 = vadd.f32 %v3998_v13, %v3773_v29 }
 0x97a   :  { %v4762_v16 = vpop.f32.mrf.mxu0 }
 0x97b   :  { %3821 = vst.msk [vmem:[%s7533_s19 + $0x68] sm:$0xff] %vm141_vm0, %v3805_v10  ;;  %v3804_v27 = vadd.f32 %v3774_v6, %v7050_v54  ;;  %v3789_v11 = vadd.f32 %v4762_v16, %v3998_v13 }
 0x97c   :  { %v3783_v19 = vpop.f32.mrf.mxu0 }
 0x97d   :  { %3820 = vst.msk [vmem:[%s7533_s19 + $0x60] sm:$0xff] %vm141_vm0, %v3804_v27  ;;  %v3807_v47 = vadd.f32 %v3789_v11, %v7058_v59  ;;  %v3784_v62 = vadd.f32 %v3998_v13, %v3783_v19 }
 0x97f   :  { %3823 = vst.msk [vmem:[%s7533_s19 + $0x78] sm:$0xff] %vm141_vm0, %v3807_v47  ;;  %v3806_v17 = vadd.f32 %v3784_v62, %v7062_v38 }
 0x981   :  { %3822 = vst.msk [vmem:[%s7533_s19 + $0x70] sm:$0xff] %vm141_vm0, %v3806_v17 }

</bundles_post_ra>
